<compile_context>
chip_gen: v6e
topology: v6e:2x2x1
jax: 0.10.0
libtpu: 0.0.40
codegen_flags: <defaults>
</compile_context>

<pallas_src>
import functools

import jax
import jax.numpy as jnp
from jax.experimental import pallas as pl
from jax.experimental.pallas import tpu as pltpu


_LANE = 128                              # channel padding granularity
_PREFERRED_TILE_N = 256                  # fills the 256-wide MXU on v6e/v7x
_MAX_BAND_ROWS = 16                      # max output rows per grid step
_IM2COL_VMEM_BUDGET = 12 * 1024 * 1024   # cap for the per-band im2col scratch


def _round_up(n, m):
    return (n + m - 1) // m * m


def _vmem_limit_bytes():
    """Per-generation VMEM limit with headroom (e.g. 48 MiB on v7x, 112 MiB on v6e)."""
    try:
        cap = pltpu.get_tpu_info().vmem_capacity_bytes
    except Exception:
        cap = 64 * 1024 * 1024
    return int(max(cap - 16 * 1024 * 1024, 32 * 1024 * 1024))


def _pick_band_rows(ho, wo, cin_p, max_rows=_MAX_BAND_ROWS):
    """Largest divisor of `ho` <= max_rows whose im2col scratch fits the budget."""
    per_row = wo * 9 * cin_p * 2          # bf16 bytes of im2col per output row
    cap = max(1, min(max_rows, _IM2COL_VMEM_BUDGET // max(per_row, 1)))
    best = 1
    for r in range(2, min(ho, cap) + 1):
        if ho % r == 0:
            best = r
    # TODO(synk): support a ragged last band (pl.when-guarded) so awkward Ho
    # values do not degrade to rows=1.
    return best


def _conv3x3_band_kernel(*refs, rows, wo, cin_p, add_t):
    """relu(conv3x3_valid(x, w) + b) [+ t] for one (batch, row-band, Cout-tile).

    Grid = (B, n_oy, n_co); the Cout-tile axis is innermost and "arbitrary".
    refs (in order):
      x_hbm : (B, H, W, cin_p)    bf16, HBM (memory_space=pl.ANY)
      w_ref : (9*cin_p, TILE_N)   bf16, K laid out as [dy, dx, cin]
      b_ref : (1, TILE_N)         f32 conv bias
      t_ref : (1, TILE_N)         f32 per-batch t embedding (only if add_t)
      o_ref : (rows*wo, TILE_N)   bf16 band-flattened output block
      xband : (rows+2, W, cin_p)  bf16 VMEM scratch -- halo input band
      im2col: (rows*wo, 9*cin_p)  bf16 VMEM scratch -- band im2col
      sem   : DMA semaphore
    """
    if add_t:
        x_hbm, w_ref, b_ref, t_ref, o_ref, xband, im2col, sem = refs
    else:
        x_hbm, w_ref, b_ref, o_ref, xband, im2col, sem = refs
        t_ref = None

    n = pl.program_id(0)
    oy = pl.program_id(1)
    co = pl.program_id(2)

    # --- Once per (batch, band): DMA the halo rows and build the band im2col.
    # Reused by every Cout tile of this band (co is the innermost grid axis).
    @pl.when(co == 0)
    def _build_band():
        cp = pltpu.make_async_copy(
            x_hbm.at[n, pl.ds(oy * rows, rows + 2)], xband, sem)
        cp.start()
        cp.wait()
        # TODO(synk): double-buffer the band copy (prefetch band oy+1 during
        # this band's matmuls); requires marking the band axis "arbitrary".
        for iy in range(rows + 2):                       # static, <= 18 iters
            row = xband[iy]                              # (W, cin_p) bf16
            # Per-input-row 3-dx concat built exactly once per band.
            patch = jnp.concatenate(
                [row[dx:dx + wo] for dx in range(3)], axis=-1)   # (wo, 3*cin_p)
            for dy in range(3):
                r = iy - dy                              # output row fed by (iy, dy)
                if 0 <= r < rows:
                    im2col[r * wo:(r + 1) * wo,
                           dy * 3 * cin_p:(dy + 1) * 3 * cin_p] = patch

    # --- Per Cout tile: ONE MXU matmul over the whole band (M = rows*wo).
    acc = jnp.dot(im2col[...], w_ref[...],
                  preferred_element_type=jnp.float32)    # (rows*wo, TILE_N) f32
    y = jnp.maximum(acc + b_ref[...], 0.0)               # bias + ReLU (f32)
    if add_t:
        y = y + t_ref[...]                               # per-batch t embedding
    o_ref[...] = y.astype(o_ref.dtype)                   # bf16 lane-dense store


def conv3x3_relu_add(x, w, b, t_add=None):
    """y[n] = relu(conv2d_valid(x[n], w) + b) (+ t_add[n][None, None, :]), NHWC.

    `x` may already be channel-padded bf16 from a previous layer.  Returns a
    bf16 activation with channels padded to a multiple of 128; padded lanes
    are exactly zero, so the result can feed the pool / next conv directly.
    """
    B, H, W, xc = x.shape
    _, _, Cin, Cout = w.shape
    Ho, Wo = H - 2, W - 2
    cin_p = _round_up(Cin, _LANE)
    cout_p = _round_up(Cout, _LANE)

    # TODO(synk): dedicated small-Cin stem path (Cin=3/4) packing K as
    # 9*round_up(Cin, 8/16) instead of padding Cin to 128.
    if xc == Cin and cin_p != Cin:
        x = jnp.pad(x, ((0, 0), (0, 0), (0, 0), (0, cin_p - Cin)))
    assert x.shape[-1] == cin_p, (x.shape, cin_p)
    if x.dtype != jnp.bfloat16:
        x = x.astype(jnp.bfloat16)

    # Weights HWIO -> (9*cin_p, cout_p); K order = [dy, dx, cin] matches im2col.
    wp = jnp.pad(w, ((0, 0), (0, 0), (0, cin_p - Cin), (0, cout_p - Cout)))
    wp = wp.reshape(9 * cin_p, cout_p).astype(jnp.bfloat16)
    bp = jnp.pad(b.reshape(1, Cout),
                 ((0, 0), (0, cout_p - Cout))).astype(jnp.float32)

    tile_n = _PREFERRED_TILE_N if cout_p % _PREFERRED_TILE_N == 0 else _LANE
    n_co = cout_p // tile_n
    rows = _pick_band_rows(Ho, Wo, cin_p)
    n_oy = Ho // rows

    kernel = functools.partial(_conv3x3_band_kernel, rows=rows, wo=Wo,
                               cin_p=cin_p, add_t=t_add is not None)

    in_specs = [
        pl.BlockSpec(memory_space=pl.ANY),                        # x stays in HBM
        pl.BlockSpec((9 * cin_p, tile_n), lambda n, oy, co: (0, co)),
        pl.BlockSpec((1, tile_n), lambda n, oy, co: (0, co)),
    ]
    args = [x, wp, bp]
    if t_add is not None:
        tp = jnp.pad(t_add.reshape(B, 1, Cout),
                     ((0, 0), (0, 0), (0, cout_p - Cout))).astype(jnp.float32)
        in_specs.append(pl.BlockSpec((None, 1, tile_n),
                                     lambda n, oy, co: (n, 0, co)))
        args.append(tp)

    out = pl.pallas_call(
        kernel,
        # Band-flattened output (B, n_oy, rows*Wo, cout_p): every store is one
        # large lane-dense block; the reshape below is pure metadata.
        out_shape=jax.ShapeDtypeStruct((B, n_oy, rows * Wo, cout_p),
                                       jnp.bfloat16),
        grid_spec=pltpu.PrefetchScalarGridSpec(
            num_scalar_prefetch=0,
            grid=(B, n_oy, n_co),
            in_specs=in_specs,
            out_specs=pl.BlockSpec((None, None, rows * Wo, tile_n),
                                   lambda n, oy, co: (n, oy, 0, co)),
            scratch_shapes=[
                pltpu.VMEM((rows + 2, W, cin_p), jnp.bfloat16),    # halo band
                pltpu.VMEM((rows * Wo, 9 * cin_p), jnp.bfloat16),  # band im2col
                pltpu.SemaphoreType.DMA,
            ]),
        compiler_params=pltpu.CompilerParams(
            dimension_semantics=("parallel", "parallel", "arbitrary"),
            vmem_limit_bytes=_vmem_limit_bytes()),
    )(*args)

    return out.reshape(B, Ho, Wo, cout_p)


def maxpool2x2(x):
    """nn.MaxPool2d(2) (kernel 2, stride 2, floor) in NHWC.  Plain-JAX glue."""
    # TODO(synk): fuse the 2x2 max-pool into the second conv's epilogue as an
    # extra pallas_call output to avoid one feature-map round trip to HBM.
    B, H, W, C = x.shape
    Hp, Wp = H // 2, W // 2
    x = x[:, :Hp * 2, :Wp * 2, :]
    return x.reshape(B, Hp, 2, Wp, 2, C).max(axis=(2, 4))


def encoder_block(x, t, params):
    """Block.forward: relu(conv2(relu(conv1(x)) + t_emb))."""
    w1, b1, w2, b2, wt, bt = params
    t_emb = (t @ wt.T + bt).astype(jnp.float32)   # Linear(1, out_ch): (B, Cout)
    h = conv3x3_relu_add(x, w1, b1, t_emb)        # relu(conv1 + b1) + t_emb
    return conv3x3_relu_add(h, w2, b2)            # relu(conv2 + b2)  (no-t path)


def encoder_forward(x, t, params_list):
    """Encoder.forward: returns list of per-block features (pre-pool)."""
    ftrs = []
    for params in params_list:
        cout = params[0].shape[-1]
        x = encoder_block(x, t, params)                    # bf16, channel-padded
        # Module boundary: strip channel padding, return f32 like PyTorch.
        ftrs.append(x[..., :cout].astype(jnp.float32))
        x = maxpool2x2(x)                                  # stays bf16-padded
    return ftrs


# ---------------- pure-JAX reference (for correctness check) ----------------

def _ref_block(x, t, params):
    w1, b1, w2, b2, wt, bt = params
    dn = ("NHWC", "HWIO", "NHWC")
    t_emb = t @ wt.T + bt
    h = jax.lax.conv_general_dilated(x, w1, (1, 1), "VALID", dimension_numbers=dn)
    h = jnp.maximum(h + b1, 0.0) + t_emb[:, None, None, :]
    y = jax.lax.conv_general_dilated(h, w2, (1, 1), "VALID", dimension_numbers=dn)
    return jnp.maximum(y + b2, 0.0)


def _ref_encoder(x, t, params_list):
    ftrs = []
    for params in params_list:
        x = _ref_block(x, t, params)
        ftrs.append(x)
        x = maxpool2x2(x)
    return ftrs


if __name__ == "__main__":
    key = jax.random.PRNGKey(0)
    chs = (4, 8, 16)          # small stand-in for (3, 64, 128, 256, 512, 1024)
    B, H, W = 2, 32, 32
    k_x, k_t, k_p = jax.random.split(key, 3)
    x = jax.random.normal(k_x, (B, H, W, chs[0]), jnp.float32)   # NHWC input
    t = jax.random.normal(k_t, (B, 1), jnp.float32)              # time scalar

    params_list = []
    for i in range(len(chs) - 1):
        cin, cout = chs[i], chs[i + 1]
        k_p, *ks = jax.random.split(k_p, 7)
        w1 = jax.random.normal(ks[0], (3, 3, cin, cout), jnp.float32) * 0.1
        b1 = jax.random.normal(ks[1], (cout,), jnp.float32) * 0.1
        w2 = jax.random.normal(ks[2], (3, 3, cout, cout), jnp.float32) * 0.1
        b2 = jax.random.normal(ks[3], (cout,), jnp.float32) * 0.1
        wt = jax.random.normal(ks[4], (cout, 1), jnp.float32) * 0.1
        bt = jax.random.normal(ks[5], (cout,), jnp.float32) * 0.1
        params_list.append((w1, b1, w2, b2, wt, bt))

    ftrs = encoder_forward(x, t, params_list)
    ftrs = jax.block_until_ready(ftrs)

    # Correctness check against a pure-f32 JAX reference.  The kernel feeds
    # bf16 activations/weights to the MXU (f32 accumulation) and stores bf16
    # activations, so the tolerance is loosened accordingly.
    ref = jax.block_until_ready(_ref_encoder(x, t, params_list))
    for got, want in zip(ftrs, ref):
        assert got.shape == want.shape, (got.shape, want.shape)
        assert jnp.allclose(got, want, atol=5e-2, rtol=5e-2), float(
            jnp.max(jnp.abs(got - want)))

    print("KERNEL_OK")
</pallas_src>

<mosaic_0001>
module attributes {stable_mosaic.version = 11 : i64} {
  func.func @_conv3x3_band_kernel(%arg0: i32, %arg1: i32, %arg2: i32, %arg3: memref<2x32x32x128xbf16, #tpu.memory_space<any>>, %arg4: memref<1152x128xbf16, #tpu.memory_space<vmem>>, %arg5: memref<1x128xf32, #tpu.memory_space<vmem>>, %arg6: memref<1x1x128xf32, #tpu.memory_space<vmem>>, %arg7: memref<1x1x450x128xbf16, #tpu.memory_space<vmem>>, %arg8: memref<17x32x128xbf16, #tpu.memory_space<vmem>>, %arg9: memref<450x1152xbf16, #tpu.memory_space<vmem>>, %arg10: memref<!tpu.dma_semaphore, #tpu.memory_space<semaphore_mem>>) attributes {dimension_semantics = [#tpu.dimension_semantics<parallel>, #tpu.dimension_semantics<parallel>, #tpu.dimension_semantics<arbitrary>], iteration_bounds = array<i64: 2, 2, 1>, scalar_prefetch = 0 : i64, scratch_operands = 3 : i64, tpu.core_type = #tpu.core_type<tc>, window_params = [{}, {transform_indices = @transform_1, window_bounds = array<i64: 1152, 128>}, {transform_indices = @transform_2, window_bounds = array<i64: 1, 128>}, {transform_indices = @transform_3, window_bounds = array<i64: 1, 1, 128>}, {transform_indices = @transform_4, window_bounds = array<i64: 1, 1, 450, 128>}]} {
    %c0_i32 = arith.constant 0 : i32
    %0 = arith.cmpi eq, %arg2, %c0_i32 : i32
    %1 = arith.extui %0 : i1 to i32
    %c0_i32_0 = arith.constant 0 : i32
    %2 = arith.cmpi ne, %1, %c0_i32_0 : i32
    scf.if %2 {
      %c15_i32 = arith.constant 15 : i32
      %19 = arith.muli %arg1, %c15_i32 : i32
      %c0_i32_14 = arith.constant 0 : i32
      %c0_i32_15 = arith.constant 0 : i32
      %20 = tpu.memref_slice %arg3[%arg0, %19, %c0_i32_14, %c0_i32_15] : memref<2x32x32x128xbf16, #tpu.memory_space<any>> -> memref<1x17x32x128xbf16, #tpu.memory_space<any>>
      %21 = tpu.memref_squeeze %20 : memref<1x17x32x128xbf16, #tpu.memory_space<any>> -> memref<17x32x128xbf16, #tpu.memory_space<any>>
      tpu.enqueue_dma source(%21 : memref<17x32x128xbf16, #tpu.memory_space<any>>) target(%arg8 : memref<17x32x128xbf16, #tpu.memory_space<vmem>>) target_semaphore(%arg10 : memref<!tpu.dma_semaphore, #tpu.memory_space<semaphore_mem>>)
      %c0_i32_16 = arith.constant 0 : i32
      %c0_i32_17 = arith.constant 0 : i32
      %22 = tpu.memref_slice %arg3[%arg0, %19, %c0_i32_16, %c0_i32_17] : memref<2x32x32x128xbf16, #tpu.memory_space<any>> -> memref<1x17x32x128xbf16, #tpu.memory_space<any>>
      %23 = tpu.memref_squeeze %22 : memref<1x17x32x128xbf16, #tpu.memory_space<any>> -> memref<17x32x128xbf16, #tpu.memory_space<any>>
      tpu.wait_dma2 semaphore(%arg10 : memref<!tpu.dma_semaphore, #tpu.memory_space<semaphore_mem>>) src(%23 : memref<17x32x128xbf16, #tpu.memory_space<any>>) dst(%arg8 : memref<17x32x128xbf16, #tpu.memory_space<vmem>>)
      %c0_18 = arith.constant 0 : index
      %c0_19 = arith.constant 0 : index
      %c0_20 = arith.constant 0 : index
      %24 = vector.load %arg8[%c0_18, %c0_19, %c0_20] : memref<17x32x128xbf16, #tpu.memory_space<vmem>>, vector<1x32x128xbf16>
      %25 = vector.shape_cast %24 : vector<1x32x128xbf16> to vector<32x128xbf16>
      %26 = vector.extract_strided_slice %25 {offsets = [0, 0], sizes = [30, 128], strides = [1, 1]} : vector<32x128xbf16> to vector<30x128xbf16>
      %27 = vector.extract_strided_slice %25 {offsets = [1, 0], sizes = [30, 128], strides = [1, 1]} : vector<32x128xbf16> to vector<30x128xbf16>
      %28 = vector.extract_strided_slice %25 {offsets = [2, 0], sizes = [30, 128], strides = [1, 1]} : vector<32x128xbf16> to vector<30x128xbf16>
      %29 = tpu.concatenate %26, %27, %28 in 1 : vector<30x128xbf16>, vector<30x128xbf16>, vector<30x128xbf16> -> vector<30x384xbf16>
      %c0_21 = arith.constant 0 : index
      %c0_22 = arith.constant 0 : index
      %30 = vector.load %arg9[%c0_21, %c0_22] : memref<450x1152xbf16, #tpu.memory_space<vmem>>, vector<30x384xbf16>
      tpu.vector_store %arg9[%c0_21, %c0_22], %29 {strides = array<i32>} : memref<450x1152xbf16, #tpu.memory_space<vmem>>, vector<30x384xbf16>,
      %c1 = arith.constant 1 : index
      %c0_23 = arith.constant 0 : index
      %c0_24 = arith.constant 0 : index
      %31 = vector.load %arg8[%c1, %c0_23, %c0_24] : memref<17x32x128xbf16, #tpu.memory_space<vmem>>, vector<1x32x128xbf16>
      %32 = vector.shape_cast %31 : vector<1x32x128xbf16> to vector<32x128xbf16>
      %33 = vector.extract_strided_slice %32 {offsets = [0, 0], sizes = [30, 128], strides = [1, 1]} : vector<32x128xbf16> to vector<30x128xbf16>
      %34 = vector.extract_strided_slice %32 {offsets = [1, 0], sizes = [30, 128], strides = [1, 1]} : vector<32x128xbf16> to vector<30x128xbf16>
      %35 = vector.extract_strided_slice %32 {offsets = [2, 0], sizes = [30, 128], strides = [1, 1]} : vector<32x128xbf16> to vector<30x128xbf16>
      %36 = tpu.concatenate %33, %34, %35 in 1 : vector<30x128xbf16>, vector<30x128xbf16>, vector<30x128xbf16> -> vector<30x384xbf16>
      %c30 = arith.constant 30 : index
      %c0_25 = arith.constant 0 : index
      %37 = vector.load %arg9[%c30, %c0_25] : memref<450x1152xbf16, #tpu.memory_space<vmem>>, vector<30x384xbf16>
      tpu.vector_store %arg9[%c30, %c0_25], %36 {strides = array<i32>} : memref<450x1152xbf16, #tpu.memory_space<vmem>>, vector<30x384xbf16>,
      %c0_26 = arith.constant 0 : index
      %c384 = arith.constant 384 : index
      %38 = vector.load %arg9[%c0_26, %c384] : memref<450x1152xbf16, #tpu.memory_space<vmem>>, vector<30x384xbf16>
      tpu.vector_store %arg9[%c0_26, %c384], %36 {strides = array<i32>} : memref<450x1152xbf16, #tpu.memory_space<vmem>>, vector<30x384xbf16>,
      %c2 = arith.constant 2 : index
      %c0_27 = arith.constant 0 : index
      %c0_28 = arith.constant 0 : index
      %39 = vector.load %arg8[%c2, %c0_27, %c0_28] : memref<17x32x128xbf16, #tpu.memory_space<vmem>>, vector<1x32x128xbf16>
      %40 = vector.shape_cast %39 : vector<1x32x128xbf16> to vector<32x128xbf16>
      %41 = vector.extract_strided_slice %40 {offsets = [0, 0], sizes = [30, 128], strides = [1, 1]} : vector<32x128xbf16> to vector<30x128xbf16>
      %42 = vector.extract_strided_slice %40 {offsets = [1, 0], sizes = [30, 128], strides = [1, 1]} : vector<32x128xbf16> to vector<30x128xbf16>
      %43 = vector.extract_strided_slice %40 {offsets = [2, 0], sizes = [30, 128], strides = [1, 1]} : vector<32x128xbf16> to vector<30x128xbf16>
      %44 = tpu.concatenate %41, %42, %43 in 1 : vector<30x128xbf16>, vector<30x128xbf16>, vector<30x128xbf16> -> vector<30x384xbf16>
      %c60 = arith.constant 60 : index
      %c0_29 = arith.constant 0 : index
      %45 = vector.load %arg9[%c60, %c0_29] : memref<450x1152xbf16, #tpu.memory_space<vmem>>, vector<30x384xbf16>
      tpu.vector_store %arg9[%c60, %c0_29], %44 {strides = array<i32>} : memref<450x1152xbf16, #tpu.memory_space<vmem>>, vector<30x384xbf16>,
      %c30_30 = arith.constant 30 : index
      %c384_31 = arith.constant 384 : index
      %46 = vector.load %arg9[%c30_30, %c384_31] : memref<450x1152xbf16, #tpu.memory_space<vmem>>, vector<30x384xbf16>
      tpu.vector_store %arg9[%c30_30, %c384_31], %44 {strides = array<i32>} : memref<450x1152xbf16, #tpu.memory_space<vmem>>, vector<30x384xbf16>,
      %c0_32 = arith.constant 0 : index
      %c768 = arith.constant 768 : index
      %47 = vector.load %arg9[%c0_32, %c768] : memref<450x1152xbf16, #tpu.memory_space<vmem>>, vector<30x384xbf16>
      tpu.vector_store %arg9[%c0_32, %c768], %44 {strides = array<i32>} : memref<450x1152xbf16, #tpu.memory_space<vmem>>, vector<30x384xbf16>,
      %c3 = arith.constant 3 : index
      %c0_33 = arith.constant 0 : index
      %c0_34 = arith.constant 0 : index
      %48 = vector.load %arg8[%c3, %c0_33, %c0_34] : memref<17x32x128xbf16, #tpu.memory_space<vmem>>, vector<1x32x128xbf16>
      %49 = vector.shape_cast %48 : vector<1x32x128xbf16> to vector<32x128xbf16>
      %50 = vector.extract_strided_slice %49 {offsets = [0, 0], sizes = [30, 128], strides = [1, 1]} : vector<32x128xbf16> to vector<30x128xbf16>
      %51 = vector.extract_strided_slice %49 {offsets = [1, 0], sizes = [30, 128], strides = [1, 1]} : vector<32x128xbf16> to vector<30x128xbf16>
      %52 = vector.extract_strided_slice %49 {offsets = [2, 0], sizes = [30, 128], strides = [1, 1]} : vector<32x128xbf16> to vector<30x128xbf16>
      %53 = tpu.concatenate %50, %51, %52 in 1 : vector<30x128xbf16>, vector<30x128xbf16>, vector<30x128xbf16> -> vector<30x384xbf16>
      %c90 = arith.constant 90 : index
      %c0_35 = arith.constant 0 : index
      %54 = vector.load %arg9[%c90, %c0_35] : memref<450x1152xbf16, #tpu.memory_space<vmem>>, vector<30x384xbf16>
      tpu.vector_store %arg9[%c90, %c0_35], %53 {strides = array<i32>} : memref<450x1152xbf16, #tpu.memory_space<vmem>>, vector<30x384xbf16>,
      %c60_36 = arith.constant 60 : index
      %c384_37 = arith.constant 384 : index
      %55 = vector.load %arg9[%c60_36, %c384_37] : memref<450x1152xbf16, #tpu.memory_space<vmem>>, vector<30x384xbf16>
      tpu.vector_store %arg9[%c60_36, %c384_37], %53 {strides = array<i32>} : memref<450x1152xbf16, #tpu.memory_space<vmem>>, vector<30x384xbf16>,
      %c30_38 = arith.constant 30 : index
      %c768_39 = arith.constant 768 : index
      %56 = vector.load %arg9[%c30_38, %c768_39] : memref<450x1152xbf16, #tpu.memory_space<vmem>>, vector<30x384xbf16>
      tpu.vector_store %arg9[%c30_38, %c768_39], %53 {strides = array<i32>} : memref<450x1152xbf16, #tpu.memory_space<vmem>>, vector<30x384xbf16>,
      %c4 = arith.constant 4 : index
      %c0_40 = arith.constant 0 : index
      %c0_41 = arith.constant 0 : index
      %57 = vector.load %arg8[%c4, %c0_40, %c0_41] : memref<17x32x128xbf16, #tpu.memory_space<vmem>>, vector<1x32x128xbf16>
      %58 = vector.shape_cast %57 : vector<1x32x128xbf16> to vector<32x128xbf16>
      %59 = vector.extract_strided_slice %58 {offsets = [0, 0], sizes = [30, 128], strides = [1, 1]} : vector<32x128xbf16> to vector<30x128xbf16>
      %60 = vector.extract_strided_slice %58 {offsets = [1, 0], sizes = [30, 128], strides = [1, 1]} : vector<32x128xbf16> to vector<30x128xbf16>
      %61 = vector.extract_strided_slice %58 {offsets = [2, 0], sizes = [30, 128], strides = [1, 1]} : vector<32x128xbf16> to vector<30x128xbf16>
      %62 = tpu.concatenate %59, %60, %61 in 1 : vector<30x128xbf16>, vector<30x128xbf16>, vector<30x128xbf16> -> vector<30x384xbf16>
      %c120 = arith.constant 120 : index
      %c0_42 = arith.constant 0 : index
      %63 = vector.load %arg9[%c120, %c0_42] : memref<450x1152xbf16, #tpu.memory_space<vmem>>, vector<30x384xbf16>
      tpu.vector_store %arg9[%c120, %c0_42], %62 {strides = array<i32>} : memref<450x1152xbf16, #tpu.memory_space<vmem>>, vector<30x384xbf16>,
      %c90_43 = arith.constant 90 : index
      %c384_44 = arith.constant 384 : index
      %64 = vector.load %arg9[%c90_43, %c384_44] : memref<450x1152xbf16, #tpu.memory_space<vmem>>, vector<30x384xbf16>
      tpu.vector_store %arg9[%c90_43, %c384_44], %62 {strides = array<i32>} : memref<450x1152xbf16, #tpu.memory_space<vmem>>, vector<30x384xbf16>,
      %c60_45 = arith.constant 60 : index
      %c768_46 = arith.constant 768 : index
      %65 = vector.load %arg9[%c60_45, %c768_46] : memref<450x1152xbf16, #tpu.memory_space<vmem>>, vector<30x384xbf16>
      tpu.vector_store %arg9[%c60_45, %c768_46], %62 {strides = array<i32>} : memref<450x1152xbf16, #tpu.memory_space<vmem>>, vector<30x384xbf16>,
      %c5 = arith.constant 5 : index
      %c0_47 = arith.constant 0 : index
      %c0_48 = arith.constant 0 : index
      %66 = vector.load %arg8[%c5, %c0_47, %c0_48] : memref<17x32x128xbf16, #tpu.memory_space<vmem>>, vector<1x32x128xbf16>
      %67 = vector.shape_cast %66 : vector<1x32x128xbf16> to vector<32x128xbf16>
      %68 = vector.extract_strided_slice %67 {offsets = [0, 0], sizes = [30, 128], strides = [1, 1]} : vector<32x128xbf16> to vector<30x128xbf16>
      %69 = vector.extract_strided_slice %67 {offsets = [1, 0], sizes = [30, 128], strides = [1, 1]} : vector<32x128xbf16> to vector<30x128xbf16>
      %70 = vector.extract_strided_slice %67 {offsets = [2, 0], sizes = [30, 128], strides = [1, 1]} : vector<32x128xbf16> to vector<30x128xbf16>
      %71 = tpu.concatenate %68, %69, %70 in 1 : vector<30x128xbf16>, vector<30x128xbf16>, vector<30x128xbf16> -> vector<30x384xbf16>
      %c150 = arith.constant 150 : index
      %c0_49 = arith.constant 0 : index
      %72 = vector.load %arg9[%c150, %c0_49] : memref<450x1152xbf16, #tpu.memory_space<vmem>>, vector<30x384xbf16>
      tpu.vector_store %arg9[%c150, %c0_49], %71 {strides = array<i32>} : memref<450x1152xbf16, #tpu.memory_space<vmem>>, vector<30x384xbf16>,
      %c120_50 = arith.constant 120 : index
      %c384_51 = arith.constant 384 : index
      %73 = vector.load %arg9[%c120_50, %c384_51] : memref<450x1152xbf16, #tpu.memory_space<vmem>>, vector<30x384xbf16>
      tpu.vector_store %arg9[%c120_50, %c384_51], %71 {strides = array<i32>} : memref<450x1152xbf16, #tpu.memory_space<vmem>>, vector<30x384xbf16>,
      %c90_52 = arith.constant 90 : index
      %c768_53 = arith.constant 768 : index
      %74 = vector.load %arg9[%c90_52, %c768_53] : memref<450x1152xbf16, #tpu.memory_space<vmem>>, vector<30x384xbf16>
      tpu.vector_store %arg9[%c90_52, %c768_53], %71 {strides = array<i32>} : memref<450x1152xbf16, #tpu.memory_space<vmem>>, vector<30x384xbf16>,
      %c6 = arith.constant 6 : index
      %c0_54 = arith.constant 0 : index
      %c0_55 = arith.constant 0 : index
      %75 = vector.load %arg8[%c6, %c0_54, %c0_55] : memref<17x32x128xbf16, #tpu.memory_space<vmem>>, vector<1x32x128xbf16>
      %76 = vector.shape_cast %75 : vector<1x32x128xbf16> to vector<32x128xbf16>
      %77 = vector.extract_strided_slice %76 {offsets = [0, 0], sizes = [30, 128], strides = [1, 1]} : vector<32x128xbf16> to vector<30x128xbf16>
      %78 = vector.extract_strided_slice %76 {offsets = [1, 0], sizes = [30, 128], strides = [1, 1]} : vector<32x128xbf16> to vector<30x128xbf16>
      %79 = vector.extract_strided_slice %76 {offsets = [2, 0], sizes = [30, 128], strides = [1, 1]} : vector<32x128xbf16> to vector<30x128xbf16>
      %80 = tpu.concatenate %77, %78, %79 in 1 : vector<30x128xbf16>, vector<30x128xbf16>, vector<30x128xbf16> -> vector<30x384xbf16>
      %c180 = arith.constant 180 : index
      %c0_56 = arith.constant 0 : index
      %81 = vector.load %arg9[%c180, %c0_56] : memref<450x1152xbf16, #tpu.memory_space<vmem>>, vector<30x384xbf16>
      tpu.vector_store %arg9[%c180, %c0_56], %80 {strides = array<i32>} : memref<450x1152xbf16, #tpu.memory_space<vmem>>, vector<30x384xbf16>,
      %c150_57 = arith.constant 150 : index
      %c384_58 = arith.constant 384 : index
      %82 = vector.load %arg9[%c150_57, %c384_58] : memref<450x1152xbf16, #tpu.memory_space<vmem>>, vector<30x384xbf16>
      tpu.vector_store %arg9[%c150_57, %c384_58], %80 {strides = array<i32>} : memref<450x1152xbf16, #tpu.memory_space<vmem>>, vector<30x384xbf16>,
      %c120_59 = arith.constant 120 : index
      %c768_60 = arith.constant 768 : index
      %83 = vector.load %arg9[%c120_59, %c768_60] : memref<450x1152xbf16, #tpu.memory_space<vmem>>, vector<30x384xbf16>
      tpu.vector_store %arg9[%c120_59, %c768_60], %80 {strides = array<i32>} : memref<450x1152xbf16, #tpu.memory_space<vmem>>, vector<30x384xbf16>,
      %c7 = arith.constant 7 : index
      %c0_61 = arith.constant 0 : index
      %c0_62 = arith.constant 0 : index
      %84 = vector.load %arg8[%c7, %c0_61, %c0_62] : memref<17x32x128xbf16, #tpu.memory_space<vmem>>, vector<1x32x128xbf16>
      %85 = vector.shape_cast %84 : vector<1x32x128xbf16> to vector<32x128xbf16>
      %86 = vector.extract_strided_slice %85 {offsets = [0, 0], sizes = [30, 128], strides = [1, 1]} : vector<32x128xbf16> to vector<30x128xbf16>
      %87 = vector.extract_strided_slice %85 {offsets = [1, 0], sizes = [30, 128], strides = [1, 1]} : vector<32x128xbf16> to vector<30x128xbf16>
      %88 = vector.extract_strided_slice %85 {offsets = [2, 0], sizes = [30, 128], strides = [1, 1]} : vector<32x128xbf16> to vector<30x128xbf16>
      %89 = tpu.concatenate %86, %87, %88 in 1 : vector<30x128xbf16>, vector<30x128xbf16>, vector<30x128xbf16> -> vector<30x384xbf16>
      %c210 = arith.constant 210 : index
      %c0_63 = arith.constant 0 : index
      %90 = vector.load %arg9[%c210, %c0_63] : memref<450x1152xbf16, #tpu.memory_space<vmem>>, vector<30x384xbf16>
      tpu.vector_store %arg9[%c210, %c0_63], %89 {strides = array<i32>} : memref<450x1152xbf16, #tpu.memory_space<vmem>>, vector<30x384xbf16>,
      %c180_64 = arith.constant 180 : index
      %c384_65 = arith.constant 384 : index
      %91 = vector.load %arg9[%c180_64, %c384_65] : memref<450x1152xbf16, #tpu.memory_space<vmem>>, vector<30x384xbf16>
      tpu.vector_store %arg9[%c180_64, %c384_65], %89 {strides = array<i32>} : memref<450x1152xbf16, #tpu.memory_space<vmem>>, vector<30x384xbf16>,
      %c150_66 = arith.constant 150 : index
      %c768_67 = arith.constant 768 : index
      %92 = vector.load %arg9[%c150_66, %c768_67] : memref<450x1152xbf16, #tpu.memory_space<vmem>>, vector<30x384xbf16>
      tpu.vector_store %arg9[%c150_66, %c768_67], %89 {strides = array<i32>} : memref<450x1152xbf16, #tpu.memory_space<vmem>>, vector<30x384xbf16>,
      %c8 = arith.constant 8 : index
      %c0_68 = arith.constant 0 : index
      %c0_69 = arith.constant 0 : index
      %93 = vector.load %arg8[%c8, %c0_68, %c0_69] : memref<17x32x128xbf16, #tpu.memory_space<vmem>>, vector<1x32x128xbf16>
      %94 = vector.shape_cast %93 : vector<1x32x128xbf16> to vector<32x128xbf16>
      %95 = vector.extract_strided_slice %94 {offsets = [0, 0], sizes = [30, 128], strides = [1, 1]} : vector<32x128xbf16> to vector<30x128xbf16>
      %96 = vector.extract_strided_slice %94 {offsets = [1, 0], sizes = [30, 128], strides = [1, 1]} : vector<32x128xbf16> to vector<30x128xbf16>
      %97 = vector.extract_strided_slice %94 {offsets = [2, 0], sizes = [30, 128], strides = [1, 1]} : vector<32x128xbf16> to vector<30x128xbf16>
      %98 = tpu.concatenate %95, %96, %97 in 1 : vector<30x128xbf16>, vector<30x128xbf16>, vector<30x128xbf16> -> vector<30x384xbf16>
      %c240 = arith.constant 240 : index
      %c0_70 = arith.constant 0 : index
      %99 = vector.load %arg9[%c240, %c0_70] : memref<450x1152xbf16, #tpu.memory_space<vmem>>, vector<30x384xbf16>
      tpu.vector_store %arg9[%c240, %c0_70], %98 {strides = array<i32>} : memref<450x1152xbf16, #tpu.memory_space<vmem>>, vector<30x384xbf16>,
      %c210_71 = arith.constant 210 : index
      %c384_72 = arith.constant 384 : index
      %100 = vector.load %arg9[%c210_71, %c384_72] : memref<450x1152xbf16, #tpu.memory_space<vmem>>, vector<30x384xbf16>
      tpu.vector_store %arg9[%c210_71, %c384_72], %98 {strides = array<i32>} : memref<450x1152xbf16, #tpu.memory_space<vmem>>, vector<30x384xbf16>,
      %c180_73 = arith.constant 180 : index
      %c768_74 = arith.constant 768 : index
      %101 = vector.load %arg9[%c180_73, %c768_74] : memref<450x1152xbf16, #tpu.memory_space<vmem>>, vector<30x384xbf16>
      tpu.vector_store %arg9[%c180_73, %c768_74], %98 {strides = array<i32>} : memref<450x1152xbf16, #tpu.memory_space<vmem>>, vector<30x384xbf16>,
      %c9 = arith.constant 9 : index
      %c0_75 = arith.constant 0 : index
      %c0_76 = arith.constant 0 : index
      %102 = vector.load %arg8[%c9, %c0_75, %c0_76] : memref<17x32x128xbf16, #tpu.memory_space<vmem>>, vector<1x32x128xbf16>
      %103 = vector.shape_cast %102 : vector<1x32x128xbf16> to vector<32x128xbf16>
      %104 = vector.extract_strided_slice %103 {offsets = [0, 0], sizes = [30, 128], strides = [1, 1]} : vector<32x128xbf16> to vector<30x128xbf16>
      %105 = vector.extract_strided_slice %103 {offsets = [1, 0], sizes = [30, 128], strides = [1, 1]} : vector<32x128xbf16> to vector<30x128xbf16>
      %106 = vector.extract_strided_slice %103 {offsets = [2, 0], sizes = [30, 128], strides = [1, 1]} : vector<32x128xbf16> to vector<30x128xbf16>
      %107 = tpu.concatenate %104, %105, %106 in 1 : vector<30x128xbf16>, vector<30x128xbf16>, vector<30x128xbf16> -> vector<30x384xbf16>
      %c270 = arith.constant 270 : index
      %c0_77 = arith.constant 0 : index
      %108 = vector.load %arg9[%c270, %c0_77] : memref<450x1152xbf16, #tpu.memory_space<vmem>>, vector<30x384xbf16>
      tpu.vector_store %arg9[%c270, %c0_77], %107 {strides = array<i32>} : memref<450x1152xbf16, #tpu.memory_space<vmem>>, vector<30x384xbf16>,
      %c240_78 = arith.constant 240 : index
      %c384_79 = arith.constant 384 : index
      %109 = vector.load %arg9[%c240_78, %c384_79] : memref<450x1152xbf16, #tpu.memory_space<vmem>>, vector<30x384xbf16>
      tpu.vector_store %arg9[%c240_78, %c384_79], %107 {strides = array<i32>} : memref<450x1152xbf16, #tpu.memory_space<vmem>>, vector<30x384xbf16>,
      %c210_80 = arith.constant 210 : index
      %c768_81 = arith.constant 768 : index
      %110 = vector.load %arg9[%c210_80, %c768_81] : memref<450x1152xbf16, #tpu.memory_space<vmem>>, vector<30x384xbf16>
      tpu.vector_store %arg9[%c210_80, %c768_81], %107 {strides = array<i32>} : memref<450x1152xbf16, #tpu.memory_space<vmem>>, vector<30x384xbf16>,
      %c10 = arith.constant 10 : index
      %c0_82 = arith.constant 0 : index
      %c0_83 = arith.constant 0 : index
      %111 = vector.load %arg8[%c10, %c0_82, %c0_83] : memref<17x32x128xbf16, #tpu.memory_space<vmem>>, vector<1x32x128xbf16>
      %112 = vector.shape_cast %111 : vector<1x32x128xbf16> to vector<32x128xbf16>
      %113 = vector.extract_strided_slice %112 {offsets = [0, 0], sizes = [30, 128], strides = [1, 1]} : vector<32x128xbf16> to vector<30x128xbf16>
      %114 = vector.extract_strided_slice %112 {offsets = [1, 0], sizes = [30, 128], strides = [1, 1]} : vector<32x128xbf16> to vector<30x128xbf16>
      %115 = vector.extract_strided_slice %112 {offsets = [2, 0], sizes = [30, 128], strides = [1, 1]} : vector<32x128xbf16> to vector<30x128xbf16>
      %116 = tpu.concatenate %113, %114, %115 in 1 : vector<30x128xbf16>, vector<30x128xbf16>, vector<30x128xbf16> -> vector<30x384xbf16>
      %c300 = arith.constant 300 : index
      %c0_84 = arith.constant 0 : index
      %117 = vector.load %arg9[%c300, %c0_84] : memref<450x1152xbf16, #tpu.memory_space<vmem>>, vector<30x384xbf16>
      tpu.vector_store %arg9[%c300, %c0_84], %116 {strides = array<i32>} : memref<450x1152xbf16, #tpu.memory_space<vmem>>, vector<30x384xbf16>,
      %c270_85 = arith.constant 270 : index
      %c384_86 = arith.constant 384 : index
      %118 = vector.load %arg9[%c270_85, %c384_86] : memref<450x1152xbf16, #tpu.memory_space<vmem>>, vector<30x384xbf16>
      tpu.vector_store %arg9[%c270_85, %c384_86], %116 {strides = array<i32>} : memref<450x1152xbf16, #tpu.memory_space<vmem>>, vector<30x384xbf16>,
      %c240_87 = arith.constant 240 : index
      %c768_88 = arith.constant 768 : index
      %119 = vector.load %arg9[%c240_87, %c768_88] : memref<450x1152xbf16, #tpu.memory_space<vmem>>, vector<30x384xbf16>
      tpu.vector_store %arg9[%c240_87, %c768_88], %116 {strides = array<i32>} : memref<450x1152xbf16, #tpu.memory_space<vmem>>, vector<30x384xbf16>,
      %c11 = arith.constant 11 : index
      %c0_89 = arith.constant 0 : index
      %c0_90 = arith.constant 0 : index
      %120 = vector.load %arg8[%c11, %c0_89, %c0_90] : memref<17x32x128xbf16, #tpu.memory_space<vmem>>, vector<1x32x128xbf16>
      %121 = vector.shape_cast %120 : vector<1x32x128xbf16> to vector<32x128xbf16>
      %122 = vector.extract_strided_slice %121 {offsets = [0, 0], sizes = [30, 128], strides = [1, 1]} : vector<32x128xbf16> to vector<30x128xbf16>
      %123 = vector.extract_strided_slice %121 {offsets = [1, 0], sizes = [30, 128], strides = [1, 1]} : vector<32x128xbf16> to vector<30x128xbf16>
      %124 = vector.extract_strided_slice %121 {offsets = [2, 0], sizes = [30, 128], strides = [1, 1]} : vector<32x128xbf16> to vector<30x128xbf16>
      %125 = tpu.concatenate %122, %123, %124 in 1 : vector<30x128xbf16>, vector<30x128xbf16>, vector<30x128xbf16> -> vector<30x384xbf16>
      %c330 = arith.constant 330 : index
      %c0_91 = arith.constant 0 : index
      %126 = vector.load %arg9[%c330, %c0_91] : memref<450x1152xbf16, #tpu.memory_space<vmem>>, vector<30x384xbf16>
      tpu.vector_store %arg9[%c330, %c0_91], %125 {strides = array<i32>} : memref<450x1152xbf16, #tpu.memory_space<vmem>>, vector<30x384xbf16>,
      %c300_92 = arith.constant 300 : index
      %c384_93 = arith.constant 384 : index
      %127 = vector.load %arg9[%c300_92, %c384_93] : memref<450x1152xbf16, #tpu.memory_space<vmem>>, vector<30x384xbf16>
      tpu.vector_store %arg9[%c300_92, %c384_93], %125 {strides = array<i32>} : memref<450x1152xbf16, #tpu.memory_space<vmem>>, vector<30x384xbf16>,
      %c270_94 = arith.constant 270 : index
      %c768_95 = arith.constant 768 : index
      %128 = vector.load %arg9[%c270_94, %c768_95] : memref<450x1152xbf16, #tpu.memory_space<vmem>>, vector<30x384xbf16>
      tpu.vector_store %arg9[%c270_94, %c768_95], %125 {strides = array<i32>} : memref<450x1152xbf16, #tpu.memory_space<vmem>>, vector<30x384xbf16>,
      %c12 = arith.constant 12 : index
      %c0_96 = arith.constant 0 : index
      %c0_97 = arith.constant 0 : index
      %129 = vector.load %arg8[%c12, %c0_96, %c0_97] : memref<17x32x128xbf16, #tpu.memory_space<vmem>>, vector<1x32x128xbf16>
      %130 = vector.shape_cast %129 : vector<1x32x128xbf16> to vector<32x128xbf16>
      %131 = vector.extract_strided_slice %130 {offsets = [0, 0], sizes = [30, 128], strides = [1, 1]} : vector<32x128xbf16> to vector<30x128xbf16>
      %132 = vector.extract_strided_slice %130 {offsets = [1, 0], sizes = [30, 128], strides = [1, 1]} : vector<32x128xbf16> to vector<30x128xbf16>
      %133 = vector.extract_strided_slice %130 {offsets = [2, 0], sizes = [30, 128], strides = [1, 1]} : vector<32x128xbf16> to vector<30x128xbf16>
      %134 = tpu.concatenate %131, %132, %133 in 1 : vector<30x128xbf16>, vector<30x128xbf16>, vector<30x128xbf16> -> vector<30x384xbf16>
      %c360 = arith.constant 360 : index
      %c0_98 = arith.constant 0 : index
      %135 = vector.load %arg9[%c360, %c0_98] : memref<450x1152xbf16, #tpu.memory_space<vmem>>, vector<30x384xbf16>
      tpu.vector_store %arg9[%c360, %c0_98], %134 {strides = array<i32>} : memref<450x1152xbf16, #tpu.memory_space<vmem>>, vector<30x384xbf16>,
      %c330_99 = arith.constant 330 : index
      %c384_100 = arith.constant 384 : index
      %136 = vector.load %arg9[%c330_99, %c384_100] : memref<450x1152xbf16, #tpu.memory_space<vmem>>, vector<30x384xbf16>
      tpu.vector_store %arg9[%c330_99, %c384_100], %134 {strides = array<i32>} : memref<450x1152xbf16, #tpu.memory_space<vmem>>, vector<30x384xbf16>,
      %c300_101 = arith.constant 300 : index
      %c768_102 = arith.constant 768 : index
      %137 = vector.load %arg9[%c300_101, %c768_102] : memref<450x1152xbf16, #tpu.memory_space<vmem>>, vector<30x384xbf16>
      tpu.vector_store %arg9[%c300_101, %c768_102], %134 {strides = array<i32>} : memref<450x1152xbf16, #tpu.memory_space<vmem>>, vector<30x384xbf16>,
      %c13 = arith.constant 13 : index
      %c0_103 = arith.constant 0 : index
      %c0_104 = arith.constant 0 : index
      %138 = vector.load %arg8[%c13, %c0_103, %c0_104] : memref<17x32x128xbf16, #tpu.memory_space<vmem>>, vector<1x32x128xbf16>
      %139 = vector.shape_cast %138 : vector<1x32x128xbf16> to vector<32x128xbf16>
      %140 = vector.extract_strided_slice %139 {offsets = [0, 0], sizes = [30, 128], strides = [1, 1]} : vector<32x128xbf16> to vector<30x128xbf16>
      %141 = vector.extract_strided_slice %139 {offsets = [1, 0], sizes = [30, 128], strides = [1, 1]} : vector<32x128xbf16> to vector<30x128xbf16>
      %142 = vector.extract_strided_slice %139 {offsets = [2, 0], sizes = [30, 128], strides = [1, 1]} : vector<32x128xbf16> to vector<30x128xbf16>
      %143 = tpu.concatenate %140, %141, %142 in 1 : vector<30x128xbf16>, vector<30x128xbf16>, vector<30x128xbf16> -> vector<30x384xbf16>
      %c390 = arith.constant 390 : index
      %c0_105 = arith.constant 0 : index
      %144 = vector.load %arg9[%c390, %c0_105] : memref<450x1152xbf16, #tpu.memory_space<vmem>>, vector<30x384xbf16>
      tpu.vector_store %arg9[%c390, %c0_105], %143 {strides = array<i32>} : memref<450x1152xbf16, #tpu.memory_space<vmem>>, vector<30x384xbf16>,
      %c360_106 = arith.constant 360 : index
      %c384_107 = arith.constant 384 : index
      %145 = vector.load %arg9[%c360_106, %c384_107] : memref<450x1152xbf16, #tpu.memory_space<vmem>>, vector<30x384xbf16>
      tpu.vector_store %arg9[%c360_106, %c384_107], %143 {strides = array<i32>} : memref<450x1152xbf16, #tpu.memory_space<vmem>>, vector<30x384xbf16>,
      %c330_108 = arith.constant 330 : index
      %c768_109 = arith.constant 768 : index
      %146 = vector.load %arg9[%c330_108, %c768_109] : memref<450x1152xbf16, #tpu.memory_space<vmem>>, vector<30x384xbf16>
      tpu.vector_store %arg9[%c330_108, %c768_109], %143 {strides = array<i32>} : memref<450x1152xbf16, #tpu.memory_space<vmem>>, vector<30x384xbf16>,
      %c14 = arith.constant 14 : index
      %c0_110 = arith.constant 0 : index
      %c0_111 = arith.constant 0 : index
      %147 = vector.load %arg8[%c14, %c0_110, %c0_111] : memref<17x32x128xbf16, #tpu.memory_space<vmem>>, vector<1x32x128xbf16>
      %148 = vector.shape_cast %147 : vector<1x32x128xbf16> to vector<32x128xbf16>
      %149 = vector.extract_strided_slice %148 {offsets = [0, 0], sizes = [30, 128], strides = [1, 1]} : vector<32x128xbf16> to vector<30x128xbf16>
      %150 = vector.extract_strided_slice %148 {offsets = [1, 0], sizes = [30, 128], strides = [1, 1]} : vector<32x128xbf16> to vector<30x128xbf16>
      %151 = vector.extract_strided_slice %148 {offsets = [2, 0], sizes = [30, 128], strides = [1, 1]} : vector<32x128xbf16> to vector<30x128xbf16>
      %152 = tpu.concatenate %149, %150, %151 in 1 : vector<30x128xbf16>, vector<30x128xbf16>, vector<30x128xbf16> -> vector<30x384xbf16>
      %c420 = arith.constant 420 : index
      %c0_112 = arith.constant 0 : index
      %153 = vector.load %arg9[%c420, %c0_112] : memref<450x1152xbf16, #tpu.memory_space<vmem>>, vector<30x384xbf16>
      tpu.vector_store %arg9[%c420, %c0_112], %152 {strides = array<i32>} : memref<450x1152xbf16, #tpu.memory_space<vmem>>, vector<30x384xbf16>,
      %c390_113 = arith.constant 390 : index
      %c384_114 = arith.constant 384 : index
      %154 = vector.load %arg9[%c390_113, %c384_114] : memref<450x1152xbf16, #tpu.memory_space<vmem>>, vector<30x384xbf16>
      tpu.vector_store %arg9[%c390_113, %c384_114], %152 {strides = array<i32>} : memref<450x1152xbf16, #tpu.memory_space<vmem>>, vector<30x384xbf16>,
      %c360_115 = arith.constant 360 : index
      %c768_116 = arith.constant 768 : index
      %155 = vector.load %arg9[%c360_115, %c768_116] : memref<450x1152xbf16, #tpu.memory_space<vmem>>, vector<30x384xbf16>
      tpu.vector_store %arg9[%c360_115, %c768_116], %152 {strides = array<i32>} : memref<450x1152xbf16, #tpu.memory_space<vmem>>, vector<30x384xbf16>,
      %c15 = arith.constant 15 : index
      %c0_117 = arith.constant 0 : index
      %c0_118 = arith.constant 0 : index
      %156 = vector.load %arg8[%c15, %c0_117, %c0_118] : memref<17x32x128xbf16, #tpu.memory_space<vmem>>, vector<1x32x128xbf16>
      %157 = vector.shape_cast %156 : vector<1x32x128xbf16> to vector<32x128xbf16>
      %158 = vector.extract_strided_slice %157 {offsets = [0, 0], sizes = [30, 128], strides = [1, 1]} : vector<32x128xbf16> to vector<30x128xbf16>
      %159 = vector.extract_strided_slice %157 {offsets = [1, 0], sizes = [30, 128], strides = [1, 1]} : vector<32x128xbf16> to vector<30x128xbf16>
      %160 = vector.extract_strided_slice %157 {offsets = [2, 0], sizes = [30, 128], strides = [1, 1]} : vector<32x128xbf16> to vector<30x128xbf16>
      %161 = tpu.concatenate %158, %159, %160 in 1 : vector<30x128xbf16>, vector<30x128xbf16>, vector<30x128xbf16> -> vector<30x384xbf16>
      %c420_119 = arith.constant 420 : index
      %c384_120 = arith.constant 384 : index
      %162 = vector.load %arg9[%c420_119, %c384_120] : memref<450x1152xbf16, #tpu.memory_space<vmem>>, vector<30x384xbf16>
      tpu.vector_store %arg9[%c420_119, %c384_120], %161 {strides = array<i32>} : memref<450x1152xbf16, #tpu.memory_space<vmem>>, vector<30x384xbf16>,
      %c390_121 = arith.constant 390 : index
      %c768_122 = arith.constant 768 : index
      %163 = vector.load %arg9[%c390_121, %c768_122] : memref<450x1152xbf16, #tpu.memory_space<vmem>>, vector<30x384xbf16>
      tpu.vector_store %arg9[%c390_121, %c768_122], %161 {strides = array<i32>} : memref<450x1152xbf16, #tpu.memory_space<vmem>>, vector<30x384xbf16>,
      %c16 = arith.constant 16 : index
      %c0_123 = arith.constant 0 : index
      %c0_124 = arith.constant 0 : index
      %164 = vector.load %arg8[%c16, %c0_123, %c0_124] : memref<17x32x128xbf16, #tpu.memory_space<vmem>>, vector<1x32x128xbf16>
      %165 = vector.shape_cast %164 : vector<1x32x128xbf16> to vector<32x128xbf16>
      %166 = vector.extract_strided_slice %165 {offsets = [0, 0], sizes = [30, 128], strides = [1, 1]} : vector<32x128xbf16> to vector<30x128xbf16>
      %167 = vector.extract_strided_slice %165 {offsets = [1, 0], sizes = [30, 128], strides = [1, 1]} : vector<32x128xbf16> to vector<30x128xbf16>
      %168 = vector.extract_strided_slice %165 {offsets = [2, 0], sizes = [30, 128], strides = [1, 1]} : vector<32x128xbf16> to vector<30x128xbf16>
      %169 = tpu.concatenate %166, %167, %168 in 1 : vector<30x128xbf16>, vector<30x128xbf16>, vector<30x128xbf16> -> vector<30x384xbf16>
      %c420_125 = arith.constant 420 : index
      %c768_126 = arith.constant 768 : index
      %170 = vector.load %arg9[%c420_125, %c768_126] : memref<450x1152xbf16, #tpu.memory_space<vmem>>, vector<30x384xbf16>
      tpu.vector_store %arg9[%c420_125, %c768_126], %169 {strides = array<i32>} : memref<450x1152xbf16, #tpu.memory_space<vmem>>, vector<30x384xbf16>,
    } else {
    }
    %c0 = arith.constant 0 : index
    %c0_1 = arith.constant 0 : index
    %3 = vector.load %arg9[%c0, %c0_1] : memref<450x1152xbf16, #tpu.memory_space<vmem>>, vector<450x1152xbf16>
    %c0_2 = arith.constant 0 : index
    %c0_3 = arith.constant 0 : index
    %4 = vector.load %arg4[%c0_2, %c0_3] : memref<1152x128xbf16, #tpu.memory_space<vmem>>, vector<1152x128xbf16>
    %cst = arith.constant dense<0.000000e+00> : vector<450x128xf32>
    %5 = tpu.matmul %3, %4, %cst {dimension_numbers = #tpu.dot_dimension_numbers<[1], [0], [0], [1], [0, 0, 1, 1], [], []>} : vector<450x1152xbf16>, vector<1152x128xbf16>, vector<450x128xf32> -> vector<450x128xf32>
    %c0_4 = arith.constant 0 : index
    %c0_5 = arith.constant 0 : index
    %6 = vector.load %arg5[%c0_4, %c0_5] : memref<1x128xf32, #tpu.memory_space<vmem>>, vector<1x128xf32>
    %7 = vector.broadcast %6 : vector<1x128xf32> to vector<450x128xf32>
    %8 = arith.addf %5, %7 : vector<450x128xf32>
    %cst_6 = arith.constant 0.000000e+00 : f32
    %9 = vector.broadcast %cst_6 : f32 to vector<450x128xf32>
    %10 = arith.maximumf %8, %9 : vector<450x128xf32>
    %c0_7 = arith.constant 0 : index
    %c0_8 = arith.constant 0 : index
    %c0_9 = arith.constant 0 : index
    %11 = vector.load %arg6[%c0_7, %c0_8, %c0_9] : memref<1x1x128xf32, #tpu.memory_space<vmem>>, vector<1x1x128xf32>
    %12 = vector.shape_cast %11 : vector<1x1x128xf32> to vector<1x128xf32>
    %13 = vector.broadcast %12 : vector<1x128xf32> to vector<450x128xf32>
    %14 = arith.addf %10, %13 : vector<450x128xf32>
    %15 = arith.truncf %14 : vector<450x128xf32> to vector<450x128xbf16>
    %c0_10 = arith.constant 0 : index
    %c0_11 = arith.constant 0 : index
    %c0_12 = arith.constant 0 : index
    %c0_13 = arith.constant 0 : index
    %16 = vector.load %arg7[%c0_10, %c0_11, %c0_12, %c0_13] : memref<1x1x450x128xbf16, #tpu.memory_space<vmem>>, vector<1x1x450x128xbf16>
    %17 = vector.shape_cast %16 : vector<1x1x450x128xbf16> to vector<450x128xbf16>
    %18 = vector.shape_cast %15 : vector<450x128xbf16> to vector<1x1x450x128xbf16>
    tpu.vector_store %arg7[%c0_10, %c0_11, %c0_12, %c0_13], %18 {strides = array<i32>} : memref<1x1x450x128xbf16, #tpu.memory_space<vmem>>, vector<1x1x450x128xbf16>,
    return
  }
  func.func @transform_1(%arg0: i32, %arg1: i32, %arg2: i32) -> (i32, i32) {
    %c0_i32 = arith.constant 0 : i32
    %c0_i32_0 = arith.constant 0 : i32
    return %c0_i32, %arg2 : i32, i32
  }
  func.func @transform_2(%arg0: i32, %arg1: i32, %arg2: i32) -> (i32, i32) {
    %c0_i32 = arith.constant 0 : i32
    %c0_i32_0 = arith.constant 0 : i32
    return %c0_i32, %arg2 : i32, i32
  }
  func.func @transform_3(%arg0: i32, %arg1: i32, %arg2: i32) -> (i32, i32, i32) {
    %c0_i32 = arith.constant 0 : i32
    %c0_i32_0 = arith.constant 0 : i32
    return %arg0, %c0_i32, %arg2 : i32, i32, i32
  }
  func.func @transform_4(%arg0: i32, %arg1: i32, %arg2: i32) -> (i32, i32, i32, i32) {
    %c0_i32 = arith.constant 0 : i32
    %c0_i32_0 = arith.constant 0 : i32
    return %arg0, %arg1, %c0_i32, %arg2 : i32, i32, i32, i32
  }
}

</mosaic_0001>

<bundles_post_ra>
// kernel: tpu_custom_call.1
= control target key start
LH: loop header
LB: loop body
LE: loop exit
PB: predicated region body
PF: predicated region fallthrough
CT: control target
= control target key end

     0   :  { %9 = vsyncpa [#allocation6], 0  ;;  %s8297_s15 = smov 0   ;;  %s8299_s16 = smov 0   ;;  %s10890_s0 = inlined_call_operand.hbm [shape: bf16[2,32,32,128], index: 0, kind: input, shape index: {}]   ;;  %s10891_s1 = inlined_call_operand.hbm [shape: bf16[1152,128], index: 1, kind: input, shape index: {}]   ;;  %s10892_s2 = inlined_call_operand.vmem [shape: f32[1,128], index: 2, kind: input, shape index: {}]   ;;  %s10893_s3 = inlined_call_operand.vmem [shape: f32[2,1,128], index: 3, kind: input, shape index: {}]   ;;  %s10894_s4 = inlined_call_operand.vmem [shape: bf16[2,2,450,128], index: 4, kind: output, shape index: {}]  }
   0x1   :  { %s8301_s17 = smov 0   ;;  %s8303_s18 = smov 0  }
   0x2   :  { %s8305_s19 = smov 0  }
   0x3 LB: > { %s6696_s20 = sadd.s32 4294967295, %s8263_s19   ;;  %s30_s21 = sadd.s32 1, %s8255_s17  ;;  %s8263_s19 = sphi %s8305_s19, %s15_s19   ;;  %s8259_s18 = sphi %s8303_s18, %s11276_s18   ;;  %s8255_s17 = sphi %s8301_s17, %s11275_s17   ;;  %s8251_s16 = sphi %s8299_s16, %s11274_s16   ;;  %s8247_s15 = sphi %s8297_s15, %s11273_s15  }
   0x4   : > { %p32_p0 = scmp.ge.s32.totalorder %s30_s21, 2  ;;  %s34_s22 = sadd.s32 1, %s8259_s18 }
   0x5   : > { %p6698_p1 = scmp.ge.s32.totalorder %s8263_s19, 1  ;;  %p149_p2 = scmp.lt.s32.totalorder %s8263_s19, 5 }
   0x6   : > { %s11278_s21 = smov (%p32_p0, %s30_s21), 0  ;;  %s11280_s22 = smov (!%p32_p0, %s34_s22), %s8259_s18 }
   0x7   : > { %p8330_p3 = pnand %p6698_p1, %p149_p2  ;;  %p36_p4 = scmp.ge.s32.totalorder %s11280_s22, 2 }
   0x8   : > { %p8334_p5 = scmp.eq.s32.totalorder %s6696_s20, 0  ;;  %s8265_s25 = smov [#allocation5]  }
   0x9   : > { %p7738_p6 = pneg %p8330_p3  ;;  %s11282_s22 = smov (%p36_p4, %s11280_s22), 0 }
   0xa   : > { %s163_s26 = sshll.u32 %s8265_s25, 4  ;;  %s164_s26 = int_to_ptr.vmem [resolvable:$true] %s163_s26 }
   0xb   : > { %p8344_p7 = pnand %p8334_p5, %p7738_p6  ;;  %s8182_s28 = scalar_lea.vmem %s164_s26, 9216 }
   0xc   : > { %p8183_p9 = scmp.ne.s32.totalorder %s164_s26, %s8182_s28  ;;  %p8190_p12 = scmp.lt.s32.totalorder %s164_s26, %s164_s26 }
   0xd   : > { %p8173_p8 = pneg %p8344_p7  ;;  %p8191_p13 = scmp.lt.s32.totalorder %s8182_s28, %s8182_s28 }
   0xf   : > { %p8185_p10 = pnand %p8183_p9, %p8173_p8  ;;  %p8192_p0 = por %p8191_p13, %p8190_p12 }
  0x11   : > { %p8186_p11 = pneg %p8185_p10 }
  0x13   : > { %p8193_p1 = pnand %p8192_p0, %p8186_p11 }
  0x15   : > { %8196 = shalt.err (!%p8193_p1)
}
  0x16   : > { %s8266_s29 = smov 64   ;;  %s8267_s30 = smov 4  }
  0x17   : > { %7741 = dma.hbm_to_vmem [thread:$0]  (!%p8344_p7), %s10891_s1, 9216, %s164_s26, [#allocation6], %s8266_s29, %s8266_s29, %s8267_s30  }
  0x18   : > { %194 = sbr.rel (%p8330_p3) target bundleno = 913 (0x391), region = 32 }
  0x1d   : > { %8240 = dma.done.wait (%p8334_p5), [#allocation6], 9216  }
  0x1e   : > { %8242 = vsyncadd (%p8334_p5), [#allocation6], 4294958080  ;;  %p232_p2 = scmp.lt.s32.totalorder %s8251_s16, 1  ;;  %p240_p4 = scmp.lt.s32.totalorder %s8247_s15, 1 }
  0x1f   : > { %s6705_s7 = smul.u32 60, %s8247_s15  ;;  %s6706_s8 = sshll.u32 %s8251_s16, 7 }
  0x20   : > { %s11284_s16 = smov (!%p232_p2, %s8251_s16), 1  ;;  %s11286_s15 = smov (!%p240_p4, %s8247_s15), 1 }
  0x21   : > { %s8370_s11 = scalar_lea.vmem %s10893_s3, %s11284_s16  ;;  %s7733_s12 = smul.u32 114, %s11284_s16 }
  0x22   : > { %s7732_s13 = smul.u32 57, %s11286_s15  ;;  %s258_s14 = sadd.s32 %s6706_s8, %s6705_s7 }
  0x23   : > { %s6707_s20 = sshll.u32 %s258_s14, 6  ;;  %s8268_s28 = smov [#allocation2]  }
  0x24   : > { %s247_s23 = sadd.s32 %s7733_s12, %s7732_s13  ;;  %s260_s26 = scalar_lea.hbm %s10890_s0, %s6707_s20 }
  0x25   : > { %s6704_s27 = sshll.u32 %s247_s23, 2  ;;  %s268_s29 = sshll.u32 %s8268_s28, 4  ;;  %s269_s29 = int_to_ptr.vmem [resolvable:$true] %s268_s29 }
  0x26   : > { %s8378_s6 = scalar_lea.vmem %s10894_s4, %s6704_s27  ;;  %s8197_s9 = scalar_lea.hbm %s260_s26, 4352 }
  0x27   : > { %p8198_p3 = scmp.ne.s32.totalorder %s260_s26, %s8197_s9  ;;  %s8199_s7 = scalar_lea.hbm %s10890_s0, 16384 }
  0x28   : > { %p8200_p5 = scmp.lt.s32.totalorder %s260_s26, %s10890_s0  ;;  %p8201_p6 = scmp.lt.s32.totalorder %s8199_s7, %s8197_s9 }
  0x2a   : > { %p8202_p7 = por %p8201_p6, %p8200_p5 }
  0x2c   : > { %p8203_p8 = pnand %p8202_p7, %p8198_p3 }
  0x2e   : > { %8206 = shalt.err (!%p8203_p8)  }
  0x2f   : > { %s8207_s12 = scalar_lea.vmem %s269_s29, 4352  ;;  %p8212_p10 = scmp.lt.s32.totalorder %s269_s29, %s269_s29 }
  0x30   : > { %p8208_p9 = scmp.ne.s32.totalorder %s269_s29, %s8207_s12  ;;  %p8213_p11 = scmp.lt.s32.totalorder %s8207_s12, %s8207_s12 }
  0x32   : > { %p8214_p12 = por %p8213_p11, %p8212_p10 }
  0x34   : > { %p8215_p13 = pnand %p8214_p12, %p8208_p9 }
  0x36   : > { %8218 = shalt.err (!%p8215_p13)  }
  0x37   : > { %271 = dma.hbm_to_vmem [thread:$0]  %s260_s26, 4352, %s269_s29, [#allocation4] }
  0x38   : > { %8243 = dma.done.wait [#allocation4], 4352 }
  0x39   : > { %8244 = vsyncadd [#allocation4], 4294962944  ;;  %v10895_v0 = vmov 0   ;;  %v7791_v1 = vld [vmem:[#allocation5 + $0x38] sm:$0xff]   ;;  %v7792_v2 = vld [vmem:[#allocation5 + $0x30] sm:$0xff]   ;;  %vm6712_vm1 = vcmask 1043456 }
  0x3a   : > { %4832 = vmatprep.subr.bf16.mxu0 %v10895_v0  ;;  %7700 = vmatprep.subr.bf16.mxu1 %v10895_v0  ;;  %v7793_v3 = vld [vmem:[#allocation5 + $0x28] sm:$0xff]   ;;  %v7794_v4 = vld [vmem:[#allocation5 + $0x20] sm:$0xff]   ;;  %v7795_v5 = vld [vmem:[#allocation5 + $0x18] sm:$0xff]   ;;  %vm291_vm0 = vsmask.f32 7424  ;;  %vm392_vm2 = vcmask 1042432  }
  0x3b   : > { %4833 = vmatpush1.bf16.msra.mxu0 %v7791_v1  ;;  %7716 = vmatpush1.bf16.msra.mxu1 %v7791_v1  ;;  %v7796_v6 = vld [vmem:[#allocation5 + $0x10] sm:$0xff]   ;;  %v8396_v7 = vld [vmem:[#allocation2] sm:$0xf]  ;;  %v8400_v10 = vld [vmem:[#allocation2 + $0xc] sm:$0xf]  ;;  %vm393_vm3 = vcmask 1046532  }
  0x3c   : > { %4834 = vmatprep.subr.bf16.mxu0 %v10895_v0  ;;  %7701 = vmatprep.subr.bf16.mxu1 %v10895_v0  ;;  %v278_v8 = vld [vmem:[#allocation2 + $0x4] sm:$0xf]  ;;  %v8398_v9 = vld [vmem:[#allocation2 + $0x8] sm:$0xf]  ;;  %v8405_v12 = vld [vmem:[#allocation2 + $0x80] sm:$0xf] }
  0x3d   : > { %v8403_v11 = vcombine.low %v8396_v7, %v278_v8  ;;  %v1383_v13 = vld [vmem:[#allocation2 + $0x84] sm:$0xf]  ;;  %v8409_v14 = vcombine.low %v8398_v9, %v8400_v10  ;;  %v8411_v15 = vld [vmem:[#allocation2 + $0x88] sm:$0xf]  ;;  %v8413_v16 = vld [vmem:[#allocation2 + $0x8c] sm:$0xf] }
  0x3e   : > { %v8416_v17 = vcombine.low %v8405_v12, %v1383_v13  ;;  %v8424_v20 = vcombine.low %v8411_v15, %v8413_v16  ;;  %v7797_v21 = vld [vmem:[#allocation5 + $0x8] sm:$0xff]   ;;  %v8429_v25 = vld [vmem:[#allocation2 + $0x10] sm:$0xf]  ;;  %v8433_v29 = vld [vmem:[#allocation2 + $0x14] sm:$0xf]  ;;  %vm502_vm5 = vcmask 1041408  }
  0x3f   : > { %4835 = vmatpush1.bf16.msra.mxu0 %v7792_v2  ;;  %7717 = vmatpush1.bf16.msra.mxu1 %v7792_v2  ;;  %v293_v18 = vshrl.u32 %v8403_v11, 16  ;;  %v295_v19 = vshll.u32 %v8403_v11, 16  ;;  %v300_v22 = vshll.u32 %v8409_v14, 16  ;;  %v304_v28 = vshrl.u32 %v8409_v14, 16  ;;  %v8436_v33 = vld [vmem:[#allocation2 + $0x18] sm:$0xf]  ;;  %vm8527_vm4 = vmor %vm392_vm2, %vm393_vm3 }
  0x40   : > { %4836 = vmatprep.subr.bf16.mxu0 %v10895_v0  ;;  %7702 = vmatprep.subr.bf16.mxu1 %v10895_v0  ;;  %10983 = vst [vmem:[#allocation13_spill] sm:$0xff] %v8416_v17  ;;  %10984 = vst [vmem:[#allocation14_spill] sm:$0xff] %v8424_v20  ;;  %v1397_v23 = vshrl.u32 %v8416_v17, 16  ;;  %v1399_v24 = vshll.u32 %v8416_v17, 16  ;;  %v1404_v27 = vshll.u32 %v8424_v20, 16  ;;  %v1408_v30 = vshrl.u32 %v8424_v20, 16 }
  0x41   : > { %v297_v26 = vrot.slane %v295_v19, 1  ;;  %v302_v31 = vrot.slane %v300_v22, 1  ;;  %v8438_v34 = vld [vmem:[#allocation2 + $0x1c] sm:$0xf]  ;;  %v8442_v35 = vcombine.low %v8429_v25, %v8433_v29  ;;  %v8453_v42 = vld [vmem:[#allocation2 + $0x90] sm:$0xf] }
  0x42   : > { %v1401_v32 = vrot.slane %v1399_v24, 1  ;;  %v1406_v37 = vrot.slane %v1404_v27, 1  ;;  %v8448_v38 = vcombine.low %v8436_v33, %v8438_v34  ;;  %v8455_v43 = vld [vmem:[#allocation2 + $0x94] sm:$0xf]  ;;  %v8465_v53 = vld [vmem:[#allocation2 + $0x98] sm:$0xf] }
  0x43   : > { %4837 = vmatpush1.bf16.msra.mxu0 %v7793_v3  ;;  %7718 = vmatpush1.bf16.msra.mxu1 %v7793_v3  ;;  %v298_v36 = vor.u32 %v297_v26, %v293_v18  ;;  %v8450_v40 = vor.u32 %v304_v28, %v302_v31  ;;  %v361_v41 = vshll.u32 %v8442_v35, 16  ;;  %v359_v45 = vshrl.u32 %v8442_v35, 16  ;;  %v7798_v48 = vld [vmem:[#allocation5] sm:$0xff]   ;;  %v8477_v59 = vld [vmem:[#allocation2 + $0x9c] sm:$0xf]  ;;  %v7799_v1 = vld [vmem:[#allocation5 + $0x78] sm:$0xff]  }
  0x44   : > { %4838 = vmatprep.subr.bf16.mxu0 %v10895_v0  ;;  %7703 = vmatprep.subr.bf16.mxu1 %v10895_v0  ;;  %v1402_v39 = vor.u32 %v1401_v32, %v1397_v23  ;;  %v366_v46 = vshll.u32 %v8448_v38, 16  ;;  %v1410_v47 = vor.u32 %v1408_v30, %v1406_v37  ;;  %v8481_v60 = vcombine.low %v8453_v42, %v8455_v43  ;;  %v7800_v26 = vld [vmem:[#allocation5 + $0x70] sm:$0xff]  }
  0x45   : > { %v303_v44 = vsel %vm291_vm0, %v298_v36, %v302_v31  ;;  %v363_v52 = vrot.slane %v361_v41, 1  ;;  %v6715_v56 = vcombine.low %v8398_v9, %v8450_v40  ;;  %v6718_v62 = vsel %vm6712_vm1, %v8400_v10, %v8450_v40  ;;  %v8506_v10 = vld [vmem:[#allocation2 + $0x28] sm:$0xf]  ;;  %v7801_v41 = vld [vmem:[#allocation5 + $0x68] sm:$0xff]  }
  0x46   : > { %v6710_v49 = vcombine.low %v8396_v7, %v303_v44  ;;  %v8462_v50 = vsel %vm6712_vm1, %v278_v8, %v303_v44  ;;  %v1407_v51 = vsel %vm291_vm0, %v1402_v39, %v1406_v37  ;;  %v368_v57 = vrot.slane %v366_v46, 1  ;;  %10985 = vst [vmem:[#allocation15_spill] sm:$0xff] %v8481_v60  ;;  %341 = vst [vmem:[#allocation3 + $0x6c] sm:$0x77] %v6718_v62 }
  0x47   : > { %4839 = vmatpush1.bf16.msra.mxu0 %v7794_v4  ;;  %7719 = vmatpush1.bf16.msra.mxu1 %v7794_v4  ;;  %v6806_v54 = vcombine.low %v8405_v12, %v1407_v51  ;;  %v8471_v55 = vsel %vm6712_vm1, %v1383_v13, %v1407_v51  ;;  %v364_v63 = vor.u32 %v363_v52, %v359_v45  ;;  %v8494_v4 = vld [vmem:[#allocation2 + $0x20] sm:$0xf]  ;;  %v1542_v18 = vshll.u32 %v8481_v60, 16 }
  0x48   : > { %4840 = vmatprep.subr.bf16.mxu0 %v10895_v0  ;;  %7704 = vmatprep.subr.bf16.mxu1 %v10895_v0  ;;  %v6914_v58 = vcombine.high %v6710_v49, %v8462_v50  ;;  %1440 = vst [vmem:[#allocation3 + $0x45c] sm:$0xff] %v8471_v55  ;;  %v8488_v2 = vcombine.low %v8411_v15, %v1410_v47  ;;  %v370_v19 = vshrl.u32 %v8448_v38, 16  ;;  %vm503_vm6 = vcmask 1045508  }
  0x49   : > { %1438 = vst [vmem:[#allocation3 + $0x438] sm:$0xff] %v6806_v54  ;;  %v7049_v61 = vcombine.high %v6806_v54, %v8471_v55  ;;  %v8492_v3 = vsel %vm6712_vm1, %v8413_v16, %v1410_v47  ;;  %v8504_v8 = vcombine.low %v8465_v53, %v8477_v59  ;;  %v1540_v16 = vshrl.u32 %v8481_v60, 16  ;;  %vm8625_vm7 = vmor %vm502_vm5, %vm503_vm6 }
  0x4a   : > { %10986 = vst [vmem:[#allocation16_spill] sm:$0xff] %v8492_v3  ;;  %1444 = vst [vmem:[#allocation3 + $0x4a4] sm:$0x77] %v8492_v3  ;;  %4864 = vmatprep.mubr.bf16.mxu0 %v6914_v58  ;;  %v1544_v28 = vrot.slane %v1542_v18, 1  ;;  %v372_v30 = vor.u32 %v370_v19, %v368_v57  ;;  %v8560_v19 = vld [vmem:[#allocation2 + $0xa4] sm:$0xf] }
  0x4b   : > { %4841 = vmatpush1.bf16.msra.mxu0 %v7795_v5  ;;  %7720 = vmatpush1.bf16.msra.mxu1 %v7795_v5  ;;  %v8496_v5 = vld [vmem:[#allocation2 + $0x24] sm:$0xf]  ;;  %10987 = vst [vmem:[#allocation17_spill] sm:$0xff] %v8504_v8  ;;  %1442 = vst [vmem:[#allocation3 + $0x480] sm:$0xff] %v8488_v2  ;;  %v1547_v22 = vshll.u32 %v8504_v8, 16  ;;  %v1551_v24 = vshrl.u32 %v8504_v8, 16 }
  0x4c   : > { %4842 = vmatprep.subr.bf16.mxu0 %v10895_v0  ;;  %7705 = vmatprep.subr.bf16.mxu1 %v10895_v0  ;;  %v1545_v45 = vor.u32 %v1544_v28, %v1540_v16  ;;  %v6727_v46 = vcombine.low %v8436_v33, %v372_v30  ;;  %v6730_v49 = vsel %vm6712_vm1, %v8438_v34, %v372_v30  ;;  %v8572_v28 = vld [vmem:[#allocation2 + $0xac] sm:$0xf]  ;;  %vm654_vm8 = vcmask 1040384  }
  0x4d   : > { %4984 = vmatprep.mubr.bf16.mxu1 %v7049_v61  ;;  %v410_v61 = vrot.slane %v6730_v49, 5  ;;  %451 = vst [vmem:[#allocation3 + $0x78] sm:$0x77] %v6730_v49  ;;  %vm655_vm9 = vcmask 1044484   ;;  %v11006_v20 = vmov 0  ;;  %vm307_vm11 = vcmask 1046528  }
  0x4e   : > { %v404_v58 = vrot.slane %v6727_v46, 5  ;;  %449 = vst [vmem:[#allocation3 + $0x54] sm:$0xff] %v6727_v46  ;;  %v8594_v46 = vld [vmem:[#allocation2 + $0x3c] sm:$0xf]  ;;  %vm8744_vm10 = vmor %vm654_vm8, %vm655_vm9  ;;  %vm8271_vm12 = vmmov 0  }
  0x4f   : > { %4843 = vmatpush1.bf16.msra.mxu0 %v7796_v6  ;;  %7721 = vmatpush1.bf16.msra.mxu1 %v7796_v6  ;;  %v369_v6 = vsel %vm291_vm0, %v364_v63, %v368_v57  ;;  %v415_v18 = vrot.slane %v410_v61, 4  ;;  %v11007_v20 = vsel %vm8744_vm10, 4294967295, %v11006_v20 }
  0x50   : > { %4844 = vmatprep.subr.bf16.mxu0 %v10895_v0  ;;  %7706 = vmatprep.subr.bf16.mxu1 %v10895_v0  ;;  %v6722_v13 = vcombine.low %v8429_v25, %v369_v6  ;;  %v6725_v23 = vsel %vm6712_vm1, %v8433_v29, %v369_v6  ;;  %v8521_v25 = vcombine.low %v8494_v4, %v8496_v5  ;;  %v1549_v29 = vrot.slane %v1547_v22, 1 }
  0x51   : > { %v398_v31 = vrot.slane %v6725_v23, 5  ;;  %447 = vst [vmem:[#allocation3 + $0x30] sm:$0xff] %v6725_v23  ;;  %v409_v16 = vrot.slane %v404_v58, 4  ;;  %435 = vst [vmem:[#allocation3 + $0xfc] sm:$0x33] %v415_v18 }
  0x52   : > { %10988 = vst [vmem:[#allocation18_spill] sm:$0xff] %v8521_v25  ;;  %v395_v27 = vrot.slane %v6722_v13, 5  ;;  %445 = vst [vmem:[#allocation3 + $0xc] sm:$0xff] %v6722_v13  ;;  %v469_v37 = vshrl.u32 %v8521_v25, 16  ;;  %v471_v39 = vshll.u32 %v8521_v25, 16  ;;  %v1550_v54 = vsel %vm291_vm0, %v1545_v45, %v1549_v29 }
  0x53   : > { %4845 = vmatpush1.bf16.msra.mxu0 %v7797_v21  ;;  %7722 = vmatpush1.bf16.msra.mxu1 %v7797_v21  ;;  %v8513_v21 = vld [vmem:[#allocation2 + $0x2c] sm:$0xf]  ;;  %v403_v47 = vrot.slane %v398_v31, 4  ;;  %v6818_v33 = vcombine.low %v8453_v42, %v1550_v54  ;;  %v6821_v34 = vsel %vm6712_vm1, %v8455_v43, %v1550_v54  ;;  %v7802_v43 = vld [vmem:[#allocation5 + $0x60] sm:$0xff]   ;;  %v8564_v23 = vsel %vm8527_vm4, %v409_v16, %v410_v61 }
  0x54   : > { %4846 = vmatprep.subr.bf16.mxu0 %v10895_v0  ;;  %7707 = vmatprep.subr.bf16.mxu1 %v10895_v0  ;;  %v8533_v36 = vcombine.low %v8506_v10, %v8513_v21  ;;  %v397_v44 = vrot.slane %v395_v27, 4  ;;  %427 = vst [vmem:[#allocation3 + $0x6c] sm:$0x88] %v395_v27  ;;  %v473_v51 = vrot.slane %v471_v39, 1  ;;  %v1576_v13 = vrot.slane %v6821_v34, 5  ;;  %1625 = vst [vmem:[#allocation3 + $0x468] sm:$0xff] %v6821_v34 }
  0x55   : > { %v8558_v6 = vsel %vm8527_vm4, %v403_v47, %v404_v58  ;;  %v1573_v42 = vrot.slane %v6818_v33, 5  ;;  %1623 = vst [vmem:[#allocation3 + $0x444] sm:$0xff] %v6818_v33  ;;  %v8570_v27 = vld [vmem:[#allocation2 + $0xa8] sm:$0xf]  ;;  %v8584_v39 = vld [vmem:[#allocation2 + $0x34] sm:$0xf] }
  0x56   : > { %10991 = vst [vmem:[#allocation19_spill] sm:$0xff] %v8533_v36  ;;  %v476_v52 = vshll.u32 %v8533_v36, 16  ;;  %v8544_v57 = vsel %vm8527_vm4, %v397_v44, %v398_v31  ;;  %v8592_v45 = vld [vmem:[#allocation2 + $0x38] sm:$0xf]  ;;  %v8607_v54 = vcombine.low %v8570_v27, %v8572_v28  ;;  %v480_v33 = vshrl.u32 %v8533_v36, 16  ;;  %11008 = vst [vmem:[#allocation31_spill] sm:$0xff] %v11007_v20 }
  0x57   : > { %4847 = vmatpush1.bf16.msra.mxu0 %v7798_v48  ;;  %7723 = vmatpush1.bf16.msra.mxu1 %v7798_v48  ;;  %v1553_v48 = vor.u32 %v1551_v24, %v1549_v29  ;;  %v474_v24 = vor.u32 %v473_v51, %v469_v37  ;;  %v1575_v30 = vrot.slane %v1573_v42, 4  ;;  %1605 = vst [vmem:[#allocation3 + $0x4a4] sm:$0x88] %v1573_v42 }
  0x58   : > { %4848 = vmatprep.subr.bf16.mxu0 %v10895_v0  ;;  %7708 = vmatprep.subr.bf16.mxu1 %v10895_v0  ;;  %v8552_v63 = vrot.slane %v476_v52, 1  ;;  %v7803_v52 = vld [vmem:[#allocation5 + $0x58] sm:$0xff]   ;;  %10994 = vst [vmem:[#allocation22_spill] sm:$0xff] %v8607_v54  ;;  %v1694_v16 = vshrl.u32 %v8607_v54, 16 }
  0x59   : > { %v6823_v62 = vcombine.low %v8465_v53, %v1553_v48  ;;  %v1581_v53 = vrot.slane %v1576_v13, 4  ;;  %v8598_v47 = vsel %vm8527_vm4, %v1575_v30, %v1576_v13 }
  0x5a   : > { %v479_v44 = vsel %vm291_vm0, %v474_v24, %v8552_v63  ;;  %v7804_v24 = vld [vmem:[#allocation5 + $0x50] sm:$0xff]  }
  0x5b   : > { %4849 = vmatpush2.bf16.msra.mxu0 %v7799_v1  ;;  %7724 = vmatpush2.bf16.msra.mxu1 %v7799_v1  ;;  %v8554_v1 = vld [vmem:[#allocation2 + $0xa0] sm:$0xf]  ;;  %v1582_v22 = vrot.slane %v6823_v62, 5  ;;  %1627 = vst [vmem:[#allocation3 + $0x48c] sm:$0xff] %v6823_v62  ;;  %v6737_v34 = vsel %vm6712_vm1, %v8496_v5, %v479_v44  ;;  %v1690_v62 = vshll.u32 %v8607_v54, 16  ;;  %v8631_v5 = vcombine.low %v8592_v45, %v8594_v46 }
  0x5c   : > { %4850 = vmatprep.subr.bf16.mxu0 %v10895_v0  ;;  %7709 = vmatprep.subr.bf16.mxu1 %v10895_v0  ;;  %v8579_v37 = vcombine.low %v8554_v1, %v8560_v19  ;;  %v508_v13 = vrot.slane %v6737_v34, 6  ;;  %599 = vst [vmem:[#allocation3 + $0x3c] sm:$0xff] %v6737_v34  ;;  %v11004_v54 = vmov 0  }
  0x5d   : > { %v1587_v31 = vrot.slane %v1582_v22, 4  ;;  %10998 = vst [vmem:[#allocation24_spill] sm:$0xff] %v8631_v5  ;;  %v1692_v30 = vrot.slane %v1690_v62, 1 }
  0x5e   : > { %10993 = vst [vmem:[#allocation21_spill] sm:$0xff] %v8579_v37  ;;  %v1683_v58 = vshrl.u32 %v8579_v37, 16 }
  0x5f   : > { %4851 = vmatpush2.bf16.msra.mxu0 %v7800_v26  ;;  %7725 = vmatpush2.bf16.msra.mxu1 %v7800_v26  ;;  %v8568_v26 = vsel %vm6712_vm1, %v8477_v59, %v1553_v48  ;;  %v8582_v59 = vld [vmem:[#allocation2 + $0x30] sm:$0xf]  ;;  %v6734_v48 = vcombine.low %v8494_v4, %v479_v44  ;;  %v1685_v4 = vshll.u32 %v8579_v37, 16 }
  0x60   : > { %4852 = vmatprep.subr.bf16.mxu0 %v10895_v0  ;;  %7710 = vmatprep.subr.bf16.mxu1 %v10895_v0  ;;  %10992 = vst [vmem:[#allocation20_spill] sm:$0xff] %v8568_v26  ;;  %v1588_v29 = vrot.slane %v8568_v26, 5  ;;  %1629 = vst [vmem:[#allocation3 + $0x4b0] sm:$0x77] %v8568_v26  ;;  %v8620_v18 = vcombine.low %v8582_v59, %v8584_v39 }
  0x61   : > { %v505_v61 = vrot.slane %v6734_v48, 6  ;;  %597 = vst [vmem:[#allocation3 + $0x18] sm:$0xff] %v6734_v48  ;;  %v628_v48 = vshll.u32 %v8631_v5, 16 }
  0x62   : > { %v8603_v49 = vsel %vm8527_vm4, %v1587_v31, %v1588_v29  ;;  %v1593_v51 = vrot.slane %v1588_v29, 4  ;;  %10995 = vst [vmem:[#allocation23_spill] sm:$0xff] %v8620_v18  ;;  %v623_v31 = vshll.u32 %v8620_v18, 16  ;;  %v513_v29 = vrot.slane %v508_v13, 4 }
  0x63   : > { %4853 = vmatpush2.bf16.msra.mxu0 %v7801_v41  ;;  %7726 = vmatpush2.bf16.msra.mxu1 %v7801_v41  ;;  %v8588_v41 = vsel %vm8527_vm4, %v1581_v53, %v1582_v22  ;;  %v507_v42 = vrot.slane %v505_v61, 4  ;;  %537 = vst [vmem:[#allocation3 + $0xfc] sm:$0xcc] %v505_v61  ;;  %v1687_v22 = vrot.slane %v1685_v4, 1  ;;  %v621_v44 = vshrl.u32 %v8620_v18, 16 }
  0x64   : > { %4854 = vmatprep.subr.bf16.mxu0 %v10895_v0  ;;  %7711 = vmatprep.subr.bf16.mxu1 %v10895_v0  ;;  %1613 = vst [vmem:[#allocation3 + $0x534] sm:$0x33] %v1593_v51  ;;  %v625_v34 = vrot.slane %v623_v31, 1  ;;  %v8649_v62 = vrot.slane %v628_v48, 1  ;;  %v8664_v31 = vld [vmem:[#allocation2 + $0xb4] sm:$0xf] }
  0x65   : > { %v8641_v61 = vsel %vm8625_vm7, %v507_v42, %v508_v13 }
  0x67   : > { %4855 = vmatpush2.bf16.msra.mxu0 %v7802_v43  ;;  %7727 = vmatpush2.bf16.msra.mxu1 %v7802_v43  ;;  %v482_v43 = vor.u32 %v480_v33, %v8552_v63  ;;  %v1688_v63 = vor.u32 %v1687_v22, %v1683_v58 }
  0x68   : > { %4856 = vmatprep.subr.bf16.mxu0 %v10895_v0  ;;  %7712 = vmatprep.subr.bf16.mxu1 %v10895_v0 }
  0x69   : > { %v6739_v51 = vcombine.low %v8506_v10, %v482_v43  ;;  %v8645_v4 = vsel %vm6712_vm1, %v8513_v21, %v482_v43  ;;  %v1693_v33 = vsel %vm291_vm0, %v1688_v63, %v1692_v30  ;;  %v7805_v10 = vld [vmem:[#allocation5 + $0x48] sm:$0xff]   ;;  %v8666_v63 = vld [vmem:[#allocation2 + $0xb8] sm:$0xf] }
  0x6a   : > { %10999 = vst [vmem:[#allocation25_spill] sm:$0xff] %v8645_v4  ;;  %v520_v58 = vrot.slane %v8645_v4, 6  ;;  %603 = vst [vmem:[#allocation3 + $0x84] sm:$0x77] %v8645_v4  ;;  %v6830_v13 = vcombine.low %v8554_v1, %v1693_v33  ;;  %v6833_v21 = vsel %vm6712_vm1, %v8560_v19, %v1693_v33  ;;  %v8662_v1 = vld [vmem:[#allocation2 + $0xb0] sm:$0xf] }
  0x6b   : > { %4857 = vmatpush2.bf16.msra.mxu0 %v7803_v52  ;;  %7728 = vmatpush2.bf16.msra.mxu1 %v7803_v52  ;;  %v1696_v52 = vor.u32 %v1694_v16, %v1692_v30  ;;  %v514_v16 = vrot.slane %v6739_v51, 6  ;;  %601 = vst [vmem:[#allocation3 + $0x60] sm:$0xff] %v6739_v51  ;;  %v1719_v22 = vrot.slane %v6833_v21, 6  ;;  %1810 = vst [vmem:[#allocation3 + $0x474] sm:$0xff] %v6833_v21  ;;  %v8668_v19 = vld [vmem:[#allocation2 + $0xbc] sm:$0xf] }
  0x6c   : > { %4858 = vmatprep.subr.bf16.mxu0 %v10895_v0  ;;  %7713 = vmatprep.subr.bf16.mxu1 %v10895_v0  ;;  %v525_v43 = vrot.slane %v520_v58, 4  ;;  %v626_v30 = vor.u32 %v625_v34, %v621_v44  ;;  %v1716_v48 = vrot.slane %v6830_v13, 6  ;;  %1808 = vst [vmem:[#allocation3 + $0x450] sm:$0xff] %v6830_v13  ;;  %v8164_v13 = vcombine.low %v8405_v12, %v8471_v55  ;;  %v8681_v21 = vld [vmem:[#allocation3 + $0x4a4] sm:$0xff] }
  0x6d   : > { %v6835_v42 = vcombine.low %v8570_v27, %v1696_v52  ;;  %v7806_v27 = vld [vmem:[#allocation5 + $0x40] sm:$0xff]   ;;  %v8672_v51 = vsel %vm8625_vm7, %v513_v29, %v514_v16  ;;  %v519_v33 = vrot.slane %v514_v16, 4  ;;  %v1724_v34 = vrot.slane %v1719_v22, 4 }
  0x6e   : > { %545 = vst [vmem:[#allocation3 + $0x18c] sm:$0x11] %v525_v43  ;;  %v1718_v29 = vrot.slane %v1716_v48, 4  ;;  %1748 = vst [vmem:[#allocation3 + $0x534] sm:$0xcc] %v1716_v48  ;;  %v8709_v43 = vcombine.low %v8666_v63, %v8668_v19 }
  0x6f   : > { %4859 = vmatpush2.bf16.msra.mxu0 %v7804_v24  ;;  %7729 = vmatpush2.bf16.msra.mxu1 %v7804_v24  ;;  %v8660_v24 = vsel %vm6712_vm1, %v8572_v28, %v1696_v52  ;;  %v1725_v44 = vrot.slane %v6835_v42, 6  ;;  %1812 = vst [vmem:[#allocation3 + $0x498] sm:$0xff] %v6835_v42  ;;  %v8163_v28 = vcombine.low %v8396_v7, %v8462_v50  ;;  %v8677_v52 = vld [vmem:[#allocation3 + $0x6c] sm:$0xff] }
  0x70   : > { %4860 = vmatprep.subr.bf16.mxu0 %v10895_v0  ;;  %7714 = vmatprep.subr.bf16.mxu1 %v10895_v0  ;;  %11000 = vst [vmem:[#allocation26_spill] sm:$0xff] %v8660_v24  ;;  %1814 = vst [vmem:[#allocation3 + $0x4bc] sm:$0x77] %v8660_v24  ;;  %v8685_v16 = vsel %vm8625_vm7, %v519_v33, %v520_v58  ;;  %v631_v7 = vsel %vm291_vm0, %v626_v30, %v8649_v62  ;;  %v632_v30 = vshrl.u32 %v8631_v5, 16  ;;  %v8712_v48 = vld [vmem:[#allocation2 + $0x40] sm:$0xf] }
  0x71   : > { %v8693_v50 = vsel %vm8625_vm7, %v1724_v34, %v1725_v44  ;;  %v8696_v12 = vcombine.low %v8582_v59, %v631_v7  ;;  %v1730_v55 = vrot.slane %v1725_v44, 4  ;;  %v8701_v58 = vsel %vm8625_vm7, %v1718_v29, %v1719_v22  ;;  %11003 = vst [vmem:[#allocation29_spill] sm:$0xff] %v8709_v43  ;;  %v7811_v59 = vld [vmem:[#allocation5 + $0x138] sm:$0xff]   ;;  %v8725_v29 = vld [vmem:[#allocation2 + $0x44] sm:$0xf] }
  0x72   : > { %v8705_v42 = vcombine.low %v8662_v1, %v8664_v31  ;;  %v6923_v44 = vcombine.high %v6715_v56, %v8677_v52  ;;  %v7058_v22 = vcombine.high %v8488_v2, %v8681_v21  ;;  %v1839_v56 = vshll.u32 %v8709_v43, 16  ;;  %v8732_v2 = vld [vmem:[#allocation2 + $0x4c] sm:$0xf] }
  0x73   : > { %4861 = vmatpush2.bf16.msra.mxu0 %v7805_v10  ;;  %7730 = vmatpush2.bf16.msra.mxu1 %v7805_v10  ;;  %11001 = vst [vmem:[#allocation27_spill] sm:$0xff] %v8696_v12  ;;  %v1731_v10 = vrot.slane %v8660_v24, 6  ;;  %v657_v33 = vrot.slane %v8696_v12, 7  ;;  %v634_v8 = vor.u32 %v632_v30, %v8649_v62  ;;  %v8751_v62 = vcombine.low %v8712_v48, %v8725_v29  ;;  %v8959_v12 = vld [vmem:[#allocation2 + $0x68] sm:$0xf] }
  0x74   : > { %4862 = vmatprep.subr.bf16.mxu0 %v10895_v0  ;;  %7715 = vmatprep.subr.bf16.mxu1 %v10895_v0  ;;  %11002 = vst [vmem:[#allocation28_spill] sm:$0xff] %v8705_v42  ;;  %v8727_v0 = vld [vmem:[#allocation2 + $0x48] sm:$0xf]  ;;  %v1832_v24 = vshrl.u32 %v8705_v42, 16  ;;  %v1834_v40 = vshll.u32 %v8705_v42, 16  ;;  %v1841_v60 = vrot.slane %v1839_v56, 1  ;;  %v8165_v30 = vcombine.low %v8398_v9, %v8677_v52 }
  0x75   : > { %v8723_v34 = vsel %vm8625_vm7, %v1730_v55, %v1731_v10  ;;  %v1736_v26 = vrot.slane %v1731_v10, 4  ;;  %v7816_v55 = vld [vmem:[#allocation5 + $0xb8] sm:$0xff]   ;;  %v659_v37 = vrot.slane %v657_v33, 4  ;;  %685 = vst [vmem:[#allocation3 + $0x18c] sm:$0xee] %v657_v33  ;;  %v1843_v10 = vshrl.u32 %v8709_v43, 16 }
  0x76   : > { %v1836_v42 = vrot.slane %v1834_v40, 1  ;;  %11009 = vst [vmem:[#allocation32_spill] sm:$0xff] %v8751_v62  ;;  %v7817_v33 = vld [vmem:[#allocation5 + $0x130] sm:$0xff]   ;;  %v795_v52 = vshll.u32 %v8751_v62, 16  ;;  %v7820_v56 = vld [vmem:[#allocation5 + $0xa8] sm:$0xff]  }
  0x77   : > { %4863 = vmatpush2.bf16.msra.mxu0 %v7806_v27  ;;  %7731 = vmatpush2.bf16.msra.mxu1 %v7806_v27  ;;  %v8739_v27 = vsel %vm6712_vm1, %v8584_v39, %v631_v7  ;;  %1756 = vst [vmem:[#allocation3 + $0x5c4] sm:$0x11] %v1736_v26  ;;  %v8754_v39 = vcombine.low %v8592_v45, %v634_v8 }
  0x78   : > { %5360 = vmatprep.subr.bf16.mxu0 %v11004_v54  ;;  %5096 = vmatprep.subr.bf16.mxu1 %v11004_v54  ;;  %11005 = vst [vmem:[#allocation30_spill] sm:$0xff] %v8739_v27  ;;  %v660_v3 = vrot.slane %v8739_v27, 7  ;;  %v8758_v26 = vsel %vm6712_vm1, %v8594_v46, %v634_v8  ;;  %v8762_v7 = vcombine.low %v8727_v0, %v8732_v2  ;;  %v7818_v46 = vld [vmem:[#allocation5 + $0xb0] sm:$0xff]   ;;  %v797_v43 = vrot.slane %v795_v52, 1  ;;  %v7836_v27 = vld [vmem:[#allocation5 + $0x88] sm:$0xff]  }
  0x79   : > { %11010 = vst [vmem:[#allocation33_spill] sm:$0xff] %v8754_v39  ;;  %11011 = vst [vmem:[#allocation34_spill] sm:$0xff] %v8758_v26  ;;  %v8166_v8 = vcombine.low %v8411_v15, %v8681_v21  ;;  %v7819_v21 = vld [vmem:[#allocation5 + $0x128] sm:$0xff]  }
  0x7a   : > { %4865 = vmatmul.mubr.bf16.vlgmr.msra.gmra.mxu0 %v8163_v28  ;;  %4985 = vmatmul.mubr.bf16.vlgmr.msra.gmra.mxu1 %v8164_v13  ;;  %11012 = vst [vmem:[#allocation35_spill] sm:$0xff] %v8762_v7  ;;  %v6932_v28 = vcombine.high %v8544_v57, %v8558_v6  ;;  %v1837_v13 = vor.u32 %v1836_v42, %v1832_v24  ;;  %v665_v45 = vrot.slane %v660_v3, 4  ;;  %v672_v24 = vrot.slane %v8758_v26, 7 }
  0x7b   : > { %5361 = vmatpush1.bf16.msra.mxu0 %v7811_v59  ;;  %4872 = vmatprep.mubr.bf16.mxu0 %v6923_v44  ;;  %v8772_v40 = vsel %vm8744_vm10, %v659_v37, %v660_v3  ;;  %v666_v59 = vrot.slane %v8754_v39, 7  ;;  %v1845_v44 = vor.u32 %v1843_v10, %v1841_v60  ;;  %v800_v15 = vshll.u32 %v8762_v7, 16  ;;  %v8909_v39 = vld [vmem:[#allocation2 + $0xd8] sm:$0xf] }
  0x7c   : > { %4992 = vmatprep.mubr.bf16.mxu1 %v7058_v22  ;;  %5097 = vmatpush1.bf16.msra.mxu1 %v7816_v55  ;;  %v1842_v9 = vsel %vm291_vm0, %v1837_v13, %v1841_v60  ;;  %v7067_v22 = vcombine.high %v8598_v47, %v8588_v41  ;;  %v793_v10 = vshrl.u32 %v8751_v62, 16  ;;  %v8799_v13 = vld [vmem:[#allocation2 + $0xc0] sm:$0xf] }
  0x7d   : > { %5362 = vmatprep.subr.bf16.mxu0 %v11004_v54  ;;  %5098 = vmatprep.subr.bf16.mxu1 %v11004_v54  ;;  %v8782_v42 = vcombine.low %v8662_v1, %v1842_v9  ;;  %v8786_v3 = vsel %vm8744_vm10, %v665_v45, %v666_v59  ;;  %v8790_v37 = vsel %vm6712_vm1, %v8664_v31, %v1842_v9  ;;  %v671_v1 = vrot.slane %v666_v59, 4  ;;  %v8804_v45 = vld [vmem:[#allocation2 + $0xc4] sm:$0xf] }
  0x7e   : > { %11014 = vst [vmem:[#allocation37_spill] sm:$0xff] %v8790_v37  ;;  %v8793_v60 = vcombine.low %v8666_v63, %v1845_v44  ;;  %v1868_v55 = vrot.slane %v8790_v37, 7  ;;  %v802_v37 = vrot.slane %v800_v15, 1  ;;  %v8819_v26 = vsel %vm6712_vm1, %v8668_v19, %v1845_v44 }
  0x7f   : > { %11013 = vst [vmem:[#allocation36_spill] sm:$0xff] %v8782_v42  ;;  %5363 = vmatpush1.bf16.msra.mxu0 %v7817_v33  ;;  %v1865_v31 = vrot.slane %v8782_v42, 7  ;;  %v8806_v33 = vld [vmem:[#allocation2 + $0xc8] sm:$0xf]  ;;  %v8811_v59 = vsel %vm8744_vm10, %v671_v1, %v672_v24  ;;  %v8815_v42 = vld [vmem:[#allocation3 + $0xfc] sm:$0xff]  ;;  %11016 = vst [vmem:[#allocation39_spill] sm:$0xff] %v8819_v26  ;;  %v798_v15 = vor.u32 %v797_v43, %v793_v10 }
  0x80   : > { %11015 = vst [vmem:[#allocation38_spill] sm:$0xff] %v8793_v60  ;;  %5099 = vmatpush1.bf16.msra.mxu1 %v7818_v46  ;;  %5364 = vmatprep.subr.bf16.mxu0 %v11004_v54  ;;  %v1874_v63 = vrot.slane %v8793_v60, 7  ;;  %v1873_v9 = vrot.slane %v1868_v55, 4  ;;  %v8813_v46 = vld [vmem:[#allocation2 + $0xcc] sm:$0xf]  ;;  %v7825_v60 = vld [vmem:[#allocation5 + $0x120] sm:$0xff]   ;;  %v6931_v19 = vcombine.low %v8544_v57, %v8558_v6  ;;  %v7066_v10 = vcombine.low %v8598_v47, %v8588_v41 }
  0x81   : > { %5100 = vmatprep.subr.bf16.mxu1 %v11004_v54  ;;  %v1867_v17 = vrot.slane %v1865_v31, 4  ;;  %1893 = vst [vmem:[#allocation3 + $0x5c4] sm:$0xee] %v1865_v31  ;;  %v7826_v24 = vld [vmem:[#allocation5 + $0xa0] sm:$0xff]   ;;  %v8830_v1 = vld [vmem:[#allocation2 + $0x50] sm:$0xf]  ;;  %v8844_v44 = vcombine.low %v8806_v33, %v8813_v46  ;;  %v6941_v57 = vcombine.high %v8564_v23, %v8815_v42  ;;  %v803_v6 = vsel %vm291_vm0, %v798_v15, %v802_v37 }
  0x82   : > { %4873 = vmatmul.mubr.bf16.gmra.mxu0 %v8165_v30  ;;  %4993 = vmatmul.mubr.bf16.gmra.mxu1 %v8166_v8  ;;  %v1879_v5 = vrot.slane %v1874_v63, 4  ;;  %v8823_v52 = vsel %vm8744_vm10, %v1873_v9, %v1874_v63  ;;  %v1880_v30 = vrot.slane %v8819_v26, 7  ;;  %v8828_v8 = vcombine.low %v8799_v13, %v8804_v45  ;;  %v8832_v31 = vld [vmem:[#allocation2 + $0x54] sm:$0xf]  ;;  %v8911_v26 = vld [vmem:[#allocation2 + $0xdc] sm:$0xf] }
  0x83   : > { %4880 = vmatprep.mubr.bf16.mxu0 %v6932_v28  ;;  %5000 = vmatprep.mubr.bf16.mxu1 %v7067_v22  ;;  %v8836_v28 = vld [vmem:[#allocation3 + $0x534] sm:$0xff]  ;;  %v8840_v43 = vsel %vm8744_vm10, %v1867_v17, %v1868_v55  ;;  %11018 = vst [vmem:[#allocation41_spill] sm:$0xff] %v8844_v44  ;;  %v804_v22 = vshrl.u32 %v8762_v7, 16  ;;  %v2008_v47 = vshll.u32 %v8844_v44, 16  ;;  %v8868_v9 = vsel %vm6712_vm1, %v8725_v29, %v803_v6 }
  0x84   : > { %11017 = vst [vmem:[#allocation40_spill] sm:$0xff] %v8828_v8  ;;  %5365 = vmatpush1.bf16.msra.mxu0 %v7819_v21  ;;  %5101 = vmatpush1.bf16.msra.mxu1 %v7820_v56  ;;  %v2001_v17 = vshrl.u32 %v8828_v8, 16  ;;  %v8856_v21 = vcombine.low %v8712_v48, %v803_v6  ;;  %v8860_v56 = vsel %vm8744_vm10, %v1879_v5, %v1880_v30  ;;  %v2003_v41 = vshll.u32 %v8828_v8, 16  ;;  %v7827_v5 = vld [vmem:[#allocation5 + $0x118] sm:$0xff]   ;;  %v8892_v6 = vld [vmem:[#allocation2 + $0x5c] sm:$0xf] }
  0x85   : > { %5366 = vmatprep.subr.bf16.mxu0 %v11004_v54  ;;  %5102 = vmatprep.subr.bf16.mxu1 %v11004_v54  ;;  %v7076_v55 = vcombine.high %v8603_v49, %v8836_v28  ;;  %v806_v63 = vor.u32 %v804_v22, %v802_v37  ;;  %v2012_v15 = vshrl.u32 %v8844_v44, 16  ;;  %v7828_v30 = vld [vmem:[#allocation5 + $0x98] sm:$0xff]   ;;  %v2010_v7 = vrot.slane %v2008_v47, 1  ;;  %836 = vst [vmem:[#allocation3 + $0x240] sm:$0xff] %v8868_v9  ;;  %v8875_v37 = vld [vmem:[#allocation2 + $0x58] sm:$0xf] }
  0x86   : > { %834 = vst [vmem:[#allocation3 + $0x21c] sm:$0xff] %v8856_v21  ;;  %v2005_v8 = vrot.slane %v2003_v41, 1  ;;  %v8879_v29 = vcombine.low %v8830_v1, %v8832_v31  ;;  %v8894_v41 = vld [vmem:[#allocation2 + $0xd0] sm:$0xf]  ;;  %v8896_v47 = vld [vmem:[#allocation2 + $0xd4] sm:$0xf]  ;;  %v8969_v25 = vcombine.low %v8909_v39, %v8911_v26 }
  0x87   : > { %v8890_v22 = vsel %vm6712_vm1, %v8732_v2, %v806_v63  ;;  %v7833_v44 = vld [vmem:[#allocation5 + $0x110] sm:$0xff]   ;;  %v7075_v2 = vcombine.low %v8603_v49, %v8836_v28  ;;  %v8918_v49 = vcombine.low %v8875_v37, %v8892_v6 }
  0x88   : > { %5367 = vmatpush1.bf16.msra.mxu0 %v7825_v60  ;;  %5103 = vmatpush1.bf16.msra.mxu1 %v7826_v24  ;;  %11019 = vst [vmem:[#allocation42_spill] sm:$0xff] %v8879_v29  ;;  %v8886_v24 = vcombine.low %v8727_v0, %v806_v63  ;;  %11020 = vst [vmem:[#allocation43_spill] sm:$0xff] %v8890_v22  ;;  %v2006_v18 = vor.u32 %v2005_v8, %v2001_v17  ;;  %v936_v60 = vshrl.u32 %v8879_v29, 16  ;;  %v8913_v8 = vld [vmem:[#allocation3 + $0x18c] sm:$0xff]  ;;  %v8942_v63 = vld [vmem:[#allocation3 + $0x5c4] sm:$0xff] }
  0x89   : > { %5368 = vmatprep.subr.bf16.mxu0 %v11004_v54  ;;  %5104 = vmatprep.subr.bf16.mxu1 %v11004_v54  ;;  %840 = vst [vmem:[#allocation3 + $0x288] sm:$0x77] %v8890_v22  ;;  %11021 = vst [vmem:[#allocation44_spill] sm:$0xff] %v8918_v49  ;;  %v938_v28 = vshll.u32 %v8879_v29, 16  ;;  %v8923_v17 = vcombine.low %v8894_v41, %v8896_v47  ;;  %v2151_v29 = vshll.u32 %v8969_v25, 16  ;;  %v2155_v22 = vshrl.u32 %v8969_v25, 16 }
  0x8a   : > { %4881 = vmatmul.mubr.bf16.gmra.mxu0 %v6931_v19  ;;  %5001 = vmatmul.mubr.bf16.gmra.mxu1 %v7066_v10  ;;  %v7834_v19 = vld [vmem:[#allocation5 + $0x90] sm:$0xff]   ;;  %838 = vst [vmem:[#allocation3 + $0x264] sm:$0xff] %v8886_v24  ;;  %v2014_v10 = vor.u32 %v2012_v15, %v2010_v7  ;;  %11024 = vst [vmem:[#allocation47_spill] sm:$0xff] %v8969_v25 }
  0x8b   : > { %4888 = vmatprep.mubr.bf16.mxu0 %v6941_v57  ;;  %5008 = vmatprep.mubr.bf16.mxu1 %v7076_v55  ;;  %v2011_v57 = vsel %vm291_vm0, %v2006_v18, %v2010_v7  ;;  %11022 = vst [vmem:[#allocation45_spill] sm:$0xff] %v8923_v17  ;;  %v7835_v55 = vld [vmem:[#allocation5 + $0x108] sm:$0xff]  }
  0x8c   : > { %5369 = vmatpush1.bf16.msra.mxu0 %v7827_v5  ;;  %5105 = vmatpush1.bf16.msra.mxu1 %v7828_v30  ;;  %v8929_v15 = vcombine.low %v8799_v13, %v2011_v57  ;;  %v8933_v18 = vsel %vm6712_vm1, %v8804_v45, %v2011_v57  ;;  %v8936_v7 = vcombine.low %v8806_v33, %v2014_v10  ;;  %v8938_v5 = vld [vmem:[#allocation2 + $0x60] sm:$0xf]  ;;  %v8940_v30 = vld [vmem:[#allocation2 + $0x64] sm:$0xf]  ;;  %v940_v45 = vrot.slane %v938_v28, 1 }
  0x8d   : > { %5370 = vmatprep.subr.bf16.mxu0 %v11004_v54  ;;  %5106 = vmatprep.subr.bf16.mxu1 %v11004_v54  ;;  %2044 = vst [vmem:[#allocation3 + $0x678] sm:$0xff] %v8933_v18  ;;  %v943_v57 = vshll.u32 %v8918_v49, 16  ;;  %v8961_v28 = vld [vmem:[#allocation2 + $0x6c] sm:$0xf]  ;;  %v8965_v36 = vsel %vm6712_vm1, %v8813_v46, %v2014_v10  ;;  %v947_v46 = vshrl.u32 %v8918_v49, 16  ;;  %v7837_v10 = vld [vmem:[#allocation5 + $0x100] sm:$0xff]  }
  0x8e   : > { %2042 = vst [vmem:[#allocation3 + $0x654] sm:$0xff] %v8929_v15  ;;  %2046 = vst [vmem:[#allocation3 + $0x69c] sm:$0xff] %v8936_v7  ;;  %v941_v4 = vor.u32 %v940_v45, %v936_v60  ;;  %v2146_v60 = vshll.u32 %v8923_v17, 16  ;;  %v7842_v45 = vld [vmem:[#allocation5 + $0x80] sm:$0xff]   ;;  %v2153_v49 = vrot.slane %v2151_v29, 1  ;;  %v9000_v20 = vcombine.low %v8959_v12, %v8961_v28 }
  0x8f   : > { %v945_v62 = vrot.slane %v943_v57, 1  ;;  %11023 = vst [vmem:[#allocation46_spill] sm:$0xff] %v8965_v36  ;;  %2048 = vst [vmem:[#allocation3 + $0x6c0] sm:$0x77] %v8965_v36  ;;  %v8987_v36 = vcombine.low %v8938_v5, %v8940_v30 }
  0x90   : > { %5371 = vmatpush1.bf16.msra.mxu0 %v7833_v44  ;;  %5107 = vmatpush1.bf16.msra.mxu1 %v7834_v19  ;;  %v2144_v44 = vshrl.u32 %v8923_v17, 16  ;;  %v11025_v19 = vcombine.low %v8564_v23, %v8815_v42  ;;  %v11026_v17 = vcombine.high %v8641_v61, %v8672_v51  ;;  %v11027_v23 = vcombine.high %v8701_v58, %v8693_v50 }
  0x91   : > { %5372 = vmatprep.subr.bf16.mxu0 %v11004_v54  ;;  %5108 = vmatprep.subr.bf16.mxu1 %v11004_v54  ;;  %v946_v57 = vsel %vm291_vm0, %v941_v4, %v945_v62  ;;  %11028 = vst [vmem:[#allocation48_spill] sm:$0xff] %v9000_v20 }
  0x92   : > { %4889 = vmatmul.mubr.bf16.gmra.mxu0 %v11025_v19  ;;  %5009 = vmatmul.mubr.bf16.gmra.mxu1 %v7075_v2  ;;  %v6770_v42 = vcombine.low %v8830_v1, %v946_v57  ;;  %v6773_v4 = vsel %vm6712_vm1, %v8832_v31, %v946_v57  ;;  %v2148_v2 = vrot.slane %v2146_v60, 1  ;;  %v949_v19 = vor.u32 %v947_v46, %v945_v62  ;;  %v7843_v57 = vld [vmem:[#allocation5 + $0x178] sm:$0xff]  }
  0x93   : > { %4896 = vmatprep.mubr.bf16.mxu0 %v11026_v17  ;;  %5016 = vmatprep.mubr.bf16.mxu1 %v11027_v23  ;;  %v972_v25 = vrot.slane %v6773_v4, 5  ;;  %1021 = vst [vmem:[#allocation3 + $0x24c] sm:$0xff] %v6773_v4  ;;  %v2157_v60 = vor.u32 %v2155_v22, %v2153_v49  ;;  %v1081_v46 = vshll.u32 %v8987_v36, 16  ;;  %v9019_v17 = vld [vmem:[#allocation2 + $0xe0] sm:$0xf] }
  0x94   : > { %5373 = vmatpush1.bf16.msra.mxu0 %v7835_v55  ;;  %5109 = vmatpush1.bf16.msra.mxu1 %v7836_v27  ;;  %v969_v1 = vrot.slane %v6770_v42, 5  ;;  %1019 = vst [vmem:[#allocation3 + $0x228] sm:$0xff] %v6770_v42  ;;  %v2149_v31 = vor.u32 %v2148_v2, %v2144_v44  ;;  %v6775_v62 = vcombine.low %v8875_v37, %v949_v19  ;;  %v1086_v37 = vshll.u32 %v9000_v20, 16 }
  0x95   : > { %5374 = vmatprep.subr.bf16.mxu0 %v11004_v54  ;;  %5110 = vmatprep.subr.bf16.mxu1 %v11004_v54  ;;  %v9008_v27 = vsel %vm6712_vm1, %v8892_v6, %v949_v19  ;;  %v977_v29 = vrot.slane %v972_v25, 4  ;;  %v7844_v6 = vld [vmem:[#allocation5 + $0xf8] sm:$0xff]   ;;  %v6871_v22 = vcombine.low %v8909_v39, %v2157_v60 }
  0x96   : > { %11029 = vst [vmem:[#allocation49_spill] sm:$0xff] %v9008_v27  ;;  %v984_v55 = vrot.slane %v9008_v27, 5  ;;  %1025 = vst [vmem:[#allocation3 + $0x294] sm:$0x77] %v9008_v27  ;;  %v971_v23 = vrot.slane %v969_v1, 4  ;;  %v2154_v42 = vsel %vm291_vm0, %v2149_v31, %v2153_v49  ;;  %v978_v44 = vrot.slane %v6775_v62, 5 }
  0x97   : > { %1001 = vst [vmem:[#allocation3 + $0x288] sm:$0x88] %v969_v1  ;;  %1023 = vst [vmem:[#allocation3 + $0x270] sm:$0xff] %v6775_v62  ;;  %v6866_v4 = vcombine.low %v8894_v41, %v2154_v42  ;;  %v6869_v2 = vsel %vm6712_vm1, %v8896_v47, %v2154_v42  ;;  %v9021_v1 = vld [vmem:[#allocation2 + $0xe4] sm:$0xf]  ;;  %v11030_v31 = vcombine.low %v8641_v61, %v8672_v51  ;;  %v2186_v42 = vrot.slane %v6871_v22, 5 }
  0x98   : > { %5375 = vmatpush1.bf16.msra.mxu0 %v7837_v10  ;;  %5111 = vmatpush1.bf16.msra.mxu1 %v7842_v45  ;;  %v989_v19 = vrot.slane %v984_v55, 4  ;;  %v9027_v49 = vsel %vm8527_vm4, %v971_v23, %v972_v25  ;;  %v2180_v10 = vrot.slane %v6869_v2, 5  ;;  %2229 = vst [vmem:[#allocation3 + $0x684] sm:$0xff] %v6869_v2  ;;  %v9031_v41 = vsel %vm8527_vm4, %v977_v29, %v978_v44  ;;  %v9033_v47 = vld [vmem:[#allocation2 + $0xe8] sm:$0xf] }
  0x99   : > { %5376 = vmatprep.subr.bf16.mxu0 %v11004_v54  ;;  %5112 = vmatprep.subr.bf16.mxu1 %v11004_v54  ;;  %v983_v39 = vrot.slane %v978_v44, 4  ;;  %v9035_v45 = vld [vmem:[#allocation2 + $0xec] sm:$0xf]  ;;  %v11031_v62 = vcombine.low %v8701_v58, %v8693_v50  ;;  %v7845_v25 = vld [vmem:[#allocation5 + $0x170] sm:$0xff]   ;;  %v2177_v23 = vrot.slane %v6866_v4, 5  ;;  %2227 = vst [vmem:[#allocation3 + $0x660] sm:$0xff] %v6866_v4  ;;  %v9045_v29 = vsel %vm6712_vm1, %v8911_v26, %v2157_v60 }
  0x9a   : > { %4897 = vmatmul.mubr.bf16.gmra.mxu0 %v11030_v31  ;;  %11032 = vst [vmem:[#allocation50_spill] sm:$0xff] %v9045_v29  ;;  %2231 = vst [vmem:[#allocation3 + $0x6a8] sm:$0xff] %v6871_v22  ;;  %v1083_v44 = vrot.slane %v1081_v46, 1  ;;  %v11033_v2 = vcombine.high %v8685_v16, %v8913_v8  ;;  %v11034_v61 = vcombine.high %v8723_v34, %v8942_v63  ;;  %v7846_v51 = vld [vmem:[#allocation5 + $0xf0] sm:$0xff]   ;;  %v2185_v58 = vrot.slane %v2180_v10, 4 }
  0x9b   : > { %5017 = vmatmul.mubr.bf16.gmra.mxu1 %v11031_v62  ;;  %1009 = vst [vmem:[#allocation3 + $0x318] sm:$0x33] %v989_v19  ;;  %v9055_v50 = vsel %vm8527_vm4, %v983_v39, %v984_v55  ;;  %v2192_v26 = vrot.slane %v9045_v29, 5  ;;  %2233 = vst [vmem:[#allocation3 + $0x6cc] sm:$0x77] %v9045_v29  ;;  %v1088_v60 = vrot.slane %v1086_v37, 1  ;;  %v7093_v46 = vcombine.low %v8723_v34, %v8942_v63 }
  0x9c   : > { %4904 = vmatprep.mubr.bf16.mxu0 %v11033_v2  ;;  %5024 = vmatprep.mubr.bf16.mxu1 %v11034_v61  ;;  %v2179_v22 = vrot.slane %v2177_v23, 4  ;;  %2209 = vst [vmem:[#allocation3 + $0x6c0] sm:$0x88] %v2177_v23  ;;  %v2191_v19 = vrot.slane %v2186_v42, 4  ;;  %v9067_v55 = vsel %vm8527_vm4, %v2185_v58, %v2186_v42  ;;  %v11035_v37 = vshrl.u32 %v8987_v36, 16  ;;  %v7851_v62 = vld [vmem:[#allocation5 + $0x168] sm:$0xff]  }
  0x9d   : > { %5377 = vmatpush2.bf16.msra.mxu0 %v7843_v57  ;;  %5113 = vmatpush2.bf16.msra.mxu1 %v7844_v6  ;;  %v2197_v34 = vrot.slane %v2192_v26, 4  ;;  %v9073_v63 = vcombine.low %v9019_v17, %v9021_v1  ;;  %v9075_v57 = vld [vmem:[#allocation2 + $0x70] sm:$0xf]  ;;  %v9077_v6 = vld [vmem:[#allocation2 + $0x74] sm:$0xf]  ;;  %v9089_v42 = vcombine.low %v9033_v47, %v9035_v45 }
  0x9e   : > { %5378 = vmatprep.subr.bf16.mxu0 %v11004_v54  ;;  %5114 = vmatprep.subr.bf16.mxu1 %v11004_v54  ;;  %v1084_v39 = vor.u32 %v1083_v44, %v11035_v37  ;;  %v9081_v31 = vsel %vm8527_vm4, %v2179_v22, %v2180_v10  ;;  %v9085_v23 = vsel %vm8527_vm4, %v2191_v19, %v2192_v26  ;;  %v1090_v44 = vshrl.u32 %v9000_v20, 16  ;;  %v9092_v2 = vld [vmem:[#allocation2 + $0x78] sm:$0xf]  ;;  %v9094_v61 = vld [vmem:[#allocation2 + $0x7c] sm:$0xf] }
  0x9f   : > { %11036 = vst [vmem:[#allocation51_spill] sm:$0xff] %v9073_v63  ;;  %11037 = vst [vmem:[#allocation52_spill] sm:$0xff] %v9089_v42  ;;  %v7852_v19 = vld [vmem:[#allocation5 + $0xe8] sm:$0xff]   ;;  %v2287_v4 = vshrl.u32 %v9073_v63, 16  ;;  %v2289_v29 = vshll.u32 %v9073_v63, 16  ;;  %v2294_v58 = vshll.u32 %v9089_v42, 16  ;;  %v9125_v63 = vcombine.low %v9075_v57, %v9077_v6 }
  0xa0   : > { %2217 = vst [vmem:[#allocation3 + $0x750] sm:$0x33] %v2197_v34  ;;  %v1089_v37 = vsel %vm291_vm0, %v1084_v39, %v1088_v60  ;;  %v2298_v39 = vshrl.u32 %v9089_v42, 16  ;;  %v11038_v34 = vcombine.low %v8685_v16, %v8913_v8  ;;  %v7853_v22 = vld [vmem:[#allocation5 + $0xe0] sm:$0xff]   ;;  %v11041_v16 = vcombine.high %v8840_v43, %v8823_v52 }
  0xa1   : > { %5379 = vmatpush2.bf16.msra.mxu0 %v7845_v25  ;;  %5115 = vmatpush2.bf16.msra.mxu1 %v7846_v51  ;;  %v9111_v26 = vcombine.low %v8938_v5, %v1089_v37  ;;  %v9115_v25 = vsel %vm6712_vm1, %v8940_v30, %v1089_v37  ;;  %v1092_v51 = vor.u32 %v1090_v44, %v1088_v60  ;;  %v2291_v27 = vrot.slane %v2289_v29, 1  ;;  %v7854_v8 = vld [vmem:[#allocation5 + $0x160] sm:$0xff]  }
  0xa2   : > { %5380 = vmatprep.subr.bf16.mxu0 %v11004_v54  ;;  %5116 = vmatprep.subr.bf16.mxu1 %v11004_v54  ;;  %v1115_v10 = vrot.slane %v9115_v25, 6  ;;  %1206 = vst [vmem:[#allocation3 + $0x258] sm:$0xff] %v9115_v25  ;;  %v2296_v5 = vrot.slane %v2294_v58, 1  ;;  %11039 = vst [vmem:[#allocation53_spill] sm:$0xff] %v9125_v63  ;;  %v11040_v30 = vcombine.high %v8772_v40, %v8786_v3 }
  0xa3   : > { %4905 = vmatmul.mubr.bf16.gmra.mxu0 %v11038_v34  ;;  %5025 = vmatmul.mubr.bf16.gmra.mxu1 %v7093_v46  ;;  %v1112_v60 = vrot.slane %v9111_v26, 6  ;;  %1204 = vst [vmem:[#allocation3 + $0x234] sm:$0xff] %v9111_v26  ;;  %v9136_v29 = vcombine.low %v8959_v12, %v1092_v51  ;;  %v9140_v46 = vsel %vm6712_vm1, %v8961_v28, %v1092_v51  ;;  %v9150_v12 = vrot.slane %v8409_v14, 1 }
  0xa4   : > { %4912 = vmatprep.mubr.bf16.mxu0 %v11040_v30  ;;  %5032 = vmatprep.mubr.bf16.mxu1 %v11041_v16  ;;  %v9144_v44 = vcombine.low %v9092_v2, %v9094_v61  ;;  %v7112_v58 = vcombine.high %v8860_v56, %v8929_v15  ;;  %v2292_v37 = vor.u32 %v2291_v27, %v2287_v4  ;;  %v1120_v34 = vrot.slane %v1115_v10, 4  ;;  %v7859_v4 = vld [vmem:[#allocation5 + $0xd8] sm:$0xff]  }
  0xa5   : > { %5381 = vmatpush2.bf16.msra.mxu0 %v7851_v62  ;;  %5117 = vmatpush2.bf16.msra.mxu1 %v7852_v19  ;;  %1210 = vst [vmem:[#allocation3 + $0x2a0] sm:$0x77] %v9140_v46  ;;  %v1114_v28 = vrot.slane %v1112_v60, 4  ;;  %1144 = vst [vmem:[#allocation3 + $0x318] sm:$0xcc] %v1112_v60  ;;  %v1121_v51 = vrot.slane %v9136_v29, 6  ;;  %v2300_v15 = vor.u32 %v2298_v39, %v2296_v5 }
  0xa6   : > { %5118 = vmatprep.subr.bf16.mxu1 %v11004_v54  ;;  %5382 = vmatprep.subr.bf16.mxu0 %v11004_v54  ;;  %v1127_v30 = vrot.slane %v9140_v46, 6  ;;  %1208 = vst [vmem:[#allocation3 + $0x27c] sm:$0xff] %v9136_v29  ;;  %v2297_v27 = vsel %vm291_vm0, %v2292_v37, %v2296_v5  ;;  %v7860_v62 = vld [vmem:[#allocation5 + $0x158] sm:$0xff]   ;;  %v1228_v14 = vshrl.u32 %v9125_v63, 16  ;;  %v1230_v19 = vshll.u32 %v9125_v63, 16 }
  0xa7   : > { %v1235_v16 = vshll.u32 %v9144_v44, 16  ;;  %v9163_v60 = vsel %vm8625_vm7, %v1114_v28, %v1115_v10  ;;  %v6878_v42 = vcombine.low %v9019_v17, %v2297_v27  ;;  %v6881_v20 = vsel %vm6712_vm1, %v9021_v1, %v2297_v27 }
  0xa8   : > { %v9170_v39 = vsel %vm8625_vm7, %v1120_v34, %v1121_v51  ;;  %v2323_v5 = vrot.slane %v6881_v20, 6  ;;  %2414 = vst [vmem:[#allocation3 + $0x690] sm:$0xff] %v6881_v20  ;;  %v1126_v37 = vrot.slane %v1121_v51, 4  ;;  %v6883_v63 = vcombine.low %v9033_v47, %v2300_v15 }
  0xa9   : > { %5119 = vmatpush2.bf16.msra.mxu1 %v7853_v22  ;;  %5383 = vmatpush2.bf16.msra.mxu0 %v7854_v8  ;;  %v9175_v10 = vsel %vm6712_vm1, %v9035_v45, %v2300_v15  ;;  %v2320_v28 = vrot.slane %v6878_v42, 6  ;;  %2412 = vst [vmem:[#allocation3 + $0x66c] sm:$0xff] %v6878_v42  ;;  %v1132_v1 = vrot.slane %v1127_v30, 4  ;;  %v1232_v22 = vrot.slane %v1230_v19, 1  ;;  %v7862_v15 = vld [vmem:[#allocation5 + $0x150] sm:$0xff]  }
  0xaa   : > { %5120 = vmatprep.subr.bf16.mxu1 %v11004_v54  ;;  %5384 = vmatprep.subr.bf16.mxu0 %v11004_v54  ;;  %v2335_v17 = vrot.slane %v9175_v10, 6  ;;  %2418 = vst [vmem:[#allocation3 + $0x6d8] sm:$0x77] %v9175_v10  ;;  %v11042_v20 = vcombine.low %v8772_v40, %v8786_v3  ;;  %v11043_v47 = vcombine.low %v8840_v43, %v8823_v52  ;;  %v2328_v42 = vrot.slane %v2323_v5, 4 }
  0xab   : > { %v9189_v45 = vsel %vm8625_vm7, %v1126_v37, %v1127_v30  ;;  %v2329_v8 = vrot.slane %v6883_v63, 6  ;;  %2416 = vst [vmem:[#allocation3 + $0x6b4] sm:$0xff] %v6883_v63  ;;  %v1237_v34 = vrot.slane %v1235_v16, 1  ;;  %v11044_v51 = vcombine.high %v8811_v59, %v8856_v21  ;;  %2352 = vst [vmem:[#allocation3 + $0x750] sm:$0xcc] %v2320_v28  ;;  %v7861_v21 = vld [vmem:[#allocation5 + $0xd0] sm:$0xff]  }
  0xac   : > { %4913 = vmatmul.mubr.bf16.gmra.mxu0 %v11042_v20  ;;  %5033 = vmatmul.mubr.bf16.gmra.mxu1 %v11043_v47  ;;  %v8169_v40 = vcombine.low %v8860_v56, %v8799_v13  ;;  %v7121_v3 = vcombine.high %v8933_v18, %v8936_v7  ;;  %v2322_v52 = vrot.slane %v2320_v28, 4  ;;  %1152 = vst [vmem:[#allocation3 + $0x3a8] sm:$0x11] %v1132_v1  ;;  %v1239_v27 = vshrl.u32 %v9144_v44, 16  ;;  %v7867_v20 = vld [vmem:[#allocation5 + $0xc8] sm:$0xff]  }
  0xad   : > { %4920 = vmatprep.mubr.bf16.mxu0 %v11044_v51  ;;  %5040 = vmatprep.mubr.bf16.mxu1 %v7112_v58  ;;  %v1233_v43 = vor.u32 %v1232_v22, %v1228_v14  ;;  %v9200_v63 = vsel %vm8625_vm7, %v2328_v42, %v2329_v8  ;;  %v2334_v30 = vrot.slane %v2329_v8, 4  ;;  %v2340_v58 = vrot.slane %v2335_v17, 4  ;;  %v9233_v22 = vld [vmem:[#allocation3 + $0x288] sm:$0xff] }
  0xae   : > { %5121 = vmatpush2.bf16.msra.mxu1 %v7859_v4  ;;  %5385 = vmatpush2.bf16.msra.mxu0 %v7860_v62  ;;  %v8170_v56 = vcombine.low %v8933_v18, %v8806_v33  ;;  %v7004_v7 = vcombine.high %v9031_v41, %v9055_v50  ;;  %v9210_v4 = vsel %vm8625_vm7, %v2322_v52, %v2323_v5  ;;  %v11045_v16 = vrot.slane %v8403_v11, 1  ;;  %v7868_v47 = vld [vmem:[#allocation5 + $0x148] sm:$0xff]  }
  0xaf   : > { %5122 = vmatprep.subr.bf16.mxu1 %v11004_v54  ;;  %5386 = vmatprep.subr.bf16.mxu0 %v11004_v54  ;;  %v9216_v62 = vsel %vm8625_vm7, %v2334_v30, %v2335_v17  ;;  %v1238_v14 = vsel %vm291_vm0, %v1233_v43, %v1237_v34  ;;  %2360 = vst [vmem:[#allocation3 + $0x7e0] sm:$0x11] %v2340_v58  ;;  %v373_v17 = vrot.slane %v8442_v35, 1  ;;  %v374_v30 = vrot.slane %v8448_v38, 1 }
  0xb0   : > { %v1241_v19 = vor.u32 %v1239_v27, %v1237_v34  ;;  %v310_v37 = vsel %vm307_vm11, %v11045_v16, %v9150_v12  ;;  %v7003_v5 = vcombine.low %v9031_v41, %v9055_v50  ;;  %v9226_v28 = vcombine.low %v9075_v57, %v1238_v14 }
  0xb1   : > { %v9230_v1 = vsel %vm6712_vm1, %v9077_v6, %v1238_v14  ;;  %v6711_v8 = vcombine.low %v310_v37, %v310_v37  ;;  %v6714_v34 = vcombine.high %v310_v37, %v310_v37  ;;  %v6716_v51 = vcombine.low %v9150_v12, %v9150_v12  ;;  %v11049_v37 = vld [vmem:[#allocation43_spill] sm:$0xff] }
  0xb2   : > { %5123 = vmatpush2.bf16.msra.mxu1 %v7861_v21  ;;  %5387 = vmatpush2.bf16.msra.mxu0 %v7862_v15  ;;  %v1264_v11 = vrot.slane %v9230_v1, 7  ;;  %v9237_v42 = vcombine.low %v9092_v2, %v1241_v19  ;;  %v9241_v57 = vsel %vm6712_vm1, %v9094_v61, %v1241_v19  ;;  %v1261_v6 = vrot.slane %v9226_v28, 7  ;;  %v7873_v19 = vld [vmem:[#allocation5 + $0x140] sm:$0xff]  }
  0xb3   : > { %5124 = vmatprep.subr.bf16.mxu1 %v11004_v54  ;;  %5388 = vmatprep.subr.bf16.mxu0 %v11004_v54  ;;  %v1276_v35 = vrot.slane %v9241_v57, 7  ;;  %v11046_v2 = vcombine.low %v8811_v59, %v8712_v48  ;;  %336 = vst [vmem:[#allocation3 + $0x8] sm:$0xf] %v6711_v8  ;;  %v6719_v43 = vcombine.high %v9150_v12, %v9150_v12  ;;  %338 = vst [vmem:[#allocation3 + $0x2c] sm:$0xf] %v6714_v34  ;;  %v9263_v12 = vld [vmem:[#allocation3 + $0x6c0] sm:$0xff] }
  0xb4   : > { %5041 = vmatmul.mubr.bf16.gmra.mxu1 %v8169_v40  ;;  %v1269_v61 = vrot.slane %v1264_v11, 4  ;;  %v1270_v52 = vrot.slane %v9237_v42, 7  ;;  %v11047_v21 = vcombine.high %v8868_v9, %v8886_v24  ;;  %v6995_v15 = vcombine.high %v9233_v22, %v9027_v49  ;;  %1289 = vst [vmem:[#allocation3 + $0x3a8] sm:$0xee] %v1261_v6  ;;  %340 = vst [vmem:[#allocation3 + $0x50] sm:$0xf] %v6716_v51 }
  0xb5   : > { %4921 = vmatmul.mubr.bf16.gmra.mxu0 %v11046_v2  ;;  %5048 = vmatprep.mubr.bf16.mxu1 %v7121_v3  ;;  %v6994_v48 = vcombine.low %v9233_v22, %v9027_v49  ;;  %v1263_v59 = vrot.slane %v1261_v6, 4  ;;  %v8120_v40 = vld [vmem:[#allocation3 + $0x18] sm:$0xff]  ;;  %v7139_v38 = vcombine.high %v9067_v55, %v9085_v23  ;;  %v7869_v24 = vld [vmem:[#allocation5 + $0xc0] sm:$0xff]   ;;  %342 = vst [vmem:[#allocation3 + $0x74] sm:$0x7] %v6719_v43 }
  0xb6   : > { %4928 = vmatprep.mubr.bf16.mxu0 %v11047_v21  ;;  %v547_v58 = vrot.slane %v8120_v40, 5  ;;  %5125 = vmatpush2.bf16.msra.mxu1 %v7867_v20  ;;  %v9269_v27 = vsel %vm8744_vm10, %v1269_v61, %v1270_v52  ;;  %v1275_v14 = vrot.slane %v1270_v52, 4  ;;  %v375_v16 = vsel %vm307_vm11, %v373_v17, %v374_v30  ;;  %v8121_v21 = vld [vmem:[#allocation3 + $0x3c] sm:$0xff]  ;;  %v11056_v49 = vld [vmem:[#allocation33_spill] sm:$0xff] }
  0xb7   : > { %5389 = vmatpush2.bf16.msra.mxu0 %v7868_v47  ;;  %v9275_v6 = vsel %vm8744_vm10, %v1263_v59, %v1264_v11  ;;  %5126 = vmatprep.subr.bf16.mxu1 %v11004_v54  ;;  %v6723_v20 = vcombine.low %v375_v16, %v375_v16  ;;  %v6726_v47 = vcombine.high %v375_v16, %v375_v16  ;;  %v550_v59 = vrot.slane %v8121_v21, 5  ;;  %v8122_v40 = vld [vmem:[#allocation3 + $0x60] sm:$0xff] }
  0xb8   : > { %5390 = vmatprep.subr.bf16.mxu0 %v11004_v54  ;;  %579 = vst [vmem:[#allocation3 + $0x78] sm:$0x88] %v547_v58  ;;  %v9281_v34 = vsel %vm8744_vm10, %v1275_v14, %v1276_v35  ;;  %v549_v51 = vrot.slane %v547_v58, 4  ;;  %v6728_v2 = vcombine.low %v374_v30, %v374_v30  ;;  %v7130_v17 = vcombine.high %v9263_v12, %v9081_v31 }
  0xb9   : > { %v7138_v11 = vcombine.low %v9067_v55, %v9085_v23  ;;  %v396_v61 = vrot.slane %v6723_v20, 5  ;;  %446 = vst [vmem:[#allocation3 + $0x14] sm:$0xf] %v6723_v20  ;;  %v401_v52 = vrot.slane %v6726_v47, 5  ;;  %448 = vst [vmem:[#allocation3 + $0x38] sm:$0xf] %v6726_v47  ;;  %v6731_v58 = vcombine.high %v374_v30, %v374_v30 }
  0xba   : > { %5127 = vmatpush2.bf16.msra.mxu1 %v7869_v24  ;;  %v407_v43 = vrot.slane %v6728_v2, 5  ;;  %v556_v35 = vrot.slane %v8122_v40, 5  ;;  %450 = vst [vmem:[#allocation3 + $0x5c] sm:$0xf] %v6728_v2  ;;  %v10950_v16 = vmov 0.0   ;;  %v11050_v20 = vld [vmem:[#allocation18_spill] sm:$0xff]  ;;  %v7129_v30 = vcombine.low %v9263_v12, %v9081_v31 }
  0xbb   : > { %5391 = vmatpush2.bf16.msra.mxu0 %v7873_v19  ;;  %5624 = vmatprep.subr.bf16.mxu1 %v11004_v54  ;;  %v400_v14 = vrot.slane %v396_v61, 4  ;;  %428 = vst [vmem:[#allocation3 + $0x74] sm:$0x8] %v396_v61  ;;  %v406_v8 = vrot.slane %v401_v52, 4  ;;  %v483_v13 = vrot.slane %v11050_v20, 1  ;;  %v11051_v47 = vld [vmem:[#allocation19_spill] sm:$0xff]  ;;  %v11052_v19 = vcombine.low %v8868_v9, %v8727_v0 }
  0xbc   : > { %7568 = vmatprep.subr.bf16.mxu0 %v10950_v16  ;;  %v484_v24 = vrot.slane %v11051_v47, 1  ;;  %5049 = vmatmul.mubr.bf16.gmra.mxu1 %v8170_v56  ;;  %v551_v2 = vsel %vm8527_vm4, %v549_v51, %v550_v59  ;;  %v555_v61 = vrot.slane %v550_v59, 4  ;;  %452 = vst [vmem:[#allocation3 + $0x80] sm:$0x7] %v6731_v58  ;;  %v412_v21 = vrot.slane %v407_v43, 4  ;;  %v9307_v31 = vld [vmem:[#allocation3 + $0x318] sm:$0xff] }
  0xbd   : > { %4929 = vmatmul.mubr.bf16.gmra.mxu0 %v11052_v19  ;;  %5056 = vmatprep.mubr.bf16.mxu1 %v7130_v17  ;;  %v7022_v40 = vcombine.high %v9170_v39, %v9189_v45  ;;  %v402_v33 = vsel %vm8527_vm4, %v400_v14, %v401_v52  ;;  %581 = vst [vmem:[#allocation3 + $0x9c] sm:$0xff] %v551_v2  ;;  %v413_v18 = vrot.slane %v6731_v58, 5  ;;  %v561_v51 = vrot.slane %v556_v35, 4  ;;  %v9314_v17 = vld [vmem:[#allocation3 + $0x750] sm:$0xff]  ;;  %v11053_v20 = vld [vmem:[#allocation25_spill] sm:$0xff] }
  0xbe   : > { %4936 = vmatprep.mubr.bf16.mxu0 %v6995_v15  ;;  %v408_v56 = vsel %vm8527_vm4, %v406_v8, %v407_v43  ;;  %430 = vst [vmem:[#allocation3 + $0x98] sm:$0xf] %v402_v33  ;;  %v557_v15 = vsel %vm8527_vm4, %v555_v61, %v556_v35  ;;  %v485_v12 = vsel %vm307_vm11, %v483_v13, %v484_v24  ;;  %v562_v8 = vrot.slane %v11053_v20, 5  ;;  %v11054_v43 = vld [vmem:[#allocation27_spill] sm:$0xff] }
  0xbf   : > { %432 = vst [vmem:[#allocation3 + $0xbc] sm:$0xf] %v408_v56  ;;  %583 = vst [vmem:[#allocation3 + $0xc0] sm:$0xff] %v557_v15  ;;  %v6735_v59 = vcombine.low %v485_v12, %v485_v12  ;;  %v6738_v52 = vcombine.high %v485_v12, %v485_v12  ;;  %v414_v58 = vsel %vm8527_vm4, %v412_v21, %v413_v18  ;;  %v416_v14 = vrot.slane %v413_v18, 4 }
  0xc0   : > { %434 = vst [vmem:[#allocation3 + $0xe0] sm:$0xf] %v414_v58  ;;  %v693_v47 = vrot.slane %v11054_v43, 6  ;;  %v6740_v19 = vcombine.low %v484_v24, %v484_v24  ;;  %v9320_v2 = vcombine.high %v484_v24, %v484_v24  ;;  %v7013_v13 = vcombine.high %v9307_v31, %v9163_v60 }
  0xc1   : > { %v548_v35 = vrot.slane %v6735_v59, 5  ;;  %598 = vst [vmem:[#allocation3 + $0x20] sm:$0xf] %v6735_v59  ;;  %600 = vst [vmem:[#allocation3 + $0x44] sm:$0xf] %v6738_v52  ;;  %v506_v61 = vrot.slane %v6735_v59, 6  ;;  %v7148_v21 = vcombine.high %v9314_v17, %v9210_v4  ;;  %v7012_v18 = vcombine.low %v9307_v31, %v9163_v60 }
  0xc2   : > { %436 = vst [vmem:[#allocation3 + $0x104] sm:$0x3] %v416_v14  ;;  %v553_v33 = vrot.slane %v6738_v52, 5  ;;  %v563_v56 = vsel %vm8527_vm4, %v561_v51, %v562_v8  ;;  %v567_v24 = vrot.slane %v562_v8, 4  ;;  %725 = vst [vmem:[#allocation3 + $0x108] sm:$0xcc] %v693_v47  ;;  %v7157_v41 = vcombine.high %v9200_v63, %v9216_v62 }
  0xc3   : > { %602 = vst [vmem:[#allocation3 + $0x68] sm:$0xf] %v6740_v19  ;;  %604 = vst [vmem:[#allocation3 + $0x8c] sm:$0x7] %v9320_v2  ;;  %v552_v15 = vrot.slane %v548_v35, 4  ;;  %v510_v12 = vrot.slane %v506_v61, 4 }
  0xc4   : > { %580 = vst [vmem:[#allocation3 + $0x80] sm:$0x8] %v548_v35  ;;  %538 = vst [vmem:[#allocation3 + $0x104] sm:$0xc] %v506_v61  ;;  %v695_v59 = vrot.slane %v693_v47, 4  ;;  %v558_v58 = vrot.slane %v553_v33, 4  ;;  %5057 = vmatmul.mubr.bf16.gmra.mxu1 %v7129_v30 }
  0xc5   : > { %585 = vst [vmem:[#allocation3 + $0xe4] sm:$0xff] %v563_v56  ;;  %4937 = vmatmul.mubr.bf16.gmra.mxu0 %v6994_v48  ;;  %587 = vst [vmem:[#allocation3 + $0x108] sm:$0x33] %v567_v24  ;;  %v559_v14 = vrot.slane %v6740_v19, 5  ;;  %v511_v51 = vrot.slane %v6738_v52, 6  ;;  %v517_v20 = vrot.slane %v6740_v19, 6  ;;  %5064 = vmatprep.mubr.bf16.mxu1 %v7139_v38  ;;  %v554_v47 = vsel %vm8527_vm4, %v552_v15, %v553_v33 }
  0xc6   : > { %v11055_v8 = vld [vmem:[#allocation30_spill] sm:$0xff]  ;;  %4944 = vmatprep.mubr.bf16.mxu0 %v7004_v7  ;;  %v702_v22 = vrot.slane %v11056_v49, 6  ;;  %v565_v48 = vrot.slane %v9320_v2, 5  ;;  %v11057_v30 = vld [vmem:[#allocation23_spill] sm:$0xff]  ;;  %582 = vst [vmem:[#allocation3 + $0xa4] sm:$0xf] %v554_v47 }
  0xc7   : > { %v696_v16 = vrot.slane %v11055_v8, 6  ;;  %v635_v52 = vrot.slane %v11057_v30, 1  ;;  %v560_v19 = vsel %vm8527_vm4, %v558_v58, %v559_v14  ;;  %v512_v7 = vsel %vm8625_vm7, %v510_v12, %v511_v51  ;;  %v11058_v24 = vld [vmem:[#allocation24_spill] sm:$0xff] }
  0xc8   : > { %v516_v35 = vrot.slane %v511_v51, 4  ;;  %584 = vst [vmem:[#allocation3 + $0xc8] sm:$0xf] %v560_v19  ;;  %540 = vst [vmem:[#allocation3 + $0x128] sm:$0xf] %v512_v7  ;;  %v564_v33 = vrot.slane %v559_v14, 4 }
  0xc9   : > { %v697_v38 = vsel %vm8625_vm7, %v695_v59, %v696_v16  ;;  %v701_v61 = vrot.slane %v696_v16, 4  ;;  %v568_v56 = vrot.slane %v565_v48, 4  ;;  %v636_v15 = vrot.slane %v11058_v24, 1  ;;  %v11059_v14 = vld [vmem:[#allocation34_spill] sm:$0xff] }
  0xca   : > { %727 = vst [vmem:[#allocation3 + $0x12c] sm:$0xff] %v697_v38  ;;  %v518_v30 = vsel %vm8625_vm7, %v516_v35, %v517_v20  ;;  %v522_v58 = vrot.slane %v517_v20, 4  ;;  %v523_v47 = vrot.slane %v9320_v2, 6  ;;  %v707_v0 = vrot.slane %v702_v22, 4  ;;  %v8123_v35 = vld [vmem:[#allocation3 + $0x21c] sm:$0xff] }
  0xcb   : > { %542 = vst [vmem:[#allocation3 + $0x14c] sm:$0xf] %v518_v30  ;;  %v703_v12 = vsel %vm8625_vm7, %v701_v61, %v702_v22  ;;  %v566_v59 = vsel %vm8527_vm4, %v564_v33, %v565_v48  ;;  %588 = vst [vmem:[#allocation3 + $0x110] sm:$0x3] %v568_v56  ;;  %v637_v16 = vsel %vm307_vm11, %v635_v52, %v636_v15  ;;  %v708_v51 = vrot.slane %v11059_v14, 6 }
  0xcc   : > { %729 = vst [vmem:[#allocation3 + $0x150] sm:$0xff] %v703_v12  ;;  %586 = vst [vmem:[#allocation3 + $0xec] sm:$0xf] %v566_v59  ;;  %v9362_v19 = vcombine.low %v637_v16, %v637_v16  ;;  %v9364_v20 = vcombine.high %v637_v16, %v637_v16  ;;  %v524_v2 = vsel %vm8625_vm7, %v522_v58, %v523_v47  ;;  %v526_v7 = vrot.slane %v523_v47, 4 }
  0xcd   : > { %544 = vst [vmem:[#allocation3 + $0x170] sm:$0xf] %v524_v2  ;;  %v709_v22 = vsel %vm8625_vm7, %v707_v0, %v708_v51  ;;  %v713_v48 = vrot.slane %v708_v51, 4  ;;  %v842_v38 = vrot.slane %v8123_v35, 7  ;;  %v9370_v52 = vcombine.low %v636_v15, %v636_v15  ;;  %4945 = vmatmul.mubr.bf16.gmra.mxu0 %v7003_v5  ;;  %5065 = vmatmul.mubr.bf16.gmra.mxu1 %v7138_v11 }
  0xce   : > { %v694_v61 = vrot.slane %v9362_v19, 6  ;;  %546 = vst [vmem:[#allocation3 + $0x194] sm:$0x1] %v526_v7  ;;  %v658_v33 = vrot.slane %v9362_v19, 7  ;;  %731 = vst [vmem:[#allocation3 + $0x174] sm:$0xff] %v709_v22  ;;  %v699_v0 = vrot.slane %v9364_v20, 6  ;;  %4952 = vmatprep.mubr.bf16.mxu0 %v7013_v13  ;;  %5072 = vmatprep.mubr.bf16.mxu1 %v7148_v21  ;;  %v7147_v5 = vcombine.low %v9314_v17, %v9210_v4 }
  0xcf   : > { %v663_v56 = vrot.slane %v9364_v20, 7  ;;  %733 = vst [vmem:[#allocation3 + $0x198] sm:$0x11] %v713_v48  ;;  %v844_v50 = vrot.slane %v842_v38, 4  ;;  %870 = vst [vmem:[#allocation3 + $0x198] sm:$0xee] %v842_v38  ;;  %v9396_v21 = vcombine.high %v636_v15, %v636_v15 }
  0xd0   : > { %v705_v55 = vrot.slane %v9370_v52, 6  ;;  %v669_v23 = vrot.slane %v9370_v52, 7  ;;  %v698_v11 = vrot.slane %v694_v61, 4  ;;  %726 = vst [vmem:[#allocation3 + $0x110] sm:$0xc] %v694_v61  ;;  %v11060_v13 = vrot.slane %v8868_v9, 7 }
  0xd1   : > { %686 = vst [vmem:[#allocation3 + $0x194] sm:$0xe] %v658_v33  ;;  %v662_v30 = vrot.slane %v658_v33, 4  ;;  %v704_v58 = vrot.slane %v699_v0, 4  ;;  %v668_v47 = vrot.slane %v663_v56, 4  ;;  %v8124_v4 = vld [vmem:[#allocation3 + $0x264] sm:$0xff] }
  0xd2   : > { %v850_v24 = vrot.slane %v11060_v13, 4  ;;  %v11061_v12 = vmov %v11060_v13  ;;  %v700_v16 = vsel %vm8625_vm7, %v698_v11, %v699_v0  ;;  %v851_v17 = vrot.slane %v8124_v4, 7  ;;  %v11062_v22 = vld [vmem:[#allocation35_spill] sm:$0xff]  ;;  %v9416_v0 = vld [vmem:[#allocation3 + $0x3a8] sm:$0xff] }
  0xd3   : > { %v846_v59 = vsel %vm8744_vm10, %v844_v50, %v11061_v12  ;;  %v710_v51 = vrot.slane %v705_v55, 4  ;;  %v711_v2 = vrot.slane %v9396_v21, 6  ;;  %v706_v15 = vsel %vm8625_vm7, %v704_v58, %v705_v55  ;;  %728 = vst [vmem:[#allocation3 + $0x134] sm:$0xf] %v700_v16  ;;  %v9418_v50 = vld [vmem:[#allocation3 + $0x7e0] sm:$0x11] }
  0xd4   : > { %872 = vst [vmem:[#allocation3 + $0x1bc] sm:$0xff] %v846_v59  ;;  %v664_v7 = vsel %vm8744_vm10, %v662_v30, %v663_v56  ;;  %v670_v9 = vsel %vm8744_vm10, %v668_v47, %v669_v23  ;;  %v808_v48 = vrot.slane %v11062_v22, 1  ;;  %730 = vst [vmem:[#allocation3 + $0x158] sm:$0xf] %v706_v15  ;;  %v852_v35 = vsel %vm8744_vm10, %v850_v24, %v851_v17  ;;  %v11063_v56 = vld [vmem:[#allocation32_spill] sm:$0xff] }
  0xd5   : > { %688 = vst [vmem:[#allocation3 + $0x1b8] sm:$0xf] %v664_v7  ;;  %690 = vst [vmem:[#allocation3 + $0x1dc] sm:$0xf] %v670_v9  ;;  %v712_v38 = vsel %vm8625_vm7, %v710_v51, %v711_v2  ;;  %v714_v61 = vrot.slane %v711_v2, 4  ;;  %v674_v33 = vrot.slane %v669_v23, 4  ;;  %4953 = vmatmul.mubr.bf16.gmra.mxu0 %v7012_v18  ;;  %5073 = vmatmul.mubr.bf16.gmra.mxu1 %v7147_v5 }
  0xd6   : > { %874 = vst [vmem:[#allocation3 + $0x1e0] sm:$0xff] %v852_v35  ;;  %732 = vst [vmem:[#allocation3 + $0x17c] sm:$0xf] %v712_v38  ;;  %v11064_v55 = vrot.slane %v11063_v56, 1  ;;  %v675_v13 = vrot.slane %v9396_v21, 7  ;;  %v856_v30 = vrot.slane %v851_v17, 4  ;;  %v9424_v58 = vcombine.low %v808_v48, %v808_v48  ;;  %4960 = vmatprep.mubr.bf16.mxu0 %v7022_v40  ;;  %5080 = vmatprep.mubr.bf16.mxu1 %v7157_v41 }
  0xd7   : > { %734 = vst [vmem:[#allocation3 + $0x1a0] sm:$0x1] %v714_v61  ;;  %v9433_v47 = vcombine.high %v808_v48, %v808_v48  ;;  %v11065_v59 = vrot.slane %v11049_v37, 7  ;;  %v11066_v18 = vld [vmem:[#allocation42_spill] sm:$0xff]  ;;  %v7156_v16 = vcombine.low %v9200_v63, %v9216_v62  ;;  %v7031_v40 = vcombine.high %v9416_v0, %v9275_v6  ;;  %v11067_v62 = vld [vmem:[#allocation44_spill] sm:$0xff] }
  0xd8   : > { %v809_v11 = vsel %vm307_vm11, %v11064_v55, %v808_v48  ;;  %v676_v12 = vsel %vm8744_vm10, %v674_v33, %v675_v13  ;;  %v854_v31 = vrot.slane %v9424_v58, 7  ;;  %839 = vst [vmem:[#allocation3 + $0x26c] sm:$0xf] %v9424_v58  ;;  %v950_v5 = vrot.slane %v11066_v18, 1 }
  0xd9   : > { %v9429_v23 = vcombine.low %v809_v11, %v809_v11  ;;  %v9431_v24 = vcombine.high %v809_v11, %v809_v11  ;;  %v858_v60 = vsel %vm8744_vm10, %v856_v30, %v11065_v59  ;;  %v7166_v41 = vcombine.high %v9418_v50, %v9418_v50  ;;  %692 = vst [vmem:[#allocation3 + $0x200] sm:$0xf] %v676_v12 }
  0xda   : > { %876 = vst [vmem:[#allocation3 + $0x204] sm:$0xff] %v858_v60  ;;  %841 = vst [vmem:[#allocation3 + $0x290] sm:$0x7] %v9433_v47  ;;  %v859_v51 = vrot.slane %v854_v31, 4  ;;  %v860_v63 = vrot.slane %v9433_v47, 7  ;;  %v951_v2 = vrot.slane %v11067_v62, 1  ;;  %v11068_v30 = vcombine.low %v9170_v39, %v9189_v45 }
  0xdb   : > { %v843_v4 = vrot.slane %v9429_v23, 7  ;;  %835 = vst [vmem:[#allocation3 + $0x224] sm:$0xf] %v9429_v23  ;;  %837 = vst [vmem:[#allocation3 + $0x248] sm:$0xf] %v9431_v24  ;;  %v848_v17 = vrot.slane %v9431_v24, 7  ;;  %v7165_v18 = vcombine.low %v9418_v50, %v9418_v50 }
  0xdc   : > { %v1154_v7 = vrot.slane %v9111_v26, 5  ;;  %v1157_v9 = vrot.slane %v9115_v25, 5  ;;  %v1163_v22 = vrot.slane %v9136_v29, 5  ;;  %v861_v35 = vsel %vm8744_vm10, %v859_v51, %v860_v63  ;;  %v11069_v62 = vld [vmem:[#allocation48_spill] sm:$0xff] }
  0xdd   : > { %v847_v15 = vrot.slane %v843_v4, 4  ;;  %871 = vst [vmem:[#allocation3 + $0x1a0] sm:$0xe] %v843_v4  ;;  %v853_v48 = vrot.slane %v848_v17, 4  ;;  %v952_v38 = vsel %vm307_vm11, %v950_v5, %v951_v2  ;;  %v9466_v61 = vcombine.low %v951_v2, %v951_v2  ;;  %877 = vst [vmem:[#allocation3 + $0x20c] sm:$0xf] %v861_v35  ;;  %4961 = vmatmul.mubr.bf16.gmra.mxu0 %v11068_v30 }
  0xde   : > { %v9470_v56 = vcombine.low %v952_v38, %v952_v38  ;;  %v9472_v55 = vcombine.high %v952_v38, %v952_v38  ;;  %v1156_v26 = vrot.slane %v1154_v7, 4  ;;  %1186 = vst [vmem:[#allocation3 + $0x294] sm:$0x88] %v1154_v7  ;;  %v9477_v29 = vcombine.high %v951_v2, %v951_v2  ;;  %5081 = vmatmul.mubr.bf16.gmra.mxu1 %v7156_v16 }
  0xdf   : > { %v849_v33 = vsel %vm8744_vm10, %v847_v15, %v848_v17  ;;  %v855_v25 = vsel %vm8744_vm10, %v853_v48, %v854_v31  ;;  %1024 = vst [vmem:[#allocation3 + $0x278] sm:$0xf] %v9466_v61  ;;  %v981_v11 = vrot.slane %v9466_v61, 5  ;;  %v1162_v13 = vrot.slane %v1157_v9, 4  ;;  %4968 = vmatprep.mubr.bf16.mxu0 %v7031_v40  ;;  %5088 = vmatprep.mubr.bf16.mxu1 %v7166_v41  ;;  %v7872_v15 = vld [vmem:[#allocation3 + $0xc] ss:$36 sps:$4 sm:$0xff]  }
  0xe0   : > { %873 = vst [vmem:[#allocation3 + $0x1c4] sm:$0xf] %v849_v33  ;;  %875 = vst [vmem:[#allocation3 + $0x1e8] sm:$0xf] %v855_v25  ;;  %v970_v12 = vrot.slane %v9470_v56, 5  ;;  %v975_v59 = vrot.slane %v9472_v55, 5  ;;  %v1158_v60 = vsel %vm8527_vm4, %v1156_v26, %v1157_v9  ;;  %v7030_v40 = vcombine.low %v9416_v0, %v9275_v6 }
  0xe1   : > { %1020 = vst [vmem:[#allocation3 + $0x230] sm:$0xf] %v9470_v56  ;;  %1022 = vst [vmem:[#allocation3 + $0x254] sm:$0xf] %v9472_v55  ;;  %v986_v31 = vrot.slane %v981_v11, 4  ;;  %v987_v39 = vrot.slane %v9477_v29, 5  ;;  %v1164_v45 = vsel %vm8527_vm4, %v1162_v13, %v1163_v22  ;;  %v7040_v41 = vcombine.high %v9269_v27, %v9281_v34 }
  0xe2   : > { %1188 = vst [vmem:[#allocation3 + $0x2b8] sm:$0xff] %v1158_v60  ;;  %1026 = vst [vmem:[#allocation3 + $0x29c] sm:$0x7] %v9477_v29  ;;  %v974_v5 = vrot.slane %v970_v12, 4  ;;  %v1168_v16 = vrot.slane %v1163_v22, 4  ;;  %v980_v4 = vrot.slane %v975_v59, 4 }
  0xe3   : > { %1002 = vst [vmem:[#allocation3 + $0x290] sm:$0x8] %v970_v12  ;;  %1190 = vst [vmem:[#allocation3 + $0x2dc] sm:$0xff] %v1164_v45  ;;  %v988_v17 = vsel %vm8527_vm4, %v986_v31, %v987_v39  ;;  %v1169_v50 = vrot.slane %v9140_v46, 5  ;;  %v1093_v63 = vrot.slane %v8987_v36, 1  ;;  %v1094_v2 = vrot.slane %v11069_v62, 1 }
  0xe4   : > { %v976_v51 = vsel %vm8527_vm4, %v974_v5, %v975_v59  ;;  %1008 = vst [vmem:[#allocation3 + $0x2fc] sm:$0xf] %v988_v17  ;;  %v982_v6 = vsel %vm8527_vm4, %v980_v4, %v981_v11  ;;  %v990_v0 = vrot.slane %v987_v39, 4  ;;  %v1297_v7 = vrot.slane %v9226_v28, 6  ;;  %v9513_v11 = vld [vmem:[#allocation3 + $0x45c] sm:$0xff] }
  0xe5   : > { %1004 = vst [vmem:[#allocation3 + $0x2b4] sm:$0xf] %v976_v51  ;;  %v1300_v9 = vrot.slane %v9230_v1, 6  ;;  %1006 = vst [vmem:[#allocation3 + $0x2d8] sm:$0xf] %v982_v6  ;;  %v1170_v22 = vsel %vm8527_vm4, %v1168_v16, %v1169_v50  ;;  %v1095_v46 = vsel %vm307_vm11, %v1093_v63, %v1094_v2  ;;  %v1174_v48 = vrot.slane %v1169_v50, 4  ;;  %4969 = vmatmul.mubr.bf16.gmra.mxu0 %v7030_v40 }
  0xe6   : > { %v6788_v36 = vcombine.low %v1094_v2, %v1094_v2  ;;  %1192 = vst [vmem:[#allocation3 + $0x300] sm:$0xff] %v1170_v22  ;;  %v6783_v35 = vcombine.low %v1095_v46, %v1095_v46  ;;  %v6786_v38 = vcombine.high %v1095_v46, %v1095_v46  ;;  %1010 = vst [vmem:[#allocation3 + $0x320] sm:$0x3] %v990_v0  ;;  %v1299_v33 = vrot.slane %v1297_v7, 4  ;;  %v7878_v17 = vld [vmem:[#allocation3 + $0x14] ss:$36 sps:$4 sm:$0xff]  }
  0xe7   : > { %1329 = vst [vmem:[#allocation3 + $0x324] sm:$0xcc] %v1297_v7  ;;  %v6791_v26 = vcombine.high %v1094_v2, %v1094_v2  ;;  %5089 = vmatmul.mubr.bf16.gmra.mxu1 %v7165_v18  ;;  %1194 = vst [vmem:[#allocation3 + $0x324] sm:$0x33] %v1174_v48  ;;  %v1449_v13 = vrot.slane %v9513_v11, 7  ;;  %4976 = vmatprep.mubr.bf16.mxu0 %v7040_v41  ;;  %v7039_v4 = vcombine.low %v9269_v27, %v9281_v34  ;;  %v7879_v27 = vld [vmem:[#allocation5 + $0x1b8] sm:$0xff]  }
  0xe8   : > { %v1166_v25 = vrot.slane %v6788_v36, 5  ;;  %1209 = vst [vmem:[#allocation3 + $0x284] sm:$0xf] %v6788_v36  ;;  %5128 = vmatprep.mubr.bf16.mxu1 %v7872_v15  ;;  %v1155_v30 = vrot.slane %v6783_v35, 5  ;;  %v1160_v12 = vrot.slane %v6786_v38, 5  ;;  %v1301_v59 = vsel %vm8625_vm7, %v1299_v33, %v1300_v9 }
  0xe9   : > { %1205 = vst [vmem:[#allocation3 + $0x23c] sm:$0xf] %v6783_v35  ;;  %1207 = vst [vmem:[#allocation3 + $0x260] sm:$0xf] %v6786_v38  ;;  %v1113_v60 = vrot.slane %v6783_v35, 6  ;;  %v1118_v31 = vrot.slane %v6786_v38, 6 }
  0xea   : > { %1211 = vst [vmem:[#allocation3 + $0x2a8] sm:$0x7] %v6791_v26  ;;  %1331 = vst [vmem:[#allocation3 + $0x348] sm:$0xff] %v1301_v59  ;;  %v1171_v39 = vrot.slane %v1166_v25, 4  ;;  %v1172_v45 = vrot.slane %v6791_v26, 5  ;;  %v1159_v18 = vrot.slane %v1155_v30, 4 }
  0xeb   : > { %1187 = vst [vmem:[#allocation3 + $0x29c] sm:$0x8] %v1155_v30  ;;  %v1165_v5 = vrot.slane %v1160_v12, 4  ;;  %v1124_v16 = vrot.slane %v6788_v36, 6  ;;  %v1130_v40 = vrot.slane %v6791_v26, 6  ;;  %v1117_v51 = vrot.slane %v1113_v60, 4 }
  0xec   : > { %v7870_v41 = vld [vmem:[#allocation3 + $0x8] ss:$36 sps:$4 sm:$0xff]   ;;  %1145 = vst [vmem:[#allocation3 + $0x320] sm:$0xc] %v1113_v60  ;;  %v1173_v50 = vsel %vm8527_vm4, %v1171_v39, %v1172_v45  ;;  %v7874_v63 = vld [vmem:[#allocation3 + $0x54] ss:$36 sps:$4 sm:$0xff]   ;;  %v1161_v62 = vsel %vm8527_vm4, %v1159_v18, %v1160_v12 }
  0xed   : > { %v1167_v2 = vsel %vm8527_vm4, %v1165_v5, %v1166_v25  ;;  %1193 = vst [vmem:[#allocation3 + $0x308] sm:$0xf] %v1173_v50  ;;  %v1123_v15 = vrot.slane %v1118_v31, 4  ;;  %v1129_v6 = vrot.slane %v1124_v16, 4  ;;  %v1454_v0 = vrot.slane %v1449_v13, 4  ;;  %4977 = vmatmul.mubr.bf16.gmra.mxu0 %v7039_v4  ;;  %v11070_v38 = vld [vmem:[#allocation53_spill] sm:$0xff] }
  0xee   : > { %1189 = vst [vmem:[#allocation3 + $0x2c0] sm:$0xf] %v1161_v62  ;;  %v1119_v34 = vsel %vm8625_vm7, %v1117_v51, %v1118_v31  ;;  %1191 = vst [vmem:[#allocation3 + $0x2e4] sm:$0xf] %v1167_v2  ;;  %v1305_v7 = vrot.slane %v1300_v9, 4  ;;  %v1306_v48 = vrot.slane %v9237_v42, 6  ;;  %5392 = vmatprep.mubr.bf16.mxu0 %v7878_v17 }
  0xef   : > { %1147 = vst [vmem:[#allocation3 + $0x344] sm:$0xf] %v1119_v34  ;;  %v1125_v22 = vsel %vm8625_vm7, %v1123_v15, %v1124_v16  ;;  %v1131_v46 = vsel %vm8625_vm7, %v1129_v6, %v1130_v40  ;;  %v1312_v36 = vrot.slane %v9241_v57, 6  ;;  %5129 = vmatmul.mubr.bf16.vlgmr.msra.gmra.mxu1 %v7870_v41  ;;  %v1175_v35 = vrot.slane %v1172_v45, 4  ;;  %v8126_v59 = vld [vmem:[#allocation3 + $0x438] sm:$0xff]  ;;  %v8127_v18 = vld [vmem:[#allocation3 + $0x480] sm:$0xff] }
  0xf0   : > { %1149 = vst [vmem:[#allocation3 + $0x368] sm:$0xf] %v1125_v22  ;;  %1151 = vst [vmem:[#allocation3 + $0x38c] sm:$0xf] %v1131_v46  ;;  %v1242_v33 = vrot.slane %v11070_v38, 1  ;;  %v1243_v9 = vrot.slane %v9144_v44, 1  ;;  %5136 = vmatprep.mubr.bf16.mxu1 %v7874_v63  ;;  %v1307_v25 = vsel %vm8625_vm7, %v1305_v7, %v1306_v48  ;;  %5625 = vmatpush1.bf16.msra.mxu1 %v7879_v27 }
  0xf1   : > { %v1133_v26 = vrot.slane %v1130_v40, 4  ;;  %v1311_v30 = vrot.slane %v1306_v48, 4  ;;  %v1317_v12 = vrot.slane %v1312_v36, 4  ;;  %v1446_v60 = vrot.slane %v8126_v59, 7  ;;  %v7888_v31 = vld [vmem:[#allocation5 + $0x1b0] sm:$0xff]   ;;  %1333 = vst [vmem:[#allocation3 + $0x36c] sm:$0xff] %v1307_v25  ;;  %5626 = vmatprep.subr.bf16.mxu1 %v11004_v54 }
  0xf2   : > { %1195 = vst [vmem:[#allocation3 + $0x32c] sm:$0x3] %v1175_v35  ;;  %v1244_v39 = vsel %vm307_vm11, %v1242_v33, %v1243_v9  ;;  %v9541_v45 = vcombine.low %v1243_v9, %v1243_v9  ;;  %v9543_v44 = vcombine.high %v1243_v9, %v1243_v9  ;;  %v1455_v5 = vrot.slane %v8127_v18, 7  ;;  %v7881_v16 = vld [vmem:[#allocation5 + $0x238] sm:$0xff]   ;;  %v7876_v51 = vld [vmem:[#allocation3 + $0x10] ss:$36 sps:$4 sm:$0xff]  }
  0xf3   : > { %1153 = vst [vmem:[#allocation3 + $0x3b0] sm:$0x1] %v1133_v26  ;;  %v1313_v40 = vsel %vm8625_vm7, %v1311_v30, %v1312_v36  ;;  %v9548_v41 = vcombine.low %v1244_v39, %v1244_v39  ;;  %v9550_v4 = vcombine.high %v1244_v39, %v1244_v39  ;;  %1337 = vst [vmem:[#allocation3 + $0x3b4] sm:$0x11] %v1317_v12  ;;  %v1448_v17 = vrot.slane %v1446_v60, 4  ;;  %v7901_v2 = vld [vmem:[#allocation5 + $0x1a8] sm:$0xff]  }
  0xf4   : > { %1474 = vst [vmem:[#allocation3 + $0x3b4] sm:$0xee] %v1446_v60  ;;  %v7880_v50 = vld [vmem:[#allocation3 + $0x50] ss:$36 sps:$4 sm:$0xff]   ;;  %1335 = vst [vmem:[#allocation3 + $0x390] sm:$0xff] %v1313_v40  ;;  %v1309_v63 = vrot.slane %v9541_v45, 6  ;;  %v1456_v34 = vsel %vm8744_vm10, %v1454_v0, %v1455_v5  ;;  %5627 = vmatpush1.bf16.msra.mxu1 %v7888_v31 }
  0xf5   : > { %v7882_v62 = vld [vmem:[#allocation3 + $0x9c] ss:$36 sps:$4 sm:$0xff]   ;;  %v1298_v15 = vrot.slane %v9548_v41, 6  ;;  %v1450_v6 = vsel %vm8744_vm10, %v1448_v17, %v1449_v13  ;;  %v1273_v27 = vrot.slane %v9541_v45, 7  ;;  %v1303_v22 = vrot.slane %v9550_v4, 6  ;;  %1478 = vst [vmem:[#allocation3 + $0x3fc] sm:$0xff] %v1456_v34  ;;  %5628 = vmatprep.subr.bf16.mxu1 %v11004_v54  ;;  %5393 = vmatmul.mubr.bf16.vlgmr.msra.gmra.mxu0 %v7876_v51 }
  0xf6   : > { %v7884_v7 = vld [vmem:[#allocation3 + $0x5c] ss:$36 sps:$4 sm:$0xff]   ;;  %v1262_v46 = vrot.slane %v9548_v41, 7  ;;  %1476 = vst [vmem:[#allocation3 + $0x3d8] sm:$0xff] %v1450_v6  ;;  %v11071_v48 = vld [vmem:[#allocation13_spill] sm:$0xff]  ;;  %v1315_v13 = vrot.slane %v9543_v44, 6  ;;  %7569 = vmatpush3.bf16.msra.mxu0 %v7881_v16 }
  0xf7   : > { %v1411_v36 = vrot.slane %v11071_v48, 1  ;;  %v11072_v35 = vld [vmem:[#allocation16_spill] sm:$0xff]  ;;  %1330 = vst [vmem:[#allocation3 + $0x32c] sm:$0xc] %v1298_v15  ;;  %v1279_v38 = vrot.slane %v9543_v44, 7  ;;  %5137 = vmatmul.mubr.bf16.gmra.mxu1 %v7880_v50  ;;  %v1302_v0 = vrot.slane %v1298_v15, 4  ;;  %5400 = vmatprep.mubr.bf16.mxu0 %v7884_v7 }
  0xf8   : > { %v1461_v11 = vrot.slane %v11072_v35, 7  ;;  %v1266_v33 = vrot.slane %v1262_v46, 4  ;;  %v1267_v9 = vrot.slane %v9550_v4, 7  ;;  %1290 = vst [vmem:[#allocation3 + $0x3b0] sm:$0xe] %v1262_v46  ;;  %v1308_v26 = vrot.slane %v1303_v22, 4  ;;  %5144 = vmatprep.mubr.bf16.mxu1 %v7882_v62  ;;  %5629 = vmatpush1.bf16.msra.mxu1 %v7901_v2 }
  0xf9   : > { %v7902_v25 = vld [vmem:[#allocation5 + $0x230] sm:$0xff]   ;;  %v1314_v30 = vrot.slane %v1309_v63, 4  ;;  %v1278_v12 = vrot.slane %v1273_v27, 4  ;;  %v1460_v59 = vrot.slane %v1455_v5, 4  ;;  %v1318_v60 = vrot.slane %v1315_v13, 4  ;;  %v7915_v31 = vld [vmem:[#allocation5 + $0x1a0] sm:$0xff]   ;;  %5630 = vmatprep.subr.bf16.mxu1 %v11004_v54 }
  0xfa   : > { %v1304_v39 = vsel %vm8625_vm7, %v1302_v0, %v1303_v22  ;;  %v1268_v18 = vsel %vm8744_vm10, %v1266_v33, %v1267_v9  ;;  %v1310_v40 = vsel %vm8625_vm7, %v1308_v26, %v1309_v63  ;;  %v1272_v17 = vrot.slane %v1267_v9, 4  ;;  %v7886_v16 = vld [vmem:[#allocation3 + $0x98] ss:$36 sps:$4 sm:$0xff]   ;;  %v11074_v63 = vld [vmem:[#allocation14_spill] sm:$0xff]  ;;  %v11076_v22 = vld [vmem:[#allocation17_spill] sm:$0xff] }
  0xfb   : > { %v11073_v51 = vmov 0.0   ;;  %1332 = vst [vmem:[#allocation3 + $0x350] sm:$0xf] %v1304_v39  ;;  %1292 = vst [vmem:[#allocation3 + $0x3d4] sm:$0xf] %v1268_v18  ;;  %v1316_v5 = vsel %vm8625_vm7, %v1314_v30, %v1315_v13  ;;  %v1280_v50 = vsel %vm8744_vm10, %v1278_v12, %v1279_v38  ;;  %v1462_v62 = vsel %vm8744_vm10, %v1460_v59, %v1461_v11  ;;  %v11075_v34 = vld [vmem:[#allocation15_spill] sm:$0xff] }
  0xfc   : > { %7570 = vmatprep.subr.bf16.mxu0 %v11073_v51  ;;  %1334 = vst [vmem:[#allocation3 + $0x374] sm:$0xf] %v1310_v40  ;;  %1338 = vst [vmem:[#allocation3 + $0x3bc] sm:$0x1] %v1318_v60  ;;  %v1412_v2 = vrot.slane %v11074_v63, 1  ;;  %v1274_v6 = vsel %vm8744_vm10, %v1272_v17, %v1273_v27  ;;  %v1554_v7 = vrot.slane %v11075_v34, 1  ;;  %5631 = vmatpush1.bf16.msra.mxu1 %v7915_v31 }
  0xfd   : > { %v7887_v15 = vld [vmem:[#allocation3 + $0x58] ss:$36 sps:$4 sm:$0xff]   ;;  %1336 = vst [vmem:[#allocation3 + $0x398] sm:$0xf] %v1316_v5  ;;  %1296 = vst [vmem:[#allocation3 + $0x41c] sm:$0xf] %v1280_v50  ;;  %7571 = vmatpush3.bf16.msra.mxu0 %v7902_v25  ;;  %5632 = vmatprep.subr.bf16.mxu1 %v11004_v54 }
  0xfe   : > { %1480 = vst [vmem:[#allocation3 + $0x420] sm:$0xff] %v1462_v62  ;;  %v1555_v46 = vrot.slane %v11076_v22, 1  ;;  %v8128_v48 = vld [vmem:[#allocation3 + $0x450] sm:$0xff]  ;;  %v7889_v38 = vld [vmem:[#allocation3 + $0xe4] ss:$36 sps:$4 sm:$0xff]   ;;  %v1413_v11 = vsel %vm307_vm11, %v1411_v36, %v1412_v2  ;;  %v9589_v33 = vcombine.low %v1412_v2, %v1412_v2  ;;  %v9591_v9 = vcombine.high %v1412_v2, %v1412_v2  ;;  %v7928_v30 = vld [vmem:[#allocation5 + $0x198] sm:$0xff]   ;;  %7572 = vmatprep.subr.bf16.mxu0 %v11073_v51 }
  0xff   : > { %v1758_v13 = vrot.slane %v8128_v48, 5  ;;  %v7891_v0 = vld [vmem:[#allocation3 + $0xa4] ss:$36 sps:$4 sm:$0xff]   ;;  %1294 = vst [vmem:[#allocation3 + $0x3f8] sm:$0xf] %v1274_v6  ;;  %v8129_v26 = vld [vmem:[#allocation3 + $0x474] sm:$0xff]  ;;  %v9594_v59 = vcombine.low %v1413_v11, %v1413_v11  ;;  %v9596_v60 = vcombine.high %v1413_v11, %v1413_v11  ;;  %5145 = vmatmul.mubr.bf16.gmra.mxu1 %v7886_v16  ;;  %5401 = vmatmul.mubr.bf16.gmra.mxu0 %v7887_v15 }
 0x100   : > { %11077 = vst [vmem:[#allocation31_spill] sm:$0xff] %v9591_v9  ;;  %v1761_v27 = vrot.slane %v8129_v26, 5  ;;  %v7929_v12 = vld [vmem:[#allocation5 + $0x228] sm:$0xff]   ;;  %v1556_v25 = vsel %vm307_vm11, %v1554_v7, %v1555_v46  ;;  %v1458_v36 = vrot.slane %v9589_v33, 7  ;;  %v1464_v18 = vrot.slane %v9591_v9, 7  ;;  %5152 = vmatprep.mubr.bf16.mxu1 %v7889_v38  ;;  %5408 = vmatprep.mubr.bf16.mxu0 %v7891_v0  ;;  %v7942_v63 = vld [vmem:[#allocation5 + $0x190] sm:$0xff]  }
 0x101   : > { %v1760_v39 = vrot.slane %v1758_v13, 4  ;;  %1790 = vst [vmem:[#allocation3 + $0x4b0] sm:$0x88] %v1758_v13  ;;  %1443 = vst [vmem:[#allocation3 + $0x488] sm:$0xf] %v9589_v33  ;;  %v9604_v31 = vcombine.low %v1556_v25, %v1556_v25  ;;  %v9606_v40 = vcombine.high %v1556_v25, %v1556_v25  ;;  %v1447_v17 = vrot.slane %v9594_v59, 7  ;;  %5633 = vmatpush1.bf16.msra.mxu1 %v7928_v30 }
 0x102   : > { %1445 = vst [vmem:[#allocation3 + $0x4ac] sm:$0x7] %v9591_v9  ;;  %v1452_v5 = vrot.slane %v9596_v60, 7  ;;  %1439 = vst [vmem:[#allocation3 + $0x440] sm:$0xf] %v9594_v59  ;;  %v9612_v50 = vcombine.low %v1555_v46, %v1555_v46  ;;  %v1463_v2 = vrot.slane %v1458_v36, 4  ;;  %7573 = vmatpush3.bf16.msra.mxu0 %v7929_v12  ;;  %v9621_v22 = vcombine.high %v1555_v46, %v1555_v46 }
 0x103   : > { %11078 = vst [vmem:[#allocation43_spill] sm:$0xff] %v9604_v31  ;;  %11079 = vst [vmem:[#allocation18_spill] sm:$0xff] %v9606_v40  ;;  %v1762_v62 = vsel %vm8527_vm4, %v1760_v39, %v1761_v27  ;;  %v1574_v16 = vrot.slane %v9604_v31, 5  ;;  %v1579_v15 = vrot.slane %v9606_v40, 5  ;;  %v7893_v6 = vld [vmem:[#allocation3 + $0xe0] ss:$36 sps:$4 sm:$0xff]   ;;  %5634 = vmatprep.subr.bf16.mxu1 %v11004_v54  ;;  %7574 = vmatprep.subr.bf16.mxu0 %v11073_v51 }
 0x104   : > { %1441 = vst [vmem:[#allocation3 + $0x464] sm:$0xf] %v9596_v60  ;;  %11080 = vst [vmem:[#allocation19_spill] sm:$0xff] %v9612_v50  ;;  %v7956_v34 = vld [vmem:[#allocation5 + $0x220] sm:$0xff]   ;;  %v1451_v7 = vrot.slane %v1447_v17, 4  ;;  %v1457_v48 = vrot.slane %v1452_v5, 4  ;;  %v1465_v13 = vsel %vm8744_vm10, %v1463_v2, %v1464_v18 }
 0x105   : > { %1624 = vst [vmem:[#allocation3 + $0x44c] sm:$0xf] %v9604_v31  ;;  %1626 = vst [vmem:[#allocation3 + $0x470] sm:$0xf] %v9606_v40  ;;  %v1578_v38 = vrot.slane %v1574_v16, 4  ;;  %v1766_v0 = vrot.slane %v1761_v27, 4  ;;  %5635 = vmatpush1.bf16.msra.mxu1 %v7942_v63 }
 0x106   : > { %1792 = vst [vmem:[#allocation3 + $0x4d4] sm:$0xff] %v1762_v62  ;;  %1475 = vst [vmem:[#allocation3 + $0x3bc] sm:$0xe] %v1447_v17  ;;  %v7894_v11 = vld [vmem:[#allocation3 + $0xa0] ss:$36 sps:$4 sm:$0xff]   ;;  %v1453_v30 = vsel %vm8744_vm10, %v1451_v7, %v1452_v5  ;;  %v1584_v12 = vrot.slane %v1579_v15, 4  ;;  %v1459_v25 = vsel %vm8744_vm10, %v1457_v48, %v1458_v36  ;;  %7575 = vmatpush3.bf16.msra.mxu0 %v7956_v34  ;;  %5636 = vmatprep.subr.bf16.mxu1 %v11004_v54 }
 0x107   : > { %1628 = vst [vmem:[#allocation3 + $0x494] sm:$0xf] %v9612_v50  ;;  %11081 = vst [vmem:[#allocation25_spill] sm:$0xff] %v9621_v22  ;;  %v7895_v26 = vld [vmem:[#allocation3 + $0x12c] ss:$36 sps:$4 sm:$0xff]   ;;  %v1580_v39 = vsel %vm8527_vm4, %v1578_v38, %v1579_v15  ;;  %v1585_v18 = vrot.slane %v9612_v50, 5  ;;  %7576 = vmatprep.subr.bf16.mxu0 %v11073_v51  ;;  %5153 = vmatmul.mubr.bf16.gmra.mxu1 %v7893_v6 }
 0x108   : > { %1606 = vst [vmem:[#allocation3 + $0x4ac] sm:$0x8] %v1574_v16  ;;  %1481 = vst [vmem:[#allocation3 + $0x428] sm:$0xf] %v1465_v13  ;;  %v7897_v46 = vld [vmem:[#allocation3 + $0xec] ss:$36 sps:$4 sm:$0xff]   ;;  %5409 = vmatmul.mubr.bf16.gmra.mxu0 %v7894_v11  ;;  %5160 = vmatprep.mubr.bf16.mxu1 %v7895_v26 }
 0x109   : > { %1630 = vst [vmem:[#allocation3 + $0x4b8] sm:$0x7] %v9621_v22  ;;  %1477 = vst [vmem:[#allocation3 + $0x3e0] sm:$0xf] %v1453_v30  ;;  %v8130_v27 = vld [vmem:[#allocation3 + $0x498] sm:$0xff]  ;;  %v7949_v62 = vld [vmem:[#allocation5 + $0x188] sm:$0xff]   ;;  %v1586_v36 = vsel %vm8527_vm4, %v1584_v12, %v1585_v18  ;;  %5416 = vmatprep.mubr.bf16.mxu0 %v7897_v46 }
 0x10a   : > { %v1767_v17 = vrot.slane %v8130_v27, 5  ;;  %1479 = vst [vmem:[#allocation3 + $0x404] sm:$0xf] %v1459_v25  ;;  %v7977_v5 = vld [vmem:[#allocation5 + $0x218] sm:$0xff]   ;;  %1608 = vst [vmem:[#allocation3 + $0x4d0] sm:$0xf] %v1580_v39  ;;  %5637 = vmatpush1.bf16.msra.mxu1 %v7949_v62 }
 0x10b   : > { %v11082_v2 = vld [vmem:[#allocation21_spill] sm:$0xff]  ;;  %v11083_v7 = vld [vmem:[#allocation22_spill] sm:$0xff]  ;;  %v1590_v63 = vrot.slane %v1585_v18, 4  ;;  %1610 = vst [vmem:[#allocation3 + $0x4f4] sm:$0xf] %v1586_v36  ;;  %v1591_v34 = vrot.slane %v9621_v22, 5  ;;  %7577 = vmatpush3.bf16.msra.mxu0 %v7977_v5  ;;  %5638 = vmatprep.subr.bf16.mxu1 %v11004_v54 }
 0x10c   : > { %v1697_v16 = vrot.slane %v11082_v2, 1  ;;  %v1768_v15 = vsel %vm8527_vm4, %v1766_v0, %v1767_v17  ;;  %v1698_v48 = vrot.slane %v11083_v7, 1  ;;  %v1772_v13 = vrot.slane %v1767_v17, 4  ;;  %v11084_v30 = vld [vmem:[#allocation26_spill] sm:$0xff]  ;;  %v7963_v0 = vld [vmem:[#allocation5 + $0x180] sm:$0xff]   ;;  %v11085_v2 = vld [vmem:[#allocation36_spill] sm:$0xff]  ;;  %7578 = vmatprep.subr.bf16.mxu0 %v11073_v51 }
 0x10d   : > { %1794 = vst [vmem:[#allocation3 + $0x4f8] sm:$0xff] %v1768_v15  ;;  %v1773_v25 = vrot.slane %v11084_v30, 5  ;;  %v1592_v18 = vsel %vm8527_vm4, %v1590_v63, %v1591_v34  ;;  %v1594_v27 = vrot.slane %v1591_v34, 4  ;;  %v7899_v17 = vld [vmem:[#allocation3 + $0x128] ss:$36 sps:$4 sm:$0xff]   ;;  %v7976_v7 = vld [vmem:[#allocation5 + $0x1f8] sm:$0xff]  }
 0x10e   : > { %v1699_v38 = vsel %vm307_vm11, %v1697_v16, %v1698_v48  ;;  %v9646_v12 = vcombine.low %v1698_v48, %v1698_v48  ;;  %v9648_v39 = vcombine.high %v1698_v48, %v1698_v48  ;;  %1612 = vst [vmem:[#allocation3 + $0x518] sm:$0xf] %v1592_v18  ;;  %v1901_v16 = vrot.slane %v11085_v2, 6  ;;  %v7900_v62 = vld [vmem:[#allocation3 + $0xe8] ss:$36 sps:$4 sm:$0xff]   ;;  %5639 = vmatpush1.bf16.msra.mxu1 %v7963_v0  ;;  %v8004_v30 = vld [vmem:[#allocation5 + $0x210] sm:$0xff]  }
 0x10f   : > { %v6831_v6 = vcombine.low %v1699_v38, %v1699_v38  ;;  %v6834_v11 = vcombine.high %v1699_v38, %v1699_v38  ;;  %v1774_v26 = vsel %vm8527_vm4, %v1772_v13, %v1773_v25  ;;  %v1778_v46 = vrot.slane %v1773_v25, 4  ;;  %v7903_v5 = vld [vmem:[#allocation3 + $0x174] ss:$36 sps:$4 sm:$0xff]   ;;  %1614 = vst [vmem:[#allocation3 + $0x53c] sm:$0x3] %v1594_v27  ;;  %5640 = vmatprep.subr.bf16.mxu1 %v11004_v54  ;;  %v11086_v18 = vld [vmem:[#allocation37_spill] sm:$0xff] }
 0x110   : > { %1813 = vst [vmem:[#allocation3 + $0x4a0] sm:$0xf] %v9646_v12  ;;  %1815 = vst [vmem:[#allocation3 + $0x4c4] sm:$0x7] %v9648_v39  ;;  %v7905_v15 = vld [vmem:[#allocation3 + $0x134] ss:$36 sps:$4 sm:$0xff]   ;;  %5161 = vmatmul.mubr.bf16.gmra.mxu1 %v7899_v17  ;;  %5417 = vmatmul.mubr.bf16.gmra.mxu0 %v7900_v62 }
 0x111   : > { %v1759_v36 = vrot.slane %v6831_v6, 5  ;;  %1809 = vst [vmem:[#allocation3 + $0x458] sm:$0xf] %v6831_v6  ;;  %1811 = vst [vmem:[#allocation3 + $0x47c] sm:$0xf] %v6834_v11  ;;  %v1717_v48 = vrot.slane %v6831_v6, 6  ;;  %5168 = vmatprep.mubr.bf16.mxu1 %v7903_v5  ;;  %5424 = vmatprep.mubr.bf16.mxu0 %v7905_v15 }
 0x112   : > { %1796 = vst [vmem:[#allocation3 + $0x51c] sm:$0xff] %v1774_v26  ;;  %1798 = vst [vmem:[#allocation3 + $0x540] sm:$0x33] %v1778_v46  ;;  %v1764_v34 = vrot.slane %v6834_v11, 5  ;;  %v1770_v13 = vrot.slane %v9646_v12, 5  ;;  %v1722_v38 = vrot.slane %v6834_v11, 6  ;;  %5641 = vmatpush2.bf16.msra.mxu1 %v7976_v7  ;;  %7579 = vmatpush3.bf16.msra.mxu0 %v8004_v30 }
 0x113   : > { %1933 = vst [vmem:[#allocation3 + $0x540] sm:$0xcc] %v1901_v16  ;;  %v1763_v63 = vrot.slane %v1759_v36, 4  ;;  %1791 = vst [vmem:[#allocation3 + $0x4b8] sm:$0x8] %v1759_v36  ;;  %v9660_v25 = vld [vmem:[#allocation3 + $0x678] sm:$0xff]  ;;  %5642 = vmatprep.subr.bf16.mxu1 %v11004_v54  ;;  %7580 = vmatprep.subr.bf16.mxu0 %v11073_v51 }
 0x114   : > { %v1721_v27 = vrot.slane %v1717_v48, 4  ;;  %1749 = vst [vmem:[#allocation3 + $0x53c] sm:$0xc] %v1717_v48  ;;  %v1903_v26 = vrot.slane %v1901_v16, 4  ;;  %v1769_v6 = vrot.slane %v1764_v34, 4  ;;  %v1727_v46 = vrot.slane %v1722_v38, 4 }
 0x115   : > { %v1765_v0 = vsel %vm8527_vm4, %v1763_v63, %v1764_v34  ;;  %v1728_v36 = vrot.slane %v9646_v12, 6  ;;  %v1904_v2 = vrot.slane %v11086_v18, 6  ;;  %v11087_v22 = vld [vmem:[#allocation38_spill] sm:$0xff]  ;;  %v1775_v16 = vrot.slane %v1770_v13, 4  ;;  %v7990_v50 = vld [vmem:[#allocation5 + $0x1f0] sm:$0xff]   ;;  %v11088_v15 = vld [vmem:[#allocation28_spill] sm:$0xff] }
 0x116   : > { %1793 = vst [vmem:[#allocation3 + $0x4dc] sm:$0xf] %v1765_v0  ;;  %v1723_v11 = vsel %vm8625_vm7, %v1721_v27, %v1722_v38  ;;  %v1910_v48 = vrot.slane %v11087_v22, 6  ;;  %v7907_v17 = vld [vmem:[#allocation3 + $0x170] ss:$36 sps:$4 sm:$0xff]   ;;  %v1771_v63 = vsel %vm8527_vm4, %v1769_v6, %v1770_v13  ;;  %v1776_v5 = vrot.slane %v9648_v39, 5  ;;  %5643 = vmatpush2.bf16.msra.mxu1 %v7990_v50 }
 0x117   : > { %v7908_v62 = vld [vmem:[#allocation3 + $0x130] ss:$36 sps:$4 sm:$0xff]   ;;  %v1729_v12 = vsel %vm8625_vm7, %v1727_v46, %v1728_v36  ;;  %1751 = vst [vmem:[#allocation3 + $0x560] sm:$0xf] %v1723_v11  ;;  %v1846_v34 = vrot.slane %v11088_v15, 1  ;;  %v1905_v7 = vsel %vm8625_vm7, %v1903_v26, %v1904_v2  ;;  %v1909_v38 = vrot.slane %v1904_v2, 4  ;;  %5644 = vmatprep.subr.bf16.mxu1 %v11004_v54 }
 0x118   : > { %1795 = vst [vmem:[#allocation3 + $0x500] sm:$0xf] %v1771_v63  ;;  %1753 = vst [vmem:[#allocation3 + $0x584] sm:$0xf] %v1729_v12  ;;  %v11089_v27 = vld [vmem:[#allocation29_spill] sm:$0xff]  ;;  %v1733_v13 = vrot.slane %v1728_v36, 4  ;;  %v1777_v6 = vsel %vm8527_vm4, %v1775_v16, %v1776_v5  ;;  %5169 = vmatmul.mubr.bf16.gmra.mxu1 %v7907_v17  ;;  %5425 = vmatmul.mubr.bf16.gmra.mxu0 %v7908_v62 }
 0x119   : > { %v1847_v0 = vrot.slane %v11089_v27, 1  ;;  %1935 = vst [vmem:[#allocation3 + $0x564] sm:$0xff] %v1905_v7  ;;  %v1779_v46 = vrot.slane %v1776_v5, 4  ;;  %v1734_v30 = vrot.slane %v9648_v39, 6  ;;  %v1915_v11 = vrot.slane %v1910_v48, 4  ;;  %v11090_v26 = vld [vmem:[#allocation39_spill] sm:$0xff] }
 0x11a   : > { %v7909_v15 = vld [vmem:[#allocation3 + $0x1bc] ss:$36 sps:$4 sm:$0xff]   ;;  %v1911_v12 = vsel %vm8625_vm7, %v1909_v38, %v1910_v48  ;;  %1797 = vst [vmem:[#allocation3 + $0x524] sm:$0xf] %v1777_v6  ;;  %v1916_v36 = vrot.slane %v11090_v26, 6  ;;  %v8003_v39 = vld [vmem:[#allocation5 + $0x1e8] sm:$0xff]  }
 0x11b   : > { %v7911_v63 = vld [vmem:[#allocation3 + $0x17c] ss:$36 sps:$4 sm:$0xff]   ;;  %v1848_v2 = vsel %vm307_vm11, %v1846_v34, %v1847_v0  ;;  %v9689_v27 = vcombine.low %v1847_v0, %v1847_v0  ;;  %1937 = vst [vmem:[#allocation3 + $0x588] sm:$0xff] %v1911_v12  ;;  %1799 = vst [vmem:[#allocation3 + $0x548] sm:$0x3] %v1779_v46  ;;  %v1735_v7 = vsel %vm8625_vm7, %v1733_v13, %v1734_v30  ;;  %v1737_v22 = vrot.slane %v1734_v30, 4 }
 0x11c   : > { %v9691_v16 = vcombine.low %v1848_v2, %v1848_v2  ;;  %v9693_v5 = vcombine.high %v1848_v2, %v1848_v2  ;;  %1755 = vst [vmem:[#allocation3 + $0x5a8] sm:$0xf] %v1735_v7  ;;  %v1917_v48 = vsel %vm8625_vm7, %v1915_v11, %v1916_v36  ;;  %v1921_v34 = vrot.slane %v1916_v36, 4  ;;  %v8132_v38 = vld [vmem:[#allocation3 + $0x654] sm:$0xff]  ;;  %5176 = vmatprep.mubr.bf16.mxu1 %v7909_v15  ;;  %v8133_v36 = vld [vmem:[#allocation3 + $0x69c] sm:$0xff]  ;;  %v11096_v26 = vld [vmem:[#allocation46_spill] sm:$0xff] }
 0x11d   : > { %11091 = vst [vmem:[#allocation27_spill] sm:$0xff] %v9689_v27  ;;  %v2050_v50 = vrot.slane %v8132_v38, 7  ;;  %v1913_v6 = vrot.slane %v9689_v27, 6  ;;  %1757 = vst [vmem:[#allocation3 + $0x5cc] sm:$0x1] %v1737_v22  ;;  %5432 = vmatprep.mubr.bf16.mxu0 %v7911_v63  ;;  %v1877_v2 = vrot.slane %v9689_v27, 7  ;;  %5645 = vmatpush2.bf16.msra.mxu1 %v8003_v39  ;;  %v9710_v15 = vcombine.high %v1847_v0, %v1847_v0 }
 0x11e   : > { %11092 = vst [vmem:[#allocation30_spill] sm:$0xff] %v9691_v16  ;;  %11093 = vst [vmem:[#allocation33_spill] sm:$0xff] %v9693_v5  ;;  %v1902_v46 = vrot.slane %v9691_v16, 6  ;;  %v1866_v12 = vrot.slane %v9691_v16, 7  ;;  %v1907_v13 = vrot.slane %v9693_v5, 6  ;;  %v1871_v30 = vrot.slane %v9693_v5, 7  ;;  %5646 = vmatprep.subr.bf16.mxu1 %v11004_v54 }
 0x11f   : > { %1939 = vst [vmem:[#allocation3 + $0x5ac] sm:$0xff] %v1917_v48  ;;  %1941 = vst [vmem:[#allocation3 + $0x5d0] sm:$0x11] %v1921_v34  ;;  %v2052_v11 = vrot.slane %v2050_v50, 4  ;;  %v11094_v17 = vrot.slane %v9660_v25, 7  ;;  %v2059_v7 = vrot.slane %v8133_v36, 7 }
 0x120   : > { %2078 = vst [vmem:[#allocation3 + $0x5d0] sm:$0xee] %v2050_v50  ;;  %v11095_v22 = vld [vmem:[#allocation40_spill] sm:$0xff]  ;;  %v2065_v48 = vrot.slane %v11096_v26, 7  ;;  %v1906_v18 = vrot.slane %v1902_v46, 4  ;;  %11097 = vst [vmem:[#allocation23_spill] sm:$0xff] %v9710_v15 }
 0x121   : > { %v2058_v62 = vrot.slane %v11094_v17, 4  ;;  %v2015_v38 = vrot.slane %v11095_v22, 1  ;;  %1934 = vst [vmem:[#allocation3 + $0x548] sm:$0xc] %v1902_v46  ;;  %1894 = vst [vmem:[#allocation3 + $0x5cc] sm:$0xe] %v1866_v12  ;;  %v2054_v36 = vsel %vm8744_vm10, %v2052_v11, %v11094_v17 }
 0x122   : > { %v8017_v63 = vld [vmem:[#allocation5 + $0x1e0] sm:$0xff]   ;;  %v7913_v34 = vld [vmem:[#allocation3 + $0x1b8] ss:$36 sps:$4 sm:$0xff]   ;;  %v1870_v50 = vrot.slane %v1866_v12, 4  ;;  %v1912_v5 = vrot.slane %v1907_v13, 4  ;;  %v1876_v27 = vrot.slane %v1871_v30, 4  ;;  %v1908_v46 = vsel %vm8625_vm7, %v1906_v18, %v1907_v13 }
 0x123   : > { %v7914_v22 = vld [vmem:[#allocation3 + $0x178] ss:$36 sps:$4 sm:$0xff]   ;;  %v2060_v0 = vsel %vm8744_vm10, %v2058_v62, %v2059_v7  ;;  %2080 = vst [vmem:[#allocation3 + $0x5f4] sm:$0xff] %v2054_v36  ;;  %v1918_v39 = vrot.slane %v1913_v6, 4  ;;  %v1919_v12 = vrot.slane %v9710_v15, 6  ;;  %v11098_v18 = vld [vmem:[#allocation41_spill] sm:$0xff]  ;;  %5647 = vmatpush2.bf16.msra.mxu1 %v8017_v63 }
 0x124   : > { %v7916_v26 = vld [vmem:[#allocation3 + $0x204] ss:$36 sps:$4 sm:$0xff]   ;;  %v1914_v40 = vsel %vm8625_vm7, %v1912_v5, %v1913_v6  ;;  %1936 = vst [vmem:[#allocation3 + $0x56c] sm:$0xf] %v1908_v46  ;;  %v1872_v25 = vsel %vm8744_vm10, %v1870_v50, %v1871_v30  ;;  %v1878_v11 = vsel %vm8744_vm10, %v1876_v27, %v1877_v2  ;;  %2082 = vst [vmem:[#allocation3 + $0x618] sm:$0xff] %v2060_v0  ;;  %v2016_v13 = vrot.slane %v11098_v18, 1 }
 0x125   : > { %v7918_v16 = vld [vmem:[#allocation3 + $0x1c4] ss:$36 sps:$4 sm:$0xff]   ;;  %1938 = vst [vmem:[#allocation3 + $0x590] sm:$0xf] %v1914_v40  ;;  %1896 = vst [vmem:[#allocation3 + $0x5f0] sm:$0xf] %v1872_v25  ;;  %v1920_v62 = vsel %vm8625_vm7, %v1918_v39, %v1919_v12  ;;  %5648 = vmatprep.subr.bf16.mxu1 %v11004_v54  ;;  %5177 = vmatmul.mubr.bf16.gmra.mxu1 %v7913_v34 }
 0x126   : > { %1898 = vst [vmem:[#allocation3 + $0x614] sm:$0xf] %v1878_v11  ;;  %v1922_v17 = vrot.slane %v1919_v12, 4  ;;  %v1882_v36 = vrot.slane %v1877_v2, 4  ;;  %v1883_v5 = vrot.slane %v9710_v15, 7  ;;  %v2017_v6 = vsel %vm307_vm11, %v2015_v38, %v2016_v13  ;;  %5433 = vmatmul.mubr.bf16.gmra.mxu0 %v7914_v22  ;;  %5184 = vmatprep.mubr.bf16.mxu1 %v7916_v26  ;;  %v11103_v63 = vld [vmem:[#allocation45_spill] sm:$0xff] }
 0x127   : > { %1940 = vst [vmem:[#allocation3 + $0x5b4] sm:$0xf] %v1920_v62  ;;  %v2064_v30 = vrot.slane %v2059_v7, 4  ;;  %v9733_v50 = vcombine.low %v2016_v13, %v2016_v13  ;;  %v9736_v27 = vcombine.high %v2016_v13, %v2016_v13  ;;  %v9738_v40 = vcombine.low %v2017_v6, %v2017_v6  ;;  %5440 = vmatprep.mubr.bf16.mxu0 %v7918_v16  ;;  %v7920_v22 = vld [vmem:[#allocation3 + $0x200] ss:$36 sps:$4 sm:$0xff]   ;;  %v11104_v12 = vld [vmem:[#allocation47_spill] sm:$0xff] }
 0x128   : > { %1942 = vst [vmem:[#allocation3 + $0x5d8] sm:$0x1] %v1922_v17  ;;  %v9740_v46 = vcombine.high %v2017_v6, %v2017_v6  ;;  %v1884_v2 = vsel %vm8744_vm10, %v1882_v36, %v1883_v5  ;;  %v2158_v34 = vrot.slane %v11103_v63, 1  ;;  %v7921_v26 = vld [vmem:[#allocation3 + $0x1c0] ss:$36 sps:$4 sm:$0xff]   ;;  %v2159_v25 = vrot.slane %v11104_v12, 1 }
 0x129   : > { %11099 = vst [vmem:[#allocation24_spill] sm:$0xff] %v9733_v50  ;;  %11100 = vst [vmem:[#allocation34_spill] sm:$0xff] %v9736_v27  ;;  %v2066_v7 = vsel %vm8744_vm10, %v2064_v30, %v2065_v48  ;;  %v2062_v38 = vrot.slane %v9733_v50, 7  ;;  %v2051_v0 = vrot.slane %v9738_v40, 7  ;;  %v2068_v39 = vrot.slane %v9736_v27, 7  ;;  %v8134_v18 = vld [vmem:[#allocation3 + $0x66c] sm:$0xff] }
 0x12a   : > { %11101 = vst [vmem:[#allocation35_spill] sm:$0xff] %v9738_v40  ;;  %11102 = vst [vmem:[#allocation32_spill] sm:$0xff] %v9740_v46  ;;  %v2056_v16 = vrot.slane %v9740_v46, 7  ;;  %v2362_v13 = vrot.slane %v8134_v18, 5  ;;  %v8135_v62 = vld [vmem:[#allocation3 + $0x690] sm:$0xff]  ;;  %v2160_v63 = vsel %vm307_vm11, %v2158_v34, %v2159_v25  ;;  %v11109_v34 = vld [vmem:[#allocation52_spill] sm:$0xff] }
 0x12b   : > { %1900 = vst [vmem:[#allocation3 + $0x638] sm:$0xf] %v1884_v2  ;;  %2047 = vst [vmem:[#allocation3 + $0x6a4] sm:$0xf] %v9733_v50  ;;  %v2067_v48 = vrot.slane %v2062_v38, 4  ;;  %v2055_v11 = vrot.slane %v2051_v0, 4  ;;  %v9760_v50 = vcombine.low %v2159_v25, %v2159_v25  ;;  %v9766_v18 = vcombine.high %v2160_v63, %v2160_v63 }
 0x12c   : > { %2049 = vst [vmem:[#allocation3 + $0x6c8] sm:$0x7] %v9736_v27  ;;  %2043 = vst [vmem:[#allocation3 + $0x65c] sm:$0xf] %v9738_v40  ;;  %v2365_v17 = vrot.slane %v8135_v62, 5  ;;  %v11105_v36 = vld [vmem:[#allocation51_spill] sm:$0xff] }
 0x12d   : > { %2045 = vst [vmem:[#allocation3 + $0x680] sm:$0xf] %v9740_v46  ;;  %2084 = vst [vmem:[#allocation3 + $0x63c] sm:$0xff] %v2066_v7  ;;  %v2301_v5 = vrot.slane %v11105_v36, 1  ;;  %v7922_v6 = vld [vmem:[#allocation3 + $0x24c] ss:$36 sps:$4 sm:$0xff]   ;;  %v2069_v7 = vsel %vm8744_vm10, %v2067_v48, %v2068_v39  ;;  %v2057_v12 = vsel %vm8744_vm10, %v2055_v11, %v2056_v16  ;;  %5185 = vmatmul.mubr.bf16.gmra.mxu1 %v7920_v22 }
 0x12e   : > { %2079 = vst [vmem:[#allocation3 + $0x5d8] sm:$0xe] %v2051_v0  ;;  %v7924_v30 = vld [vmem:[#allocation3 + $0x20c] ss:$36 sps:$4 sm:$0xff]   ;;  %v2061_v2 = vrot.slane %v2056_v16, 4  ;;  %11106 = vst [vmem:[#allocation42_spill] sm:$0xff] %v9760_v50  ;;  %v9764_v0 = vcombine.low %v2160_v63, %v2160_v63  ;;  %5441 = vmatmul.mubr.bf16.gmra.mxu0 %v7921_v26  ;;  %5192 = vmatprep.mubr.bf16.mxu1 %v7922_v6 }
 0x12f   : > { %2085 = vst [vmem:[#allocation3 + $0x644] sm:$0xf] %v2069_v7  ;;  %11108 = vst [vmem:[#allocation48_spill] sm:$0xff] %v9766_v18  ;;  %v2364_v62 = vrot.slane %v2362_v13, 4  ;;  %v8024_v27 = vld [vmem:[#allocation5 + $0x1d8] sm:$0xff]   ;;  %v9772_v48 = vrot.slane %v11109_v34, 1  ;;  %5448 = vmatprep.mubr.bf16.mxu0 %v7924_v30 }
 0x130   : > { %11107 = vst [vmem:[#allocation44_spill] sm:$0xff] %v9764_v0  ;;  %2394 = vst [vmem:[#allocation3 + $0x6cc] sm:$0x88] %v2362_v13  ;;  %v2063_v36 = vsel %vm8744_vm10, %v2061_v2, %v2062_v38  ;;  %v8031_v16 = vld [vmem:[#allocation5 + $0x208] sm:$0xff]   ;;  %v2178_v39 = vrot.slane %v9764_v0, 5  ;;  %v2183_v11 = vrot.slane %v9766_v18, 5  ;;  %v9780_v13 = vcombine.high %v2159_v25, %v2159_v25  ;;  %5649 = vmatpush2.bf16.msra.mxu1 %v8024_v27 }
 0x131   : > { %2081 = vst [vmem:[#allocation3 + $0x5fc] sm:$0xf] %v2057_v12  ;;  %2232 = vst [vmem:[#allocation3 + $0x6b0] sm:$0xf] %v9760_v50  ;;  %v2366_v38 = vsel %vm8527_vm4, %v2364_v62, %v2365_v17  ;;  %v2189_v22 = vrot.slane %v9760_v50, 5  ;;  %v8136_v26 = vld [vmem:[#allocation3 + $0x6b4] sm:$0xff]  ;;  %v2303_v7 = vsel %vm307_vm11, %v2301_v5, %v9772_v48  ;;  %7581 = vmatpush3.bf16.msra.mxu0 %v8031_v16  ;;  %5650 = vmatprep.subr.bf16.mxu1 %v11004_v54 }
 0x132   : > { %2083 = vst [vmem:[#allocation3 + $0x620] sm:$0xf] %v2063_v36  ;;  %2228 = vst [vmem:[#allocation3 + $0x668] sm:$0xf] %v9764_v0  ;;  %v2371_v2 = vrot.slane %v8136_v26, 5  ;;  %v2182_v36 = vrot.slane %v2178_v39, 4  ;;  %v6879_v34 = vcombine.low %v2303_v7, %v2303_v7  ;;  %v9785_v62 = vcombine.high %v2303_v7, %v2303_v7  ;;  %7582 = vmatprep.subr.bf16.mxu0 %v11073_v51 }
 0x133   : > { %2230 = vst [vmem:[#allocation3 + $0x68c] sm:$0xf] %v9766_v18  ;;  %2396 = vst [vmem:[#allocation3 + $0x6f0] sm:$0xff] %v2366_v38  ;;  %v7926_v63 = vld [vmem:[#allocation3 + $0x248] ss:$36 sps:$4 sm:$0xff]   ;;  %v2188_v25 = vrot.slane %v2183_v11, 4 }
 0x134   : > { %11110 = vst [vmem:[#allocation53_spill] sm:$0xff] %v9780_v13  ;;  %v7927_v12 = vld [vmem:[#allocation3 + $0x208] ss:$36 sps:$4 sm:$0xff]   ;;  %2210 = vst [vmem:[#allocation3 + $0x6c8] sm:$0x8] %v2178_v39  ;;  %v2184_v27 = vsel %vm8527_vm4, %v2182_v36, %v2183_v11  ;;  %v2194_v16 = vrot.slane %v2189_v22, 4 }
 0x135   : > { %v7932_v6 = vld [vmem:[#allocation3 + $0x254] ss:$36 sps:$4 sm:$0xff]   ;;  %2234 = vst [vmem:[#allocation3 + $0x6d4] sm:$0x7] %v9780_v13  ;;  %v9789_v30 = vld [vmem:[#allocation2 + $0xf0] sm:$0xf]  ;;  %v2190_v26 = vsel %vm8527_vm4, %v2188_v25, %v2189_v22  ;;  %v9814_v25 = vcombine.low %v9772_v48, %v9772_v48  ;;  %5193 = vmatmul.mubr.bf16.gmra.mxu1 %v7926_v63 }
 0x136   : > { %v7930_v5 = vld [vmem:[#allocation3 + $0x294] ss:$36 sps:$4 sm:$0xff]   ;;  %v2195_v39 = vrot.slane %v9780_v13, 5  ;;  %v2370_v38 = vrot.slane %v2365_v17, 4  ;;  %2413 = vst [vmem:[#allocation3 + $0x674] sm:$0xf] %v6879_v34  ;;  %5449 = vmatmul.mubr.bf16.gmra.mxu0 %v7927_v12 }
 0x137   : > { %2415 = vst [vmem:[#allocation3 + $0x698] sm:$0xf] %v9785_v62  ;;  %2212 = vst [vmem:[#allocation3 + $0x6ec] sm:$0xf] %v2184_v27  ;;  %v2376_v7 = vrot.slane %v2371_v2, 4  ;;  %v2377_v50 = vrot.slane %v9175_v10, 5  ;;  %5200 = vmatprep.mubr.bf16.mxu1 %v7930_v5  ;;  %5456 = vmatprep.mubr.bf16.mxu0 %v7932_v6 }
 0x138   : > { %v2363_v18 = vrot.slane %v6879_v34, 5  ;;  %v9799_v0 = vld [vmem:[#allocation2 + $0xf4] sm:$0xf]  ;;  %v2196_v11 = vsel %vm8527_vm4, %v2194_v16, %v2195_v39  ;;  %2214 = vst [vmem:[#allocation3 + $0x710] sm:$0xf] %v2190_v26  ;;  %v2372_v17 = vsel %vm8527_vm4, %v2370_v38, %v2371_v2  ;;  %v2368_v36 = vrot.slane %v9785_v62, 5 }
 0x139   : > { %v9808_v27 = vcombine.low %v9789_v30, %v9799_v0  ;;  %2216 = vst [vmem:[#allocation3 + $0x734] sm:$0xf] %v2196_v11  ;;  %v2378_v10 = vsel %vm8527_vm4, %v2376_v7, %v2377_v50  ;;  %2398 = vst [vmem:[#allocation3 + $0x714] sm:$0xff] %v2372_v17  ;;  %v2423_v2 = vld [vmem:[#allocation2 + $0xf8] sm:$0xf]  ;;  %v2321_v26 = vrot.slane %v6879_v34, 6 }
 0x13a   : > { %v2367_v22 = vrot.slane %v2363_v18, 4  ;;  %2395 = vst [vmem:[#allocation3 + $0x6d4] sm:$0x8] %v2363_v18  ;;  %2400 = vst [vmem:[#allocation3 + $0x738] sm:$0xff] %v2378_v10  ;;  %v9822_v18 = vcombine.high %v9772_v48, %v9772_v48  ;;  %v7934_v63 = vld [vmem:[#allocation3 + $0x290] ss:$36 sps:$4 sm:$0xff]  }
 0x13b   : > { %v2436_v16 = vshrl.u32 %v9808_v27, 16  ;;  %v2438_v7 = vshll.u32 %v9808_v27, 16  ;;  %2417 = vst [vmem:[#allocation3 + $0x6bc] sm:$0xf] %v9814_v25  ;;  %v7935_v12 = vld [vmem:[#allocation3 + $0x250] ss:$36 sps:$4 sm:$0xff]  }
 0x13c   : > { %v2369_v38 = vsel %vm8527_vm4, %v2367_v22, %v2368_v36  ;;  %v2424_v11 = vld [vmem:[#allocation2 + $0xfc] sm:$0xf]  ;;  %v2374_v17 = vrot.slane %v9814_v25, 5  ;;  %v2325_v5 = vrot.slane %v2321_v26, 4  ;;  %v2326_v6 = vrot.slane %v9785_v62, 6  ;;  %v8038_v46 = vld [vmem:[#allocation5 + $0x1d0] sm:$0xff]  }
 0x13d   : > { %2397 = vst [vmem:[#allocation3 + $0x6f8] sm:$0xf] %v2369_v38  ;;  %2353 = vst [vmem:[#allocation3 + $0x758] sm:$0xc] %v2321_v26  ;;  %v6889_v10 = vcombine.low %v2423_v2, %v2424_v11  ;;  %v2440_v34 = vrot.slane %v2438_v7, 1  ;;  %v2198_v48 = vrot.slane %v2195_v39, 4  ;;  %5651 = vmatpush2.bf16.msra.mxu1 %v8038_v46 }
 0x13e   : > { %2419 = vst [vmem:[#allocation3 + $0x6e0] sm:$0x7] %v9822_v18  ;;  %v7936_v22 = vld [vmem:[#allocation3 + $0x2dc] ss:$36 sps:$4 sm:$0xff]   ;;  %v2327_v40 = vsel %vm8625_vm7, %v2325_v5, %v2326_v6  ;;  %v2382_v15 = vrot.slane %v2377_v50, 4  ;;  %v2373_v31 = vrot.slane %v2368_v36, 4  ;;  %5201 = vmatmul.mubr.bf16.gmra.mxu1 %v7934_v63  ;;  %5457 = vmatmul.mubr.bf16.gmra.mxu0 %v7935_v12 }
 0x13f   : > { %v7938_v13 = vld [vmem:[#allocation3 + $0x29c] ss:$36 sps:$4 sm:$0xff]   ;;  %v2441_v38 = vor.u32 %v2440_v34, %v2436_v16  ;;  %v2443_v51 = vshll.u32 %v6889_v10, 16  ;;  %2218 = vst [vmem:[#allocation3 + $0x758] sm:$0x3] %v2198_v48  ;;  %v2379_v9 = vrot.slane %v2374_v17, 4  ;;  %5208 = vmatprep.mubr.bf16.mxu1 %v7936_v22  ;;  %5652 = vmatprep.subr.bf16.mxu1 %v11004_v54 }
 0x140   : > { %2355 = vst [vmem:[#allocation3 + $0x77c] sm:$0xf] %v2327_v40  ;;  %v2380_v62 = vrot.slane %v9822_v18, 5  ;;  %v2447_v26 = vshrl.u32 %v6889_v10, 16  ;;  %2402 = vst [vmem:[#allocation3 + $0x75c] sm:$0x33] %v2382_v15  ;;  %v2375_v39 = vsel %vm8527_vm4, %v2373_v31, %v2374_v17  ;;  %5464 = vmatprep.mubr.bf16.mxu0 %v7938_v13 }
 0x141   : > { %v2445_v7 = vrot.slane %v2443_v51, 1  ;;  %v2450_v16 = vrot.slane %v9808_v27, 1  ;;  %v2451_v5 = vrot.slane %v6889_v10, 1  ;;  %2399 = vst [vmem:[#allocation3 + $0x71c] sm:$0xf] %v2375_v39  ;;  %v2332_v15 = vrot.slane %v9814_v25, 6  ;;  %v9867_v39 = vpop.f32.mrf.mxu0 }
 0x142   : > { %v2381_v50 = vsel %vm8527_vm4, %v2379_v9, %v2380_v62  ;;  %v2331_v36 = vrot.slane %v2326_v6, 4  ;;  %v2338_v63 = vrot.slane %v9822_v18, 6  ;;  %v7940_v12 = vld [vmem:[#allocation3 + $0x2d8] ss:$36 sps:$4 sm:$0xff]   ;;  %v7943_v34 = vld [vmem:[#allocation3 + $0x324] ss:$36 sps:$4 sm:$0xff]  }
 0x143   : > { %v2446_v40 = vsel %vm291_vm0, %v2441_v38, %v2445_v7  ;;  %2401 = vst [vmem:[#allocation3 + $0x740] sm:$0xf] %v2381_v50  ;;  %v2449_v51 = vor.u32 %v2447_v26, %v2445_v7  ;;  %v2452_v9 = vsel %vm307_vm11, %v2450_v16, %v2451_v5  ;;  %v2337_v27 = vrot.slane %v2332_v15, 4  ;;  %v7941_v25 = vld [vmem:[#allocation3 + $0x298] ss:$36 sps:$4 sm:$0xff]   ;;  %v9869_v50 = vpop.f32.mrf.mxu1 }
 0x144   : > { %v9839_v46 = vcombine.low %v9789_v30, %v2446_v40  ;;  %v9843_v31 = vsel %vm6712_vm1, %v9799_v0, %v2446_v40  ;;  %v2383_v0 = vrot.slane %v2380_v62, 4  ;;  %v7945_v22 = vld [vmem:[#allocation3 + $0x2e4] ss:$36 sps:$4 sm:$0xff]   ;;  %v2333_v48 = vsel %vm8625_vm7, %v2331_v36, %v2332_v15  ;;  %11116 = vst [vmem:[#allocation21_spill] sm:$0xff] %v9869_v50  ;;  %v8137_v50 = vld [vmem:[#allocation3 + $0x21c] sm:$0xff] }
 0x145   : > { %11111 = vst [vmem:[#allocation13_spill] sm:$0xff] %v9843_v31  ;;  %v2472_v13 = vrot.slane %v9843_v31, 6  ;;  %v9850_v30 = vcombine.low %v2423_v2, %v2449_v51  ;;  %v9853_v10 = vsel %vm6712_vm1, %v2424_v11, %v2449_v51  ;;  %v2339_v6 = vsel %vm8625_vm7, %v2337_v27, %v2338_v63  ;;  %2357 = vst [vmem:[#allocation3 + $0x7a0] sm:$0xf] %v2333_v48  ;;  %v4868_v27 = vpop.f32.mrf.mxu0  ;;  %v7947_v48 = vld [vmem:[#allocation3 + $0x320] ss:$36 sps:$4 sm:$0xff]  }
 0x146   : > { %v2469_v17 = vrot.slane %v9839_v46, 6  ;;  %11113 = vst [vmem:[#allocation14_spill] sm:$0xff] %v9853_v10  ;;  %v2484_v18 = vrot.slane %v9853_v10, 6  ;;  %2359 = vst [vmem:[#allocation3 + $0x7c4] sm:$0xf] %v2339_v6  ;;  %v9861_v11 = vcombine.low %v2452_v9, %v2452_v9  ;;  %v9863_v62 = vcombine.high %v2452_v9, %v2452_v9  ;;  %5209 = vmatmul.mubr.bf16.gmra.mxu1 %v7940_v12  ;;  %v4988_v12 = vpop.f32.mrf.mxu1  ;;  %v8054_v27 = vld [vmem:[#allocation5 + $0x200] sm:$0xff]  }
 0x147   : > { %11112 = vst [vmem:[#allocation16_spill] sm:$0xff] %v9850_v30  ;;  %v2477_v38 = vrot.slane %v2472_v13, 4  ;;  %v2478_v2 = vrot.slane %v9850_v30, 6  ;;  %2403 = vst [vmem:[#allocation3 + $0x764] sm:$0x3] %v2383_v0  ;;  %v9865_v7 = vcombine.low %v2451_v5, %v2451_v5  ;;  %5465 = vmatmul.mubr.bf16.gmra.mxu0 %v7941_v25  ;;  %5216 = vmatprep.mubr.bf16.mxu1 %v7943_v34  ;;  %v8053_v25 = vld [vmem:[#allocation5 + $0x1c8] sm:$0xff]  }
 0x148   : > { %v2471_v26 = vrot.slane %v2469_v17, 4  ;;  %2501 = vst [vmem:[#allocation3 + $0x75c] sm:$0xcc] %v2469_v17  ;;  %11114 = vst [vmem:[#allocation15_spill] sm:$0xff] %v9861_v11  ;;  %v2470_v51 = vrot.slane %v9861_v11, 6  ;;  %5472 = vmatprep.mubr.bf16.mxu0 %v7945_v22  ;;  %v2475_v9 = vrot.slane %v9863_v62, 6  ;;  %v9877_v36 = vcombine.high %v2451_v5, %v2451_v5  ;;  %v9885_v5 = vpop.f32.mrf.mxu1  ;;  %5653 = vmatpush2.bf16.msra.mxu1 %v8053_v25 }
 0x149   : > { %11115 = vst [vmem:[#allocation17_spill] sm:$0xff] %v9865_v7  ;;  %v2479_v40 = vsel %vm8625_vm7, %v2477_v38, %v2478_v2  ;;  %v2483_v15 = vrot.slane %v2478_v2, 4  ;;  %v2481_v0 = vrot.slane %v9865_v7, 6  ;;  %v2341_v34 = vrot.slane %v2338_v63, 4  ;;  %11118 = vst [vmem:[#allocation26_spill] sm:$0xff] %v9885_v5  ;;  %5654 = vmatprep.subr.bf16.mxu1 %v11004_v54  ;;  %7583 = vmatpush3.bf16.msra.mxu0 %v8054_v27 }
 0x14a   : > { %v2473_v16 = vsel %vm8625_vm7, %v2471_v26, %v2472_v13  ;;  %2505 = vst [vmem:[#allocation3 + $0x7a4] sm:$0xff] %v2479_v40  ;;  %11117 = vst [vmem:[#allocation22_spill] sm:$0xff] %v9877_v36  ;;  %v2474_v17 = vrot.slane %v2470_v51, 4  ;;  %v2489_v22 = vrot.slane %v2484_v18, 4  ;;  %v2480_v6 = vrot.slane %v2475_v9, 4  ;;  %v9883_v26 = vpop.f32.mrf.mxu0  ;;  %v4991_v12 = vpop.f32.mrf.mxu1 }
 0x14b   : > { %2503 = vst [vmem:[#allocation3 + $0x780] sm:$0xff] %v2473_v16  ;;  %v2485_v13 = vsel %vm8625_vm7, %v2483_v15, %v2484_v18  ;;  %2502 = vst [vmem:[#allocation3 + $0x764] sm:$0xc] %v2470_v51  ;;  %v2487_v38 = vrot.slane %v9877_v36, 6  ;;  %v7948_v2 = vld [vmem:[#allocation3 + $0x2e0] ss:$36 sps:$4 sm:$0xff]  }
 0x14c   : > { %2507 = vst [vmem:[#allocation3 + $0x7c8] sm:$0xff] %v2485_v13  ;;  %v7950_v16 = vld [vmem:[#allocation3 + $0x36c] ss:$36 sps:$4 sm:$0xff]   ;;  %v2476_v40 = vsel %vm8625_vm7, %v2474_v17, %v2475_v9  ;;  %v2486_v15 = vrot.slane %v2481_v0, 4  ;;  %2361 = vst [vmem:[#allocation3 + $0x7e8] sm:$0x1] %v2341_v34  ;;  %v2482_v63 = vsel %vm8625_vm7, %v2480_v6, %v2481_v0  ;;  %v4871_v18 = vpop.f32.mrf.mxu0  ;;  %v9896_v25 = vpop.f32.mrf.mxu1 }
 0x14d   : > { %v7952_v51 = vld [vmem:[#allocation3 + $0x32c] ss:$36 sps:$4 sm:$0xff]   ;;  %2504 = vst [vmem:[#allocation3 + $0x788] sm:$0xf] %v2476_v40  ;;  %2509 = vst [vmem:[#allocation3 + $0x7ec] sm:$0x11] %v2489_v22 }
 0x14e   : > { %v2488_v13 = vsel %vm8625_vm7, %v2486_v15, %v2487_v38  ;;  %2506 = vst [vmem:[#allocation3 + $0x7ac] sm:$0xf] %v2482_v63  ;;  %v9894_v9 = vpop.f32.mrf.mxu0  ;;  %11119 = vst [vmem:[#allocation28_spill] sm:$0xff] %v9896_v25  ;;  %5217 = vmatmul.mubr.bf16.gmra.mxu1 %v7947_v48  ;;  %v4996_v0 = vpop.f32.mrf.mxu1  ;;  %v2490_v34 = vrot.slane %v2487_v38, 4  ;;  %v7954_v6 = vld [vmem:[#allocation3 + $0x368] ss:$36 sps:$4 sm:$0xff]  }
 0x14f   : > { %2508 = vst [vmem:[#allocation3 + $0x7d0] sm:$0xf] %v2488_v13  ;;  %5473 = vmatmul.mubr.bf16.gmra.mxu0 %v7948_v2  ;;  %5224 = vmatprep.mubr.bf16.mxu1 %v7950_v16  ;;  %v7955_v40 = vld [vmem:[#allocation3 + $0x328] ss:$36 sps:$4 sm:$0xff]   ;;  %v7957_v15 = vld [vmem:[#allocation3 + $0x3b4] ss:$36 sps:$4 sm:$0xff]  }
 0x150   : > { %5480 = vmatprep.mubr.bf16.mxu0 %v7952_v51  ;;  %v4876_v17 = vpop.f32.mrf.mxu0  ;;  %v9900_v22 = vpop.f32.mrf.mxu1  ;;  %v7959_v27 = vld [vmem:[#allocation3 + $0x374] ss:$36 sps:$4 sm:$0xff]   ;;  %2510 = vst [vmem:[#allocation3 + $0x7f4] sm:$0x1] %v2490_v34  ;;  %v8066_v38 = vld [vmem:[#allocation5 + $0x1c0] sm:$0xff]   ;;  %v735_v34 = vrot.slane %v11054_v43, 5 }
 0x151   : > { %11120 = vst [vmem:[#allocation29_spill] sm:$0xff] %v9900_v22  ;;  %5655 = vmatpush2.bf16.msra.mxu1 %v8066_v38  ;;  %v7961_v17 = vld [vmem:[#allocation3 + $0x3b0] ss:$36 sps:$4 sm:$0xff]   ;;  %v7964_v43 = vld [vmem:[#allocation3 + $0x3f8] ss:$36 sps:$4 sm:$0xff]   ;;  %v878_v36 = vrot.slane %v8137_v50, 6 }
 0x152   : > { %v9898_v54 = vpop.f32.mrf.mxu0  ;;  %v4999_v18 = vpop.f32.mrf.mxu1  ;;  %v7962_v0 = vld [vmem:[#allocation3 + $0x370] ss:$36 sps:$4 sm:$0xff]   ;;  %767 = vst [vmem:[#allocation3 + $0x84] sm:$0x88] %v735_v34  ;;  %v879_v50 = vrot.slane %v9429_v23, 6  ;;  %v884_v23 = vrot.slane %v9431_v24, 6 }
 0x153   : > { %v7969_v18 = vld [vmem:[#allocation3 + $0x3bc] ss:$36 sps:$4 sm:$0xff]   ;;  %910 = vst [vmem:[#allocation3 + $0x114] sm:$0xcc] %v878_v36 }
 0x154   : > { %v4879_v63 = vpop.f32.mrf.mxu0  ;;  %v9904_v48 = vpop.f32.mrf.mxu1  ;;  %911 = vst [vmem:[#allocation3 + $0x11c] sm:$0xc] %v879_v50  ;;  %v7993_v24 = vld [vmem:[#allocation3 + $0x51c] ss:$36 sps:$4 sm:$0xff]  }
 0x155   : > { %11121 = vst [vmem:[#allocation40_spill] sm:$0xff] %v9904_v48  ;;  %v7966_v63 = vld [vmem:[#allocation3 + $0x3fc] ss:$36 sps:$4 sm:$0xff]  }
 0x156   : > { %v9902_v12 = vpop.f32.mrf.mxu0  ;;  %5225 = vmatmul.mubr.bf16.gmra.mxu1 %v7954_v6  ;;  %v5004_v16 = vpop.f32.mrf.mxu1 }
 0x157   : > { %5481 = vmatmul.mubr.bf16.gmra.mxu0 %v7955_v40  ;;  %5232 = vmatprep.mubr.bf16.mxu1 %v7957_v15  ;;  %v7967_v16 = vld [vmem:[#allocation3 + $0x3b8] ss:$36 sps:$4 sm:$0xff]  }
 0x158   : > { %5488 = vmatprep.mubr.bf16.mxu0 %v7959_v27  ;;  %v4884_v2 = vpop.f32.mrf.mxu0  ;;  %v9908_v13 = vpop.f32.mrf.mxu1 }
 0x159   : > { %11122 = vst [vmem:[#allocation41_spill] sm:$0xff] %v9908_v13  ;;  %v7972_v13 = vld [vmem:[#allocation3 + $0x444] ss:$36 sps:$4 sm:$0xff]  }
 0x15a   : > { %v9906_v51 = vpop.f32.mrf.mxu0  ;;  %v5007_v48 = vpop.f32.mrf.mxu1 }
 0x15b   : > { %v736_v48 = vrot.slane %v9362_v19, 5  ;;  %v744_v19 = vrot.slane %v11056_v49, 5 }
 0x15c   : > { %v4887_v22 = vpop.f32.mrf.mxu0  ;;  %v9913_v40 = vpop.f32.mrf.mxu1 }
 0x15d   : > { %11123 = vst [vmem:[#allocation45_spill] sm:$0xff] %v9913_v40  ;;  %v7975_v22 = vld [vmem:[#allocation3 + $0x404] ss:$36 sps:$4 sm:$0xff]   ;;  %768 = vst [vmem:[#allocation3 + $0x8c] sm:$0x8] %v736_v48  ;;  %v740_v49 = vrot.slane %v736_v48, 4 }
 0x15e   : > { %v9911_v6 = vpop.f32.mrf.mxu0  ;;  %5233 = vmatmul.mubr.bf16.gmra.mxu1 %v7961_v17  ;;  %v5012_v27 = vpop.f32.mrf.mxu1 }
 0x15f   : > { %5489 = vmatmul.mubr.bf16.gmra.mxu0 %v7962_v0  ;;  %5240 = vmatprep.mubr.bf16.mxu1 %v7966_v63  ;;  %v737_v0 = vrot.slane %v735_v34, 4  ;;  %v738_v63 = vrot.slane %v11055_v8, 5  ;;  %v7970_v34 = vld [vmem:[#allocation3 + $0x440] ss:$36 sps:$4 sm:$0xff]  }
 0x160   : > { %5496 = vmatprep.mubr.bf16.mxu0 %v7969_v18  ;;  %v4892_v15 = vpop.f32.mrf.mxu0  ;;  %v9917_v2 = vpop.f32.mrf.mxu1  ;;  %v750_v18 = vrot.slane %v11059_v14, 5  ;;  %v7973_v8 = vld [vmem:[#allocation3 + $0x400] ss:$36 sps:$4 sm:$0xff]  }
 0x161   : > { %11124 = vst [vmem:[#allocation47_spill] sm:$0xff] %v9917_v2  ;;  %v743_v2 = vrot.slane %v738_v63, 4 }
 0x162   : > { %v9915_v38 = vpop.f32.mrf.mxu0  ;;  %v5015_v5 = vpop.f32.mrf.mxu1 }
 0x163   : > { %v741_v5 = vrot.slane %v9364_v20, 5  ;;  %v9938_v14 = vsel %vm8527_vm4, %v743_v2, %v744_v19  ;;  %v7980_v20 = vld [vmem:[#allocation3 + $0x48c] ss:$36 sps:$4 sm:$0xff]  }
 0x164   : > { %v4895_v25 = vpop.f32.mrf.mxu0  ;;  %v9922_v17 = vpop.f32.mrf.mxu1 }
 0x165   : > { %11125 = vst [vmem:[#allocation51_spill] sm:$0xff] %v9922_v17  ;;  %v755_v25 = vrot.slane %v750_v18, 4  ;;  %v742_v2 = vsel %vm8527_vm4, %v740_v49, %v741_v5  ;;  %v7978_v49 = vld [vmem:[#allocation3 + $0x488] ss:$36 sps:$4 sm:$0xff]  }
 0x166   : > { %v9920_v40 = vpop.f32.mrf.mxu0  ;;  %5241 = vmatmul.mubr.bf16.gmra.mxu1 %v7964_v43  ;;  %v5020_v27 = vpop.f32.mrf.mxu1  ;;  %770 = vst [vmem:[#allocation3 + $0xb0] sm:$0xf] %v742_v2 }
 0x167   : > { %5497 = vmatmul.mubr.bf16.gmra.mxu0 %v7967_v16  ;;  %5248 = vmatprep.mubr.bf16.mxu1 %v7972_v13  ;;  %v9934_v13 = vsel %vm8527_vm4, %v737_v0, %v738_v63  ;;  %v746_v16 = vrot.slane %v741_v5, 4  ;;  %775 = vst [vmem:[#allocation3 + $0x114] sm:$0x33] %v755_v25 }
 0x168   : > { %5504 = vmatprep.mubr.bf16.mxu0 %v7975_v22  ;;  %v4900_v15 = vpop.f32.mrf.mxu0  ;;  %v9930_v43 = vpop.f32.mrf.mxu1  ;;  %v7983_v22 = vld [vmem:[#allocation3 + $0x44c] ss:$36 sps:$4 sm:$0xff]  }
 0x169   : > { %11126 = vst [vmem:[#allocation52_spill] sm:$0xff] %v9930_v43  ;;  %v747_v15 = vrot.slane %v9370_v52, 5 }
 0x16a   : > { %v9928_v17 = vpop.f32.mrf.mxu0  ;;  %v5023_v43 = vpop.f32.mrf.mxu1 }
 0x16b   : > { %v748_v48 = vsel %vm8527_vm4, %v746_v16, %v747_v15  ;;  %v749_v43 = vrot.slane %v744_v19, 4  ;;  %v7981_v16 = vld [vmem:[#allocation3 + $0x448] ss:$36 sps:$4 sm:$0xff]  }
 0x16c   : > { %v4903_v27 = vpop.f32.mrf.mxu0  ;;  %v9951_v7 = vpop.f32.mrf.mxu1  ;;  %772 = vst [vmem:[#allocation3 + $0xd4] sm:$0xf] %v748_v48  ;;  %v7989_v48 = vld [vmem:[#allocation3 + $0x494] ss:$36 sps:$4 sm:$0xff]  }
 0x16d   : > { %11127 = vst [vmem:[#allocation54_spill] sm:$0xff] %v9951_v7  ;;  %v753_v27 = vrot.slane %v9396_v21, 5  ;;  %v9960_v2 = vsel %vm8527_vm4, %v749_v43, %v750_v18  ;;  %v893_v43 = vrot.slane %v11049_v37, 6 }
 0x16e   : > { %v9949_v63 = vpop.f32.mrf.mxu0  ;;  %5249 = vmatmul.mubr.bf16.gmra.mxu1 %v7970_v34  ;;  %v5028_v25 = vpop.f32.mrf.mxu1  ;;  %v752_v34 = vrot.slane %v747_v15, 4  ;;  %773 = vst [vmem:[#allocation3 + $0xf0] sm:$0xff] %v9960_v2  ;;  %v880_v15 = vrot.slane %v878_v36, 4  ;;  %v7984_v36 = vld [vmem:[#allocation3 + $0x4d0] ss:$36 sps:$4 sm:$0xff]  }
 0x16f   : > { %5505 = vmatmul.mubr.bf16.gmra.mxu0 %v7973_v8  ;;  %5256 = vmatprep.mubr.bf16.mxu1 %v7980_v20  ;;  %v7986_v8 = vld [vmem:[#allocation3 + $0x4d4] ss:$36 sps:$4 sm:$0xff]   ;;  %v756_v20 = vrot.slane %v753_v27, 4 }
 0x170   : > { %5512 = vmatprep.mubr.bf16.mxu0 %v7983_v22  ;;  %v4908_v52 = vpop.f32.mrf.mxu0  ;;  %v9956_v5 = vpop.f32.mrf.mxu1  ;;  %v8138_v22 = vld [vmem:[#allocation3 + $0x240] sm:$0xff]  ;;  %v754_v25 = vsel %vm8527_vm4, %v752_v34, %v753_v27 }
 0x171   : > { %11128 = vst [vmem:[#allocation55_spill] sm:$0xff] %v9956_v5  ;;  %v881_v19 = vrot.slane %v8138_v22, 6  ;;  %774 = vst [vmem:[#allocation3 + $0xf8] sm:$0xf] %v754_v25  ;;  %v8139_v27 = vld [vmem:[#allocation3 + $0x264] sm:$0xff] }
 0x172   : > { %v9954_v0 = vpop.f32.mrf.mxu0  ;;  %v5031_v21 = vpop.f32.mrf.mxu1  ;;  %776 = vst [vmem:[#allocation3 + $0x11c] sm:$0x3] %v756_v20  ;;  %v887_v34 = vrot.slane %v8139_v27, 6  ;;  %v898_v20 = vrot.slane %v893_v43, 4  ;;  %v8140_v25 = vld [vmem:[#allocation3 + $0x228] sm:$0xff] }
 0x173   : > { %v886_v21 = vrot.slane %v881_v19, 4  ;;  %v1027_v7 = vrot.slane %v8140_v25, 7  ;;  %v890_v25 = vrot.slane %v9424_v58, 6 }
 0x174   : > { %v4911_v52 = vpop.f32.mrf.mxu0  ;;  %v9968_v18 = vpop.f32.mrf.mxu1  ;;  %918 = vst [vmem:[#allocation3 + $0x1a4] sm:$0x11] %v898_v20  ;;  %v892_v20 = vrot.slane %v887_v34, 4 }
 0x175   : > { %11129 = vst [vmem:[#allocation56_spill] sm:$0xff] %v9968_v18  ;;  %v9982_v37 = vsel %vm8625_vm7, %v886_v21, %v887_v34  ;;  %1055 = vst [vmem:[#allocation3 + $0x1a4] sm:$0xee] %v1027_v7 }
 0x176   : > { %v9966_v5 = vpop.f32.mrf.mxu0  ;;  %5257 = vmatmul.mubr.bf16.gmra.mxu1 %v7978_v49  ;;  %v5036_v52 = vpop.f32.mrf.mxu1 }
 0x177   : > { %5513 = vmatmul.mubr.bf16.gmra.mxu0 %v7981_v16  ;;  %5264 = vmatprep.mubr.bf16.mxu1 %v7986_v8  ;;  %v7987_v16 = vld [vmem:[#allocation3 + $0x490] ss:$36 sps:$4 sm:$0xff]   ;;  %v9978_v8 = vsel %vm8625_vm7, %v880_v15, %v881_v19  ;;  %v7996_v52 = vld [vmem:[#allocation3 + $0x4dc] ss:$36 sps:$4 sm:$0xff]  }
 0x178   : > { %5520 = vmatprep.mubr.bf16.mxu0 %v7989_v48  ;;  %v4916_v22 = vpop.f32.mrf.mxu0  ;;  %v9974_v49 = vpop.f32.mrf.mxu1  ;;  %v883_v48 = vrot.slane %v879_v50, 4 }
 0x179   : > { %11130 = vst [vmem:[#allocation57_spill] sm:$0xff] %v9974_v49  ;;  %v889_v22 = vrot.slane %v884_v23, 4 }
 0x17a   : > { %v9972_v10 = vpop.f32.mrf.mxu0  ;;  %v5039_v18 = vpop.f32.mrf.mxu1  ;;  %v885_v15 = vsel %vm8625_vm7, %v883_v48, %v884_v23  ;;  %v7991_v48 = vld [vmem:[#allocation3 + $0x518] ss:$36 sps:$4 sm:$0xff]  }
 0x17b   : > { %v891_v50 = vsel %vm8625_vm7, %v889_v22, %v890_v25  ;;  %913 = vst [vmem:[#allocation3 + $0x140] sm:$0xf] %v885_v15  ;;  %v7994_v22 = vld [vmem:[#allocation3 + $0x4d8] ss:$36 sps:$4 sm:$0xff]   ;;  %v10004_v15 = vsel %vm8625_vm7, %v892_v20, %v893_v43  ;;  %v1029_v43 = vrot.slane %v1027_v7, 4 }
 0x17c   : > { %v4919_v49 = vpop.f32.mrf.mxu0  ;;  %v9995_v30 = vpop.f32.mrf.mxu1  ;;  %915 = vst [vmem:[#allocation3 + $0x164] sm:$0xf] %v891_v50  ;;  %v8002_v50 = vld [vmem:[#allocation3 + $0x524] ss:$36 sps:$4 sm:$0xff]   ;;  %916 = vst [vmem:[#allocation3 + $0x180] sm:$0xff] %v10004_v15 }
 0x17d   : > { %11131 = vst [vmem:[#allocation58_spill] sm:$0xff] %v9995_v30  ;;  %v896_v49 = vrot.slane %v9433_v47, 6  ;;  %v11136_v30 = vld [vmem:[#allocation49_spill] sm:$0xff] }
 0x17e   : > { %v9993_v21 = vpop.f32.mrf.mxu0  ;;  %5265 = vmatmul.mubr.bf16.gmra.mxu1 %v7984_v36  ;;  %v5044_v18 = vpop.f32.mrf.mxu1  ;;  %v895_v36 = vrot.slane %v890_v25, 4  ;;  %v8141_v25 = vld [vmem:[#allocation3 + $0x24c] sm:$0xff] }
 0x17f   : > { %5521 = vmatmul.mubr.bf16.gmra.mxu0 %v7987_v16  ;;  %5272 = vmatprep.mubr.bf16.mxu1 %v7993_v24  ;;  %v7999_v16 = vld [vmem:[#allocation3 + $0x564] ss:$36 sps:$4 sm:$0xff]   ;;  %v899_v24 = vrot.slane %v896_v49, 4  ;;  %v1030_v20 = vrot.slane %v8141_v25, 7  ;;  %v8007_v25 = vld [vmem:[#allocation3 + $0x5ac] ss:$36 sps:$4 sm:$0xff]  }
 0x180   : > { %5528 = vmatprep.mubr.bf16.mxu0 %v7996_v52  ;;  %v4924_v58 = vpop.f32.mrf.mxu0  ;;  %v10000_v23 = vpop.f32.mrf.mxu1  ;;  %v897_v47 = vsel %vm8625_vm7, %v895_v36, %v896_v49  ;;  %v8142_v49 = vld [vmem:[#allocation3 + $0x270] sm:$0xff] }
 0x181   : > { %11132 = vst [vmem:[#allocation59_spill] sm:$0xff] %v10000_v23  ;;  %v1028_v58 = vrot.slane %v9470_v56, 7  ;;  %917 = vst [vmem:[#allocation3 + $0x188] sm:$0xf] %v897_v47  ;;  %v1035_v23 = vrot.slane %v1030_v20, 4  ;;  %v1036_v36 = vrot.slane %v8142_v49, 7  ;;  %v10021_v7 = vsel %vm8744_vm10, %v1029_v43, %v1030_v20 }
 0x182   : > { %v9998_v19 = vpop.f32.mrf.mxu0  ;;  %v5047_v34 = vpop.f32.mrf.mxu1  ;;  %919 = vst [vmem:[#allocation3 + $0x1ac] sm:$0x1] %v899_v24  ;;  %v1033_v56 = vrot.slane %v9472_v55, 7  ;;  %v1042_v55 = vrot.slane %v11136_v30, 7 }
 0x183   : > { %1056 = vst [vmem:[#allocation3 + $0x1ac] sm:$0xe] %v1028_v58 }
 0x184   : > { %v4927_v52 = vpop.f32.mrf.mxu0  ;;  %v10012_v27 = vpop.f32.mrf.mxu1 }
 0x185   : > { %11133 = vst [vmem:[#allocation60_spill] sm:$0xff] %v10012_v27  ;;  %v7997_v27 = vld [vmem:[#allocation3 + $0x560] ss:$36 sps:$4 sm:$0xff]  }
 0x186   : > { %v10010_v18 = vpop.f32.mrf.mxu0  ;;  %5273 = vmatmul.mubr.bf16.gmra.mxu1 %v7991_v48  ;;  %v5052_v34 = vpop.f32.mrf.mxu1  ;;  %v8000_v48 = vld [vmem:[#allocation3 + $0x520] ss:$36 sps:$4 sm:$0xff]  }
 0x187   : > { %5529 = vmatmul.mubr.bf16.gmra.mxu0 %v7994_v22  ;;  %5280 = vmatprep.mubr.bf16.mxu1 %v7999_v16  ;;  %v10025_v22 = vsel %vm8744_vm10, %v1035_v23, %v1036_v36  ;;  %v1032_v16 = vrot.slane %v1028_v58, 4  ;;  %v1039_v34 = vrot.slane %v9466_v61, 7 }
 0x188   : > { %5536 = vmatprep.mubr.bf16.mxu0 %v8002_v50  ;;  %v4932_v52 = vpop.f32.mrf.mxu0  ;;  %v10017_v47 = vpop.f32.mrf.mxu1  ;;  %v1038_v50 = vrot.slane %v1033_v56, 4 }
 0x189   : > { %11134 = vst [vmem:[#allocation61_spill] sm:$0xff] %v10017_v47  ;;  %v8010_v52 = vld [vmem:[#allocation3 + $0x56c] ss:$36 sps:$4 sm:$0xff]   ;;  %v1034_v43 = vsel %vm8744_vm10, %v1032_v16, %v1033_v56 }
 0x18a   : > { %v10015_v24 = vpop.f32.mrf.mxu0  ;;  %v5055_v47 = vpop.f32.mrf.mxu1  ;;  %v1040_v23 = vsel %vm8744_vm10, %v1038_v50, %v1039_v34  ;;  %1058 = vst [vmem:[#allocation3 + $0x1d0] sm:$0xf] %v1034_v43  ;;  %v8005_v16 = vld [vmem:[#allocation3 + $0x5a8] ss:$36 sps:$4 sm:$0xff]  }
 0x18b   : > { %1060 = vst [vmem:[#allocation3 + $0x1f4] sm:$0xf] %v1040_v23  ;;  %v8008_v50 = vld [vmem:[#allocation3 + $0x568] ss:$36 sps:$4 sm:$0xff]  }
 0x18c   : > { %v4935_v49 = vpop.f32.mrf.mxu0  ;;  %v10038_v20 = vpop.f32.mrf.mxu1 }
 0x18d   : > { %11135 = vst [vmem:[#allocation62_spill] sm:$0xff] %v10038_v20  ;;  %v1041_v49 = vrot.slane %v1036_v36, 4  ;;  %v1044_v20 = vrot.slane %v1039_v34, 4 }
 0x18e   : > { %v10036_v58 = vpop.f32.mrf.mxu0  ;;  %5281 = vmatmul.mubr.bf16.gmra.mxu1 %v7997_v27  ;;  %v5060_v47 = vpop.f32.mrf.mxu1  ;;  %v1045_v27 = vrot.slane %v9477_v29, 7  ;;  %v1339_v29 = vrot.slane %v9226_v28, 5 }
 0x18f   : > { %5537 = vmatmul.mubr.bf16.gmra.mxu0 %v8000_v48  ;;  %5288 = vmatprep.mubr.bf16.mxu1 %v8007_v25  ;;  %v1043_v43 = vsel %vm8744_vm10, %v1041_v49, %v1042_v55  ;;  %v8013_v48 = vld [vmem:[#allocation3 + $0x5f4] ss:$36 sps:$4 sm:$0xff]  }
 0x190   : > { %5544 = vmatprep.mubr.bf16.mxu0 %v8010_v52  ;;  %v4940_v61 = vpop.f32.mrf.mxu0  ;;  %v10043_v56 = vpop.f32.mrf.mxu1  ;;  %v8016_v25 = vld [vmem:[#allocation3 + $0x5b4] ss:$36 sps:$4 sm:$0xff]   ;;  %1061 = vst [vmem:[#allocation3 + $0x210] sm:$0xff] %v1043_v43  ;;  %v1046_v30 = vsel %vm8744_vm10, %v1044_v20, %v1045_v27  ;;  %v8020_v20 = vld [vmem:[#allocation3 + $0x63c] ss:$36 sps:$4 sm:$0xff]  }
 0x191   : > { %11137 = vst [vmem:[#allocation49_spill] sm:$0xff] %v10043_v56  ;;  %1062 = vst [vmem:[#allocation3 + $0x218] sm:$0xf] %v1046_v30  ;;  %v8011_v43 = vld [vmem:[#allocation3 + $0x5f0] ss:$36 sps:$4 sm:$0xff]  }
 0x192   : > { %v10041_v11 = vpop.f32.mrf.mxu0  ;;  %v5063_v23 = vpop.f32.mrf.mxu1  ;;  %v8023_v27 = vld [vmem:[#allocation3 + $0x5fc] ss:$36 sps:$4 sm:$0xff]   ;;  %1371 = vst [vmem:[#allocation3 + $0x2a0] sm:$0x88] %v1339_v29 }
 0x194   : > { %v4943_v52 = vpop.f32.mrf.mxu0  ;;  %v10052_v61 = vpop.f32.mrf.mxu1 }
 0x195   : > { %11138 = vst [vmem:[#allocation63_spill] sm:$0xff] %v10052_v61  ;;  %v8014_v52 = vld [vmem:[#allocation3 + $0x5b0] ss:$36 sps:$4 sm:$0xff]  }
 0x196   : > { %v10050_v36 = vpop.f32.mrf.mxu0  ;;  %5289 = vmatmul.mubr.bf16.gmra.mxu1 %v8005_v16  ;;  %v5068_v34 = vpop.f32.mrf.mxu1 }
 0x197   : > { %5545 = vmatmul.mubr.bf16.gmra.mxu0 %v8008_v50  ;;  %5296 = vmatprep.mubr.bf16.mxu1 %v8013_v48  ;;  %v1341_v48 = vrot.slane %v1339_v29, 4 }
 0x198   : > { %5552 = vmatprep.mubr.bf16.mxu0 %v8016_v25  ;;  %v4948_v55 = vpop.f32.mrf.mxu0  ;;  %v10057_v49 = vpop.f32.mrf.mxu1  ;;  %v1342_v25 = vrot.slane %v9230_v1, 5 }
 0x199   : > { %11139 = vst [vmem:[#allocation64_spill] sm:$0xff] %v10057_v49  ;;  %v1340_v55 = vrot.slane %v9548_v41, 5 }
 0x19a   : > { %v10055_v47 = vpop.f32.mrf.mxu0  ;;  %v5071_v30 = vpop.f32.mrf.mxu1 }
 0x19b   : > { %v8021_v30 = vld [vmem:[#allocation3 + $0x5f8] ss:$36 sps:$4 sm:$0xff]   ;;  %1372 = vst [vmem:[#allocation3 + $0x2a8] sm:$0x8] %v1340_v55 }
 0x19c   : > { %v4951_v23 = vpop.f32.mrf.mxu0  ;;  %v10061_v16 = vpop.f32.mrf.mxu1 }
 0x19d   : > { %11140 = vst [vmem:[#allocation65_spill] sm:$0xff] %v10061_v16  ;;  %v8018_v23 = vld [vmem:[#allocation3 + $0x638] ss:$36 sps:$4 sm:$0xff]   ;;  %v1343_v16 = vsel %vm8527_vm4, %v1341_v48, %v1342_v25  ;;  %v1348_v48 = vrot.slane %v9237_v42, 5 }
 0x19e   : > { %v10059_v61 = vpop.f32.mrf.mxu0  ;;  %5297 = vmatmul.mubr.bf16.gmra.mxu1 %v8011_v43  ;;  %v5076_v50 = vpop.f32.mrf.mxu1  ;;  %v1344_v43 = vrot.slane %v1340_v55, 4  ;;  %1373 = vst [vmem:[#allocation3 + $0x2c4] sm:$0xff] %v1343_v16 }
 0x19f   : > { %5553 = vmatmul.mubr.bf16.gmra.mxu0 %v8014_v52  ;;  %5304 = vmatprep.mubr.bf16.mxu1 %v8020_v20  ;;  %v1345_v52 = vrot.slane %v9550_v4, 5  ;;  %v8027_v20 = vld [vmem:[#allocation3 + $0x684] ss:$36 sps:$4 sm:$0xff]   ;;  %v1354_v4 = vrot.slane %v9241_v57, 5 }
 0x1a0   : > { %5560 = vmatprep.mubr.bf16.mxu0 %v8023_v27  ;;  %v4956_v28 = vpop.f32.mrf.mxu0  ;;  %v10067_v49 = vpop.f32.mrf.mxu1  ;;  %v8030_v27 = vld [vmem:[#allocation3 + $0x644] ss:$36 sps:$4 sm:$0xff]  }
 0x1a1   : > { %11141 = vst [vmem:[#allocation66_spill] sm:$0xff] %v10067_v49  ;;  %v1346_v41 = vsel %vm8527_vm4, %v1344_v43, %v1345_v52  ;;  %v1351_v49 = vrot.slane %v9541_v45, 5  ;;  %v1359_v43 = vrot.slane %v1354_v4, 4  ;;  %v8034_v45 = vld [vmem:[#allocation3 + $0x6cc] ss:$36 sps:$4 sm:$0xff]  }
 0x1a2   : > { %v10065_v34 = vpop.f32.mrf.mxu0  ;;  %v5079_v1 = vpop.f32.mrf.mxu1  ;;  %1374 = vst [vmem:[#allocation3 + $0x2cc] sm:$0xf] %v1346_v41  ;;  %v8143_v41 = vld [vmem:[#allocation3 + $0x438] sm:$0xff] }
 0x1a3   : > { %v1353_v1 = vrot.slane %v1348_v48, 4  ;;  %v1482_v56 = vrot.slane %v8143_v41, 6  ;;  %1379 = vst [vmem:[#allocation3 + $0x330] sm:$0x33] %v1359_v43 }
 0x1a4   : > { %v4959_v29 = vpop.f32.mrf.mxu0  ;;  %v10076_v50 = vpop.f32.mrf.mxu1 }
 0x1a5   : > { %11142 = vst [vmem:[#allocation67_spill] sm:$0xff] %v10076_v50  ;;  %v1347_v29 = vrot.slane %v1342_v25, 4  ;;  %v10091_v57 = vsel %vm8527_vm4, %v1353_v1, %v1354_v4  ;;  %v1350_v25 = vrot.slane %v1345_v52, 4  ;;  %1514 = vst [vmem:[#allocation3 + $0x330] sm:$0xcc] %v1482_v56 }
 0x1a6   : > { %v10074_v28 = vpop.f32.mrf.mxu0  ;;  %5305 = vmatmul.mubr.bf16.gmra.mxu1 %v8018_v23  ;;  %v5084_v16 = vpop.f32.mrf.mxu1  ;;  %v8025_v23 = vld [vmem:[#allocation3 + $0x680] ss:$36 sps:$4 sm:$0xff]   ;;  %11146 = vst [vmem:[#allocation71_spill] sm:$0xff] %v10091_v57 }
 0x1a7   : > { %5561 = vmatmul.mubr.bf16.gmra.mxu0 %v8021_v30  ;;  %5312 = vmatprep.mubr.bf16.mxu1 %v8027_v20  ;;  %v8028_v30 = vld [vmem:[#allocation3 + $0x640] ss:$36 sps:$4 sm:$0xff]   ;;  %v10087_v42 = vsel %vm8527_vm4, %v1347_v29, %v1348_v48  ;;  %v1356_v20 = vrot.slane %v1351_v49, 4  ;;  %v1357_v16 = vrot.slane %v9543_v44, 5  ;;  %v1352_v4 = vsel %vm8527_vm4, %v1350_v25, %v1351_v49  ;;  %v10110_v25 = vld [vmem:[%s10892_s2] ss:$0 sm:$0xff] }
 0x1a8   : > { %5568 = vmatprep.mubr.bf16.mxu0 %v8030_v27  ;;  %v4964_v55 = vpop.f32.mrf.mxu0  ;;  %v10083_v50 = vpop.f32.mrf.mxu1  ;;  %11145 = vst [vmem:[#allocation70_spill] sm:$0xff] %v10087_v42  ;;  %v8037_v27 = vld [vmem:[#allocation3 + $0x68c] ss:$36 sps:$4 sm:$0xff]   ;;  %1376 = vst [vmem:[#allocation3 + $0x2f0] sm:$0xf] %v1352_v4  ;;  %v8144_v29 = vld [vmem:[#allocation3 + $0x45c] sm:$0xff] }
 0x1a9   : > { %11144 = vst [vmem:[#allocation69_spill] sm:$0xff] %v10083_v50  ;;  %v1358_v52 = vsel %vm8527_vm4, %v1356_v20, %v1357_v16  ;;  %v1485_v1 = vrot.slane %v8144_v29, 6  ;;  %v1483_v49 = vrot.slane %v9594_v59, 6  ;;  %v8032_v29 = vld [vmem:[#allocation3 + $0x6c8] ss:$36 sps:$4 sm:$0xff]   ;;  %v1360_v59 = vrot.slane %v1357_v16, 4 }
 0x1aa   : > { %v10081_v31 = vpop.f32.mrf.mxu0  ;;  %v5087_v50 = vpop.f32.mrf.mxu1  ;;  %1378 = vst [vmem:[#allocation3 + $0x314] sm:$0xf] %v1358_v52  ;;  %v8035_v48 = vld [vmem:[#allocation3 + $0x688] ss:$36 sps:$4 sm:$0xff]   ;;  %v4867_v55 = vadd.f32 %v10110_v25, %v9867_v39  ;;  %v4870_v39 = vadd.f32 %v10110_v25, %v9883_v26  ;;  %v8042_v42 = vld [vmem:[#allocation3 + $0x6d0] ss:$36 sps:$4 sm:$0xff]  }
 0x1ab   : > { %11143 = vst [vmem:[#allocation68_spill] sm:$0xff] %v10081_v31  ;;  %1515 = vst [vmem:[#allocation3 + $0x338] sm:$0xc] %v1483_v49  ;;  %v8049_v26 = vld [vmem:[#allocation3 + $0x75c] ss:$36 sps:$4 sm:$0xff]  }
 0x1ac   : > { %v4967_v41 = vpop.f32.mrf.mxu0  ;;  %v10104_v43 = vpop.f32.mrf.mxu1  ;;  %1380 = vst [vmem:[#allocation3 + $0x338] sm:$0x3] %v1360_v59 }
 0x1ad   : > { %11147 = vst [vmem:[#allocation72_spill] sm:$0xff] %v10104_v43  ;;  %v1484_v41 = vrot.slane %v1482_v56, 4  ;;  %v8041_v56 = vld [vmem:[#allocation3 + $0x714] ss:$36 sps:$4 sm:$0xff]  }
 0x1ae   : > { %v10102_v31 = vpop.f32.mrf.mxu0  ;;  %5313 = vmatmul.mubr.bf16.gmra.mxu1 %v8025_v23  ;;  %v5092_v50 = vpop.f32.mrf.mxu1 }
 0x1af   : > { %5569 = vmatmul.mubr.bf16.gmra.mxu0 %v8028_v30  ;;  %5320 = vmatprep.mubr.bf16.mxu1 %v8034_v45  ;;  %v1486_v23 = vsel %vm8625_vm7, %v1484_v41, %v1485_v1  ;;  %v1487_v30 = vrot.slane %v1483_v49, 4  ;;  %v1488_v45 = vrot.slane %v9596_v60, 6  ;;  %v1490_v41 = vrot.slane %v1485_v1, 4  ;;  %v8145_v49 = vld [vmem:[#allocation3 + $0x480] sm:$0xff] }
 0x1b0   : > { %5576 = vmatprep.mubr.bf16.mxu0 %v8037_v27  ;;  %v4972_v44 = vpop.f32.mrf.mxu0  ;;  %v5093_v4 = vpop.f32.mrf.mxu1  ;;  %v8044_v27 = vld [vmem:[#allocation3 + $0x6d4] ss:$36 sps:$4 sm:$0xff]   ;;  %1516 = vst [vmem:[#allocation3 + $0x354] sm:$0xff] %v1486_v23  ;;  %v1491_v16 = vrot.slane %v8145_v49, 6  ;;  %v8146_v1 = vld [vmem:[#allocation3 + $0x444] sm:$0xff] }
 0x1b1   : > { %v1489_v50 = vsel %vm8625_vm7, %v1487_v30, %v1488_v45  ;;  %v1497_v4 = vrot.slane %v11072_v35, 6  ;;  %v1494_v35 = vrot.slane %v9589_v33, 6  ;;  %v1493_v33 = vrot.slane %v1488_v45, 4  ;;  %v8052_v49 = vld [vmem:[#allocation3 + $0x71c] ss:$36 sps:$4 sm:$0xff]  }
 0x1b2   : > { %v10112_v20 = vpop.f32.mrf.mxu0  ;;  %v5094_v44 = vpop.f32.mrf.mxu1  ;;  %1517 = vst [vmem:[#allocation3 + $0x35c] sm:$0xf] %v1489_v50  ;;  %v1631_v50 = vrot.slane %v8146_v1, 7  ;;  %v4875_v45 = vadd.f32 %v10110_v25, %v9894_v9  ;;  %v11152_v9 = vld [vmem:[#allocation43_spill] sm:$0xff] }
 0x1b3   : > { %v1496_v44 = vrot.slane %v1491_v16, 4  ;;  %v1502_v59 = vrot.slane %v1497_v4, 4 }
 0x1b4   : > { %v4975_v52 = vpop.f32.mrf.mxu0  ;;  %v5130_v60 = vpop.f32.mrf.mxu1  ;;  %1659 = vst [vmem:[#allocation3 + $0x3c0] sm:$0xee] %v1631_v50 }
 0x1b5   : > { %v5131_v23 = vadd.f32 %v5130_v60, %v4867_v55  ;;  %v10131_v55 = vsel %vm8625_vm7, %v1490_v41, %v1491_v16  ;;  %1522 = vst [vmem:[#allocation3 + $0x3c0] sm:$0x11] %v1502_v59  ;;  %v1632_v41 = vrot.slane %v11152_v9, 7  ;;  %v4883_v9 = vadd.f32 %v10110_v25, %v9902_v12 }
 0x1b6   : > { %v10122_v43 = vpop.f32.mrf.mxu0  ;;  %5321 = vmatmul.mubr.bf16.gmra.mxu1 %v8032_v29  ;;  %v5132_v30 = vpop.f32.mrf.mxu1 }
 0x1b7   : > { %11148 = vst [vmem:[#allocation73_spill] sm:$0xff] %v10122_v43  ;;  %5577 = vmatmul.mubr.bf16.gmra.mxu0 %v8035_v48  ;;  %5328 = vmatprep.mubr.bf16.mxu1 %v8041_v56  ;;  %v8039_v48 = vld [vmem:[#allocation3 + $0x710] ss:$36 sps:$4 sm:$0xff]   ;;  %v10135_v56 = vsel %vm8625_vm7, %v1496_v44, %v1497_v4  ;;  %v1495_v4 = vsel %vm8625_vm7, %v1493_v33, %v1494_v35  ;;  %v8147_v33 = vld [vmem:[#allocation3 + $0x468] sm:$0xff]  ;;  %1660 = vst [vmem:[#allocation3 + $0x3c8] sm:$0xe] %v1632_v41 }
 0x1b8   : > { %5584 = vmatprep.mubr.bf16.mxu0 %v8044_v27  ;;  %v4980_v52 = vpop.f32.mrf.mxu0  ;;  %v5133_v29 = vpop.f32.mrf.mxu1  ;;  %v1499_v27 = vrot.slane %v1494_v35, 4  ;;  %v11150_v30 = vld [vmem:[#allocation31_spill] sm:$0xff]  ;;  %1519 = vst [vmem:[#allocation3 + $0x380] sm:$0xf] %v1495_v4  ;;  %v1633_v35 = vrot.slane %v1631_v50, 4 }
 0x1b9   : > { %v5134_v60 = vadd.f32 %v5133_v29, %v4870_v39  ;;  %v1500_v1 = vrot.slane %v11150_v30, 6  ;;  %v1634_v30 = vrot.slane %v8147_v33, 7  ;;  %v8047_v52 = vld [vmem:[#allocation3 + $0x758] ss:$36 sps:$4 sm:$0xff]  }
 0x1ba   : > { %v10127_v57 = vpop.f32.mrf.mxu0  ;;  %v5135_v43 = vpop.f32.mrf.mxu1 }
 0x1bb   : > { %11149 = vst [vmem:[#allocation74_spill] sm:$0xff] %v10127_v57  ;;  %v1501_v16 = vsel %vm8625_vm7, %v1499_v27, %v1500_v1  ;;  %v4878_v27 = vadd.f32 %v10110_v25, %v9898_v54 }
 0x1bc   : > { %v4983_v57 = vpop.f32.mrf.mxu0  ;;  %v5138_v44 = vpop.f32.mrf.mxu1  ;;  %1521 = vst [vmem:[#allocation3 + $0x3a4] sm:$0xf] %v1501_v16  ;;  %v2777_v53 = vld [vmem:[#allocation3 + $0x3c0] sm:$0xff] }
 0x1bd   : > { %v5139_v57 = vadd.f32 %v5138_v44, %v4875_v45  ;;  %v1636_v45 = vrot.slane %v1632_v41, 4  ;;  %v8057_v44 = vld [vmem:[#allocation3 + $0x7a4] ss:$36 sps:$4 sm:$0xff]  }
 0x1be   : > { %5329 = vmatmul.mubr.bf16.gmra.mxu1 %v8039_v48  ;;  %v5394_v39 = vpop.f32.mrf.mxu0  ;;  %v5140_v59 = vpop.f32.mrf.mxu1 }
 0x1bf   : > { %5585 = vmatmul.mubr.bf16.gmra.mxu0 %v8042_v42  ;;  %v10148_v43 = vadd.f32 %v5394_v39, %v5131_v23  ;;  %5336 = vmatprep.mubr.bf16.mxu1 %v8049_v26  ;;  %v8050_v42 = vld [vmem:[#allocation3 + $0x718] ss:$36 sps:$4 sm:$0xff]   ;;  %v1635_v23 = vsel %vm8744_vm10, %v1633_v35, %v1634_v30  ;;  %v11153_v26 = vld [vmem:[#allocation18_spill] sm:$0xff]  ;;  %v8060_v39 = vld [vmem:[#allocation3 + $0x764] ss:$36 sps:$4 sm:$0xff]   ;;  %v1503_v59 = vrot.slane %v1500_v1, 4 }
 0x1c0   : > { %5592 = vmatprep.mubr.bf16.mxu0 %v8052_v49  ;;  %v5396_v29 = vpop.f32.mrf.mxu0  ;;  %v5141_v4 = vpop.f32.mrf.mxu1  ;;  %v1637_v49 = vrot.slane %v11153_v26, 7  ;;  %1661 = vst [vmem:[#allocation3 + $0x3e4] sm:$0xff] %v1635_v23 }
 0x1c1   : > { %11151 = vst [vmem:[#allocation31_spill] sm:$0xff] %v10148_v43  ;;  %v5142_v16 = vadd.f32 %v5141_v4, %v4878_v27  ;;  %1523 = vst [vmem:[#allocation3 + $0x3c8] sm:$0x1] %v1503_v59  ;;  %v8148_v27 = vld [vmem:[#allocation3 + $0x48c] sm:$0xff]  ;;  %v11157_v59 = vld [vmem:[#allocation19_spill] sm:$0xff] }
 0x1c2   : > { %v5397_v48 = vpop.f32.mrf.mxu0  ;;  %v5143_v29 = vpop.f32.mrf.mxu1  ;;  %v1638_v33 = vsel %vm8744_vm10, %v1636_v45, %v1637_v49  ;;  %v1640_v4 = vrot.slane %v8148_v27, 7  ;;  %v1639_v45 = vrot.slane %v1634_v30, 4  ;;  %v8055_v27 = vld [vmem:[#allocation3 + $0x7a0] ss:$36 sps:$4 sm:$0xff]  }
 0x1c3   : > { %v10156_v50 = vadd.f32 %v5397_v48, %v5134_v60  ;;  %1662 = vst [vmem:[#allocation3 + $0x3ec] sm:$0xf] %v1638_v33  ;;  %v2925_v60 = vld [vmem:[#allocation3 + $0x7e8] sm:$0x11]  ;;  %v1643_v33 = vrot.slane %v11157_v59, 7 }
 0x1c4   : > { %v5399_v54 = vpop.f32.mrf.mxu0  ;;  %v5146_v35 = vpop.f32.mrf.mxu1  ;;  %v1645_v29 = vrot.slane %v1640_v4, 4 }
 0x1c5   : > { %11154 = vst [vmem:[#allocation43_spill] sm:$0xff] %v10156_v50  ;;  %v5147_v48 = vadd.f32 %v5146_v35, %v4883_v9  ;;  %v11156_v54 = vld [vmem:[#allocation20_spill] sm:$0xff] }
 0x1c6   : > { %5337 = vmatmul.mubr.bf16.gmra.mxu1 %v8047_v52  ;;  %v5402_v41 = vpop.f32.mrf.mxu0  ;;  %v5148_v1 = vpop.f32.mrf.mxu1  ;;  %v1646_v12 = vrot.slane %v11156_v54, 7  ;;  %v4886_v52 = vadd.f32 %v10110_v25, %v9906_v51  ;;  %v8058_v9 = vld [vmem:[#allocation3 + $0x760] ss:$36 sps:$4 sm:$0xff]  }
 0x1c7   : > { %5593 = vmatmul.mubr.bf16.gmra.mxu0 %v8050_v42  ;;  %v10162_v23 = vadd.f32 %v5402_v41, %v5139_v57  ;;  %5344 = vmatprep.mubr.bf16.mxu1 %v8057_v44  ;;  %v7168_v42 = vcombine.high %v2925_v60, %v2925_v60  ;;  %v10170_v57 = vsel %vm8744_vm10, %v1639_v45, %v1640_v4  ;;  %v1642_v44 = vrot.slane %v1637_v49, 4  ;;  %v8065_v1 = vld [vmem:[#allocation3 + $0x7ac] ss:$36 sps:$4 sm:$0xff]   ;;  %v8075_v4 = vld [vmem:[#allocation3 + $0x20] ss:$36 sps:$4 sm:$0xff]  }
 0x1c8   : > { %5600 = vmatprep.mubr.bf16.mxu0 %v8060_v39  ;;  %v5404_v26 = vpop.f32.mrf.mxu0  ;;  %v5149_v50 = vpop.f32.mrf.mxu1  ;;  %v10174_v30 = vsel %vm8744_vm10, %v1645_v29, %v1646_v12  ;;  %v1648_v39 = vrot.slane %v1643_v33, 4  ;;  %v4891_v49 = vadd.f32 %v10110_v25, %v9911_v6  ;;  %v4894_v6 = vadd.f32 %v10110_v25, %v9915_v38 }
 0x1c9   : > { %11155 = vst [vmem:[#allocation18_spill] sm:$0xff] %v10162_v23  ;;  %v5150_v35 = vadd.f32 %v5149_v50, %v4886_v52  ;;  %v11158_v26 = vld [vmem:[#allocation25_spill] sm:$0xff]  ;;  %v1644_v45 = vsel %vm8744_vm10, %v1642_v44, %v1643_v33  ;;  %v2926_v33 = vld [vmem:[#allocation3 + $0x7f0] sm:$0x11] }
 0x1ca   : > { %v5405_v43 = vpop.f32.mrf.mxu0  ;;  %v1649_v54 = vrot.slane %v11158_v26, 7  ;;  %v5151_v59 = vpop.f32.mrf.mxu1  ;;  %1664 = vst [vmem:[#allocation3 + $0x410] sm:$0xf] %v1644_v45 }
 0x1cb   : > { %v10176_v41 = vadd.f32 %v5405_v43, %v5142_v16  ;;  %v11159_v59 = vld [vmem:[#allocation36_spill] sm:$0xff] }
 0x1cc   : > { %v5407_v23 = vpop.f32.mrf.mxu0  ;;  %v1650_v43 = vsel %vm8744_vm10, %v1648_v39, %v1649_v54  ;;  %v5154_v16 = vpop.f32.mrf.mxu1  ;;  %v7167_v39 = vcombine.low %v2925_v60, %v2925_v60  ;;  %v8063_v54 = vld [vmem:[#allocation3 + $0x7a8] ss:$36 sps:$4 sm:$0xff]  }
 0x1cd   : > { %1666 = vst [vmem:[#allocation3 + $0x434] sm:$0xf] %v1650_v43  ;;  %v5155_v29 = vadd.f32 %v5154_v16, %v4891_v49  ;;  %v7170_v49 = vcombine.high %v2926_v33, %v2926_v33 }
 0x1ce   : > { %5345 = vmatmul.mubr.bf16.gmra.mxu1 %v8055_v27  ;;  %v5410_v50 = vpop.f32.mrf.mxu0  ;;  %v5156_v12 = vpop.f32.mrf.mxu1  ;;  %v1943_v27 = vrot.slane %v11159_v59, 5  ;;  %v8069_v59 = vld [vmem:[#allocation3 + $0x18] ss:$36 sps:$4 sm:$0xff]  }
 0x1cf   : > { %5601 = vmatmul.mubr.bf16.gmra.mxu0 %v8058_v9  ;;  %v10189_v23 = vadd.f32 %v5410_v50, %v5147_v48  ;;  %5352 = vmatprep.mubr.bf16.mxu1 %v7168_v42  ;;  %v8071_v48 = vld [vmem:[#allocation3 + $0x1c] ss:$36 sps:$4 sm:$0xff]  }
 0x1d0   : > { %5608 = vmatprep.mubr.bf16.mxu0 %v8065_v1  ;;  %v5412_v52 = vpop.f32.mrf.mxu0  ;;  %v5157_v44 = vpop.f32.mrf.mxu1  ;;  %1975 = vst [vmem:[#allocation3 + $0x4bc] sm:$0x88] %v1943_v27  ;;  %v4899_v1 = vadd.f32 %v10110_v25, %v9920_v40 }
 0x1d1   : > { %v5158_v45 = vadd.f32 %v5157_v44, %v4894_v6  ;;  %v4902_v52 = vadd.f32 %v10110_v25, %v9928_v17  ;;  %v1945_v17 = vrot.slane %v1943_v27, 4  ;;  %v4910_v27 = vadd.f32 %v10110_v25, %v9954_v0 }
 0x1d2   : > { %v5413_v26 = vpop.f32.mrf.mxu0  ;;  %v5159_v43 = vpop.f32.mrf.mxu1 }
 0x1d3   : > { %v10194_v9 = vadd.f32 %v5413_v26, %v5150_v35  ;;  %v7169_v26 = vcombine.low %v2926_v33, %v2926_v33 }
 0x1d4   : > { %v5415_v42 = vpop.f32.mrf.mxu0  ;;  %v5162_v16 = vpop.f32.mrf.mxu1 }
 0x1d5   : > { %v5163_v50 = vadd.f32 %v5162_v16, %v4899_v1  ;;  %v11162_v42 = vld [vmem:[#allocation30_spill] sm:$0xff] }
 0x1d6   : > { %5353 = vmatmul.mubr.bf16.gmra.mxu1 %v7167_v39  ;;  %v5418_v38 = vpop.f32.mrf.mxu0  ;;  %v5164_v12 = vpop.f32.mrf.mxu1  ;;  %v8074_v39 = vld [vmem:[#allocation3 + $0x64] ss:$36 sps:$4 sm:$0xff]  }
 0x1d7   : > { %5609 = vmatmul.mubr.bf16.gmra.mxu0 %v8063_v54  ;;  %v10198_v60 = vadd.f32 %v5418_v38, %v5155_v29  ;;  %5656 = vmatprep.mubr.bf16.mxu1 %v8071_v48  ;;  %v1944_v54 = vrot.slane %v11162_v42, 5  ;;  %v11163_v38 = vld [vmem:[#allocation37_spill] sm:$0xff] }
 0x1d8   : > { %5616 = vmatprep.mubr.bf16.mxu0 %v7170_v49  ;;  %v5420_v35 = vpop.f32.mrf.mxu0  ;;  %v5165_v6 = vpop.f32.mrf.mxu1  ;;  %v4907_v49 = vadd.f32 %v10110_v25, %v9949_v63  ;;  %v1946_v33 = vrot.slane %v11163_v38, 5  ;;  %v8072_v38 = vld [vmem:[#allocation3 + $0x60] ss:$36 sps:$4 sm:$0xff]  }
 0x1d9   : > { %11160 = vst [vmem:[#allocation20_spill] sm:$0xff] %v10198_v60  ;;  %v5166_v43 = vadd.f32 %v5165_v6, %v4902_v52  ;;  %1976 = vst [vmem:[#allocation3 + $0x4c4] sm:$0x8] %v1944_v54  ;;  %v11166_v52 = vld [vmem:[#allocation39_spill] sm:$0xff] }
 0x1da   : > { %v5421_v44 = vpop.f32.mrf.mxu0  ;;  %v5167_v1 = vpop.f32.mrf.mxu1  ;;  %v1958_v6 = vrot.slane %v11166_v52, 5  ;;  %v1951_v42 = vrot.slane %v1946_v33, 4  ;;  %v10219_v52 = vsel %vm8527_vm4, %v1945_v17, %v1946_v33  ;;  %v11172_v17 = vld [vmem:[#allocation35_spill] sm:$0xff] }
 0x1db   : > { %v10202_v40 = vadd.f32 %v5421_v44, %v5158_v45  ;;  %v11165_v45 = vmov 0.0   ;;  %v11167_v1 = vld [vmem:[#allocation38_spill] sm:$0xff]  ;;  %v2087_v0 = vrot.slane %v11172_v17, 6 }
 0x1dc   : > { %v5423_v29 = vpop.f32.mrf.mxu0  ;;  %v5170_v48 = vpop.f32.mrf.mxu1  ;;  %v11174_v17 = vld [vmem:[#allocation46_spill] sm:$0xff] }
 0x1dd   : > { %11161 = vst [vmem:[#allocation19_spill] sm:$0xff] %v10202_v40  ;;  %v5171_v12 = vadd.f32 %v5170_v48, %v4907_v49  ;;  %v1952_v29 = vrot.slane %v11167_v1, 5  ;;  %v1963_v49 = vrot.slane %v1958_v6, 4  ;;  %2119 = vst [vmem:[#allocation3 + $0x554] sm:$0xc] %v2087_v0 }
 0x1de   : > { %v5426_v16 = vpop.f32.mrf.mxu0  ;;  %5657 = vmatmul.mubr.bf16.vlgmr.msra.gmra.mxu1 %v8069_v59  ;;  %v5172_v44 = vpop.f32.mrf.mxu1 }
 0x1df   : > { %5617 = vmatmul.mubr.bf16.gmra.mxu0 %v7169_v26  ;;  %v10208_v35 = vadd.f32 %v5426_v16, %v5163_v50  ;;  %5664 = vmatprep.mubr.bf16.mxu1 %v8074_v39  ;;  %v11168_v26 = vld [vmem:[#allocation33_spill] sm:$0xff]  ;;  %v8149_v50 = vld [vmem:[#allocation3 + $0x654] sm:$0xff]  ;;  %v10223_v44 = vsel %vm8527_vm4, %v1951_v42, %v1952_v29  ;;  %1983 = vst [vmem:[#allocation3 + $0x54c] sm:$0x33] %v1963_v49 }
 0x1e0   : > { %7584 = vmatprep.mubr.msk.bf16.mxu0 %vm8271_vm12, %v11165_v45  ;;  %v5428_v63 = vpop.f32.mrf.mxu0  ;;  %v1949_v59 = vrot.slane %v11168_v26, 5  ;;  %v2086_v48 = vrot.slane %v8149_v50, 6  ;;  %v5173_v39 = vpop.f32.mrf.mxu1  ;;  %v11169_v50 = vld [vmem:[#allocation27_spill] sm:$0xff]  ;;  %v11170_v49 = vcombine.high %v9934_v13, %v9938_v14 }
 0x1e1   : > { %11164 = vst [vmem:[#allocation25_spill] sm:$0xff] %v10208_v35  ;;  %v1948_v63 = vrot.slane %v1944_v54, 4  ;;  %v5174_v26 = vadd.f32 %v5173_v39, %v4910_v27  ;;  %v1955_v35 = vrot.slane %v11169_v50, 5  ;;  %v4915_v54 = vadd.f32 %v10110_v25, %v9966_v5  ;;  %v10245_v39 = vld [vmem:[#allocation3 + $0x114] sm:$0xff]  ;;  %v8076_v50 = vld [vmem:[#allocation3 + $0x68] ss:$36 sps:$4 sm:$0xff]  }
 0x1e2   : > { %v5429_v16 = vpop.f32.mrf.mxu0  ;;  %v1954_v1 = vrot.slane %v1949_v59, 4  ;;  %2118 = vst [vmem:[#allocation3 + $0x54c] sm:$0xcc] %v2086_v48  ;;  %v5175_v40 = vpop.f32.mrf.mxu1 }
 0x1e3   : > { %v10225_v51 = vadd.f32 %v5429_v16, %v5166_v43  ;;  %v1950_v33 = vsel %vm8527_vm4, %v1948_v63, %v1949_v59  ;;  %v1957_v16 = vrot.slane %v1952_v29, 4 }
 0x1e4   : > { %v5431_v60 = vpop.f32.mrf.mxu0  ;;  %v1956_v43 = vsel %vm8527_vm4, %v1954_v1, %v1955_v35  ;;  %1978 = vst [vmem:[#allocation3 + $0x4e8] sm:$0xf] %v1950_v33 }
 0x1e5   : > { %v5178_v42 = vpop.f32.mrf.mxu1  ;;  %1980 = vst [vmem:[#allocation3 + $0x50c] sm:$0xf] %v1956_v43  ;;  %v10252_v33 = vsel %vm8527_vm4, %v1957_v16, %v1958_v6  ;;  %v4923_v6 = vadd.f32 %v10110_v25, %v9993_v21  ;;  %v2088_v16 = vrot.slane %v2086_v48, 4  ;;  %v2101_v21 = vrot.slane %v11174_v17, 6  ;;  %v8152_v48 = vld [vmem:[#allocation3 + $0xf0] sm:$0xff] }
 0x1e6   : > { %v5434_v27 = vpop.f32.mrf.mxu0  ;;  %5665 = vmatmul.mubr.bf16.gmra.mxu1 %v8072_v38  ;;  %v5179_v40 = vadd.f32 %v5178_v42, %v4915_v54  ;;  %v4918_v38 = vadd.f32 %v10110_v25, %v9972_v10  ;;  %v1960_v54 = vrot.slane %v1955_v35, 4  ;;  %v2091_v17 = vrot.slane %v2087_v0, 4 }
 0x1e7   : > { %7585 = vmatmul.mubr.bf16.vlgmr.msra.gmra.mxu0 %v8075_v4  ;;  %v10238_v60 = vadd.f32 %v5434_v27, %v5171_v12  ;;  %5672 = vmatprep.mubr.bf16.mxu1 %v11170_v49  ;;  %v5180_v5 = vpop.f32.mrf.mxu1  ;;  %v11171_v4 = vld [vmem:[#allocation23_spill] sm:$0xff]  ;;  %v6947_v27 = vcombine.high %v9960_v2, %v10245_v39  ;;  %v11173_v2 = vcombine.low %v9934_v13, %v9938_v14 }
 0x1e8   : > { %7588 = vmatprep.mubr.msk.bf16.mxu0 %vm8271_vm12, %v11165_v45  ;;  %v5436_v59 = vpop.f32.mrf.mxu0  ;;  %v1961_v63 = vrot.slane %v11171_v4, 5  ;;  %v8150_v49 = vld [vmem:[#allocation3 + $0x678] sm:$0xff]  ;;  %v4926_v14 = vadd.f32 %v10110_v25, %v9998_v19  ;;  %v4931_v0 = vadd.f32 %v10110_v25, %v10010_v18 }
 0x1e9   : > { %v5181_v1 = vpop.f32.mrf.mxu1  ;;  %v2089_v5 = vrot.slane %v8150_v49, 6 }
 0x1ea   : > { %v5437_v12 = vpop.f32.mrf.mxu0  ;;  %v5182_v43 = vadd.f32 %v5181_v1, %v4918_v38  ;;  %v1964_v29 = vrot.slane %v1961_v63, 4  ;;  %v1962_v4 = vsel %vm8527_vm4, %v1960_v54, %v1961_v63 }
 0x1eb   : > { %v10254_v42 = vadd.f32 %v5437_v12, %v5174_v26  ;;  %v5183_v10 = vpop.f32.mrf.mxu1  ;;  %1982 = vst [vmem:[#allocation3 + $0x530] sm:$0xf] %v1962_v4  ;;  %v2094_v54 = vrot.slane %v2089_v5, 4 }
 0x1ec   : > { %v5439_v59 = vpop.f32.mrf.mxu0  ;;  %1984 = vst [vmem:[#allocation3 + $0x554] sm:$0x3] %v1964_v29  ;;  %v8151_v29 = vld [vmem:[#allocation3 + $0x69c] sm:$0xff] }
 0x1ed   : > { %v5186_v35 = vpop.f32.mrf.mxu1  ;;  %v2095_v49 = vrot.slane %v8151_v29, 6  ;;  %v11175_v10 = vld [vmem:[#allocation32_spill] sm:$0xff] }
 0x1ee   : > { %v5442_v26 = vpop.f32.mrf.mxu0  ;;  %5673 = vmatmul.mubr.bf16.gmra.mxu1 %v11173_v2  ;;  %v5187_v38 = vadd.f32 %v5186_v35, %v4923_v6  ;;  %v2092_v13 = vrot.slane %v11175_v10, 6  ;;  %v8077_v35 = vld [vmem:[#allocation3 + $0xb0] ss:$36 sps:$4 sm:$0xff]   ;;  %v11176_v29 = vld [vmem:[#allocation24_spill] sm:$0xff] }
 0x1ef   : > { %7589 = vmatmul.mubr.bf16.gmra.mxu0 %v8076_v50  ;;  %v10266_v1 = vadd.f32 %v5442_v26, %v5179_v40  ;;  %5680 = vmatprep.mubr.bf16.mxu1 %v6947_v27  ;;  %v5188_v63 = vpop.f32.mrf.mxu1  ;;  %v6946_v40 = vcombine.low %v8152_v48, %v10245_v39  ;;  %v2106_v50 = vrot.slane %v2101_v21, 4  ;;  %v8153_v27 = vld [vmem:[#allocation3 + $0x660] sm:$0xff]  ;;  %v10277_v26 = vsel %vm8625_vm7, %v2088_v16, %v2089_v5 }
 0x1f0   : > { %7592 = vmatprep.mubr.msk.bf16.mxu0 %vm8271_vm12, %v11165_v45  ;;  %v5444_v12 = vpop.f32.mrf.mxu0  ;;  %v2235_v59 = vrot.slane %v8153_v27, 7  ;;  %v10281_v2 = vsel %vm8625_vm7, %v2094_v54, %v2095_v49  ;;  %v2097_v63 = vrot.slane %v2092_v13, 4  ;;  %v2098_v10 = vrot.slane %v11176_v29, 6 }
 0x1f1   : > { %v5189_v4 = vpop.f32.mrf.mxu1  ;;  %2126 = vst [vmem:[#allocation3 + $0x5dc] sm:$0x11] %v2106_v50  ;;  %v2093_v16 = vsel %vm8625_vm7, %v2091_v17, %v2092_v13  ;;  %v2702_v17 = vld [vmem:[#allocation3 + $0x1a4] sm:$0xff]  ;;  %v4934_v29 = vadd.f32 %v10110_v25, %v10015_v24  ;;  %v4939_v5 = vadd.f32 %v10110_v25, %v10036_v58 }
 0x1f2   : > { %v5445_v6 = vpop.f32.mrf.mxu0  ;;  %v5190_v19 = vadd.f32 %v5189_v4, %v4926_v14  ;;  %2263 = vst [vmem:[#allocation3 + $0x5dc] sm:$0xee] %v2235_v59  ;;  %2121 = vst [vmem:[#allocation3 + $0x578] sm:$0xf] %v2093_v16 }
 0x1f3   : > { %v10283_v12 = vadd.f32 %v5445_v6, %v5182_v43  ;;  %v5191_v48 = vpop.f32.mrf.mxu1  ;;  %v2099_v43 = vsel %vm8625_vm7, %v2097_v63, %v2098_v10  ;;  %v11177_v6 = vcombine.high %v9978_v8, %v9982_v37  ;;  %v2100_v63 = vrot.slane %v2095_v49, 4 }
 0x1f4   : > { %v5447_v27 = vpop.f32.mrf.mxu0  ;;  %2123 = vst [vmem:[#allocation3 + $0x59c] sm:$0xf] %v2099_v43 }
 0x1f5   : > { %v5194_v54 = vpop.f32.mrf.mxu1  ;;  %v10308_v16 = vsel %vm8625_vm7, %v2100_v63, %v2101_v21  ;;  %v8154_v63 = vld [vmem:[#allocation3 + $0x684] sm:$0xff] }
 0x1f6   : > { %v5450_v14 = vpop.f32.mrf.mxu0  ;;  %5681 = vmatmul.mubr.bf16.gmra.mxu1 %v6946_v40  ;;  %v5195_v50 = vadd.f32 %v5194_v54, %v4931_v0  ;;  %v11178_v40 = vld [vmem:[#allocation34_spill] sm:$0xff]  ;;  %v2103_v0 = vrot.slane %v2098_v10, 4 }
 0x1f7   : > { %7593 = vmatmul.mubr.bf16.gmra.mxu0 %v8077_v35  ;;  %v10296_v4 = vadd.f32 %v5450_v14, %v5187_v38  ;;  %5688 = vmatprep.mubr.bf16.mxu1 %v11177_v6  ;;  %v5196_v18 = vpop.f32.mrf.mxu1  ;;  %v2104_v35 = vrot.slane %v11178_v40, 6  ;;  %v8078_v38 = vld [vmem:[#allocation3 + $0xf8] ss:$36 sps:$4 sm:$0xff]   ;;  %v6965_v14 = vcombine.high %v10004_v15, %v2702_v17  ;;  %v2237_v15 = vrot.slane %v2235_v59, 4  ;;  %v8156_v59 = vld [vmem:[#allocation3 + $0x180] sm:$0xff] }
 0x1f8   : > { %7596 = vmatprep.mubr.msk.bf16.mxu0 %vm8271_vm12, %v11165_v45  ;;  %v5452_v13 = vpop.f32.mrf.mxu0 }
 0x1f9   : > { %v5197_v48 = vpop.f32.mrf.mxu1  ;;  %v2107_v6 = vrot.slane %v2104_v35, 4  ;;  %v2105_v24 = vsel %vm8625_vm7, %v2103_v0, %v2104_v35  ;;  %v11179_v13 = vld [vmem:[#allocation44_spill] sm:$0xff] }
 0x1fa   : > { %v5453_v27 = vpop.f32.mrf.mxu0  ;;  %v5198_v43 = vadd.f32 %v5197_v48, %v4934_v29  ;;  %v2236_v40 = vrot.slane %v11179_v13, 7  ;;  %2125 = vst [vmem:[#allocation3 + $0x5c0] sm:$0xf] %v2105_v24  ;;  %v2238_v29 = vrot.slane %v8154_v63, 7 }
 0x1fb   : > { %v10310_v54 = vadd.f32 %v5453_v27, %v5190_v19  ;;  %v5199_v49 = vpop.f32.mrf.mxu1  ;;  %2127 = vst [vmem:[#allocation3 + $0x5e4] sm:$0x1] %v2107_v6  ;;  %v11180_v19 = vcombine.low %v9978_v8, %v9982_v37  ;;  %v8155_v6 = vld [vmem:[#allocation3 + $0x6a8] sm:$0xff]  ;;  %v4942_v37 = vadd.f32 %v10110_v25, %v10041_v11 }
 0x1fc   : > { %v5455_v18 = vpop.f32.mrf.mxu0  ;;  %2264 = vst [vmem:[#allocation3 + $0x5e4] sm:$0xe] %v2236_v40  ;;  %v2243_v0 = vrot.slane %v2238_v29, 4  ;;  %v2244_v49 = vrot.slane %v8155_v6, 7 }
 0x1fd   : > { %v11182_v18 = vld [vmem:[#allocation48_spill] sm:$0xff] }
 0x1fe   : > { %v5202_v21 = vpop.f32.mrf.mxu1  ;;  %v5458_v10 = vpop.f32.mrf.mxu0  ;;  %5689 = vmatmul.mubr.bf16.gmra.mxu1 %v11180_v19  ;;  %v2241_v8 = vrot.slane %v11182_v18, 7  ;;  %v10334_v13 = vsel %vm8744_vm10, %v2243_v0, %v2244_v49 }
 0x1ff   : > { %7597 = vmatmul.mubr.bf16.gmra.mxu0 %v8078_v38  ;;  %v5203_v48 = vadd.f32 %v5202_v21, %v4939_v5  ;;  %v10321_v35 = vadd.f32 %v5458_v10, %v5195_v50  ;;  %5696 = vmatprep.mubr.bf16.mxu1 %v6965_v14  ;;  %v6964_v38 = vcombine.low %v8156_v59, %v2702_v17  ;;  %v8079_v50 = vld [vmem:[#allocation3 + $0x140] ss:$36 sps:$4 sm:$0xff]   ;;  %v2240_v21 = vrot.slane %v2236_v40, 4  ;;  %v11184_v17 = vld [vmem:[#allocation42_spill] sm:$0xff] }
 0x200   : > { %7600 = vmatprep.mubr.msk.bf16.mxu0 %vm8271_vm12, %v11165_v45  ;;  %v5204_v58 = vpop.f32.mrf.mxu1  ;;  %v5460_v27 = vpop.f32.mrf.mxu0  ;;  %v10330_v14 = vsel %vm8744_vm10, %v2237_v15, %v2238_v29  ;;  %v2246_v10 = vrot.slane %v2241_v8, 4  ;;  %v4947_v40 = vadd.f32 %v10110_v25, %v10050_v36 }
 0x201   : > { %11181 = vst [vmem:[#allocation36_spill] sm:$0xff] %v10321_v35  ;;  %v2247_v58 = vrot.slane %v11184_v17, 7  ;;  %v2242_v29 = vsel %vm8744_vm10, %v2240_v21, %v2241_v8  ;;  %v2249_v21 = vrot.slane %v2244_v49, 4 }
 0x202   : > { %v5205_v24 = vpop.f32.mrf.mxu1  ;;  %v5461_v5 = vpop.f32.mrf.mxu0  ;;  %2266 = vst [vmem:[#allocation3 + $0x608] sm:$0xf] %v2242_v29 }
 0x203   : > { %v5206_v19 = vadd.f32 %v5205_v24, %v4942_v37  ;;  %v10336_v63 = vadd.f32 %v5461_v5, %v5198_v43  ;;  %v2248_v43 = vsel %vm8744_vm10, %v2246_v10, %v2247_v58  ;;  %v11186_v24 = vcombine.high %v10021_v7, %v10025_v22  ;;  %v2722_v5 = vld [vmem:[#allocation3 + $0x234] sm:$0xff]  ;;  %v11187_v10 = vld [vmem:[#allocation50_spill] sm:$0xff] }
 0x204   : > { %v5207_v27 = vpop.f32.mrf.mxu1  ;;  %v5463_v6 = vpop.f32.mrf.mxu0  ;;  %2268 = vst [vmem:[#allocation3 + $0x62c] sm:$0xf] %v2248_v43  ;;  %v2250_v17 = vrot.slane %v11187_v10, 7  ;;  %v2252_v29 = vrot.slane %v2247_v58, 4  ;;  %v4955_v10 = vadd.f32 %v10110_v25, %v10059_v61  ;;  %v11190_v58 = vcombine.low %v10021_v7, %v10025_v22  ;;  %v8081_v7 = vld [vmem:[#allocation3 + $0x1d0] ss:$36 sps:$4 sm:$0xff]  }
 0x205   : > { %11183 = vst [vmem:[#allocation30_spill] sm:$0xff] %v10336_v63  ;;  %v4958_v61 = vadd.f32 %v10110_v25, %v10065_v34 }
 0x206   : > { %v5210_v0 = vpop.f32.mrf.mxu1  ;;  %5697 = vmatmul.mubr.bf16.gmra.mxu1 %v6964_v38  ;;  %v4950_v38 = vadd.f32 %v10110_v25, %v10055_v47  ;;  %v10361_v6 = vsel %vm8744_vm10, %v2249_v21, %v2250_v17 }
 0x207   : > { %v5466_v18 = vpop.f32.mrf.mxu0  ;;  %7601 = vmatmul.mubr.bf16.gmra.mxu0 %v8079_v50  ;;  %v5211_v37 = vadd.f32 %v5210_v0, %v4947_v40  ;;  %5704 = vmatprep.mubr.bf16.mxu1 %v11186_v24  ;;  %v11188_v40 = vld [vmem:[#allocation53_spill] sm:$0xff]  ;;  %v8157_v24 = vld [vmem:[#allocation3 + $0x210] sm:$0xff] }
 0x208   : > { %v10349_v59 = vadd.f32 %v5466_v18, %v5203_v48  ;;  %7604 = vmatprep.mubr.msk.bf16.mxu0 %vm8271_vm12, %v11165_v45  ;;  %v5212_v36 = vpop.f32.mrf.mxu1  ;;  %v8080_v48 = vld [vmem:[#allocation3 + $0x188] ss:$36 sps:$4 sm:$0xff]   ;;  %v2253_v43 = vrot.slane %v11188_v40, 7  ;;  %v6983_v49 = vcombine.high %v8157_v24, %v2722_v5  ;;  %v6982_v40 = vcombine.low %v8157_v24, %v2722_v5 }
 0x209   : > { %v5468_v8 = vpop.f32.mrf.mxu0 }
 0x20a   : > { %11185 = vst [vmem:[#allocation37_spill] sm:$0xff] %v10349_v59  ;;  %v5213_v50 = vpop.f32.mrf.mxu1  ;;  %v2254_v47 = vsel %vm8744_vm10, %v2252_v29, %v2253_v43 }
 0x20b   : > { %v5469_v27 = vpop.f32.mrf.mxu0  ;;  %v5214_v0 = vadd.f32 %v5213_v50, %v4950_v38  ;;  %2270 = vst [vmem:[#allocation3 + $0x650] sm:$0xf] %v2254_v47  ;;  %v2511_v50 = vrot.slane %v9839_v46, 5 }
 0x20c   : > { %v10364_v18 = vadd.f32 %v5469_v27, %v5206_v19  ;;  %v5215_v36 = vpop.f32.mrf.mxu1 }
 0x20d   : > { %v5471_v8 = vpop.f32.mrf.mxu0  ;;  %2543 = vst [vmem:[#allocation3 + $0x6d8] sm:$0x88] %v2511_v50  ;;  %v10384_v36 = vld [vmem:[#allocation2 + $0x100] sm:$0xf] }
 0x20e   : > { %11189 = vst [vmem:[#allocation39_spill] sm:$0xff] %v10364_v18  ;;  %v5218_v15 = vpop.f32.mrf.mxu1  ;;  %5705 = vmatmul.mubr.bf16.gmra.mxu1 %v11190_v58  ;;  %v10386_v8 = vld [vmem:[#allocation2 + $0x104] sm:$0xf] }
 0x20f   : > { %v5474_v21 = vpop.f32.mrf.mxu0  ;;  %7605 = vmatmul.mubr.bf16.gmra.mxu0 %v8080_v48  ;;  %v5219_v19 = vadd.f32 %v5218_v15, %v4955_v10  ;;  %5712 = vmatprep.mubr.bf16.mxu1 %v6983_v49  ;;  %v8084_v15 = vld [vmem:[#allocation3 + $0x25c] ss:$36 sps:$4 sm:$0xff]   ;;  %v4963_v49 = vadd.f32 %v10110_v25, %v10074_v28  ;;  %v10390_v5 = vcombine.low %v10384_v36, %v10386_v8  ;;  %v10397_v28 = vld [vmem:[#allocation2 + $0x108] sm:$0xf] }
 0x210   : > { %v10373_v17 = vadd.f32 %v5474_v21, %v5211_v37  ;;  %7608 = vmatprep.mubr.msk.bf16.mxu0 %vm8271_vm12, %v11165_v45  ;;  %v5220_v3 = vpop.f32.mrf.mxu1  ;;  %v10399_v10 = vld [vmem:[#allocation2 + $0x10c] sm:$0xf] }
 0x211   : > { %v5476_v38 = vpop.f32.mrf.mxu0  ;;  %v10401_v3 = vld [vmem:[#allocation3 + $0x2a0] sm:$0xff] }
 0x212   : > { %11191 = vst [vmem:[#allocation38_spill] sm:$0xff] %v10373_v17  ;;  %v5221_v27 = vpop.f32.mrf.mxu1  ;;  %v2513_v38 = vrot.slane %v2511_v50, 4  ;;  %v11198_v17 = vrot.slane %v9863_v62, 5 }
 0x213   : > { %v5477_v29 = vpop.f32.mrf.mxu0  ;;  %v5222_v22 = vadd.f32 %v5221_v27, %v4958_v61  ;;  %v11194_v61 = vld [vmem:[#allocation13_spill] sm:$0xff] }
 0x214   : > { %v10380_v48 = vadd.f32 %v5477_v29, %v5214_v0  ;;  %v5223_v37 = vpop.f32.mrf.mxu1  ;;  %v2514_v27 = vrot.slane %v11194_v61, 5  ;;  %v11195_v29 = vld [vmem:[#allocation15_spill] sm:$0xff] }
 0x215   : > { %v5479_v43 = vpop.f32.mrf.mxu0  ;;  %v8082_v37 = vld [vmem:[#allocation3 + $0x258] ss:$36 sps:$4 sm:$0xff]  }
 0x216   : > { %11192 = vst [vmem:[#allocation33_spill] sm:$0xff] %v10380_v48  ;;  %v5226_v34 = vpop.f32.mrf.mxu1  ;;  %5713 = vmatmul.mubr.bf16.gmra.mxu1 %v6982_v40  ;;  %v2512_v40 = vrot.slane %v11195_v29, 5  ;;  %v2571_v43 = vshll.u32 %v10390_v5, 16  ;;  %v10414_v50 = vsel %vm8527_vm4, %v2513_v38, %v2514_v27 }
 0x217   : > { %v5482_v46 = vpop.f32.mrf.mxu0  ;;  %7609 = vmatmul.mubr.bf16.gmra.mxu0 %v8081_v7  ;;  %v5227_v24 = vadd.f32 %v5226_v34, %v4963_v49  ;;  %5720 = vmatprep.mubr.bf16.mxu1 %v8084_v15  ;;  %v11196_v7 = vld [vmem:[#allocation68_spill] sm:$0xff] }
 0x218   : > { %v10393_v47 = vadd.f32 %v5482_v46, %v5219_v19  ;;  %7612 = vmatprep.mubr.msk.bf16.mxu0 %vm8271_vm12, %v11165_v45  ;;  %v5228_v21 = vpop.f32.mrf.mxu1  ;;  %v10407_v19 = vcombine.low %v10397_v28, %v10399_v10  ;;  %v4966_v15 = vadd.f32 %v10110_v25, %v11196_v7  ;;  %v8085_v46 = vld [vmem:[#allocation3 + $0x218] ss:$36 sps:$4 sm:$0xff]   ;;  %2544 = vst [vmem:[#allocation3 + $0x6e0] sm:$0x8] %v2512_v40  ;;  %v8158_v7 = vld [vmem:[#allocation3 + $0x2c4] sm:$0xff]  ;;  %v2573_v0 = vrot.slane %v2571_v43, 1 }
 0x219   : > { %v5484_v58 = vpop.f32.mrf.mxu0  ;;  %v2516_v21 = vrot.slane %v2512_v40, 4  ;;  %v7001_v39 = vcombine.high %v10401_v3, %v8158_v7  ;;  %v4971_v40 = vadd.f32 %v10110_v25, %v10102_v31 }
 0x21a   : > { %11193 = vst [vmem:[#allocation27_spill] sm:$0xff] %v10393_v47  ;;  %v5229_v49 = vpop.f32.mrf.mxu1  ;;  %v2569_v58 = vshrl.u32 %v10390_v5, 16  ;;  %v2576_v61 = vshll.u32 %v10407_v19, 16 }
 0x21b   : > { %v5485_v34 = vpop.f32.mrf.mxu0  ;;  %v5230_v29 = vadd.f32 %v5229_v49, %v4966_v15  ;;  %v2518_v38 = vsel %vm8527_vm4, %v2516_v21, %v11198_v17  ;;  %v11201_v17 = vld [vmem:[#allocation14_spill] sm:$0xff] }
 0x21c   : > { %v10418_v11 = vadd.f32 %v5485_v34, %v5222_v22  ;;  %v5231_v47 = vpop.f32.mrf.mxu1  ;;  %v10425_v18 = vrot.slane %v2576_v61, 1  ;;  %2546 = vst [vmem:[#allocation3 + $0x704] sm:$0xf] %v2518_v38  ;;  %v2574_v15 = vor.u32 %v2573_v0, %v2569_v58  ;;  %v11199_v34 = vld [vmem:[#allocation16_spill] sm:$0xff]  ;;  %v2526_v21 = vrot.slane %v11201_v17, 5 }
 0x21d   : > { %v5487_v48 = vpop.f32.mrf.mxu0  ;;  %v2520_v43 = vrot.slane %v11199_v34, 5  ;;  %v2519_v58 = vrot.slane %v2514_v27, 4  ;;  %v8086_v17 = vld [vmem:[#allocation3 + $0x260] ss:$36 sps:$4 sm:$0xff]  }
 0x21e   : > { %11197 = vst [vmem:[#allocation23_spill] sm:$0xff] %v10418_v11  ;;  %v5234_v22 = vpop.f32.mrf.mxu1  ;;  %5721 = vmatmul.mubr.bf16.gmra.mxu1 %v8082_v37  ;;  %v2579_v31 = vsel %vm291_vm0, %v2574_v15, %v10425_v18  ;;  %v11212_v11 = vld [vmem:[#allocation21_spill] sm:$0xff] }
 0x21f   : > { %v5490_v49 = vpop.f32.mrf.mxu0  ;;  %7613 = vmatmul.mubr.bf16.gmra.mxu0 %v8085_v46  ;;  %v5235_v47 = vadd.f32 %v5234_v22, %v4971_v40  ;;  %5728 = vmatprep.mubr.bf16.mxu1 %v7001_v39  ;;  %v2525_v38 = vrot.slane %v2520_v43, 4  ;;  %v6902_v37 = vcombine.low %v10384_v36, %v2579_v31  ;;  %v11202_v46 = vld [vmem:[#allocation17_spill] sm:$0xff]  ;;  %v7000_v39 = vcombine.low %v10401_v3, %v8158_v7 }
 0x220   : > { %v10430_v48 = vadd.f32 %v5490_v49, %v5227_v24  ;;  %7616 = vmatprep.mubr.msk.bf16.mxu0 %vm8271_vm12, %v11165_v45  ;;  %v5236_v61 = vpop.f32.mrf.mxu1  ;;  %v2523_v34 = vrot.slane %v11202_v46, 5  ;;  %v4974_v24 = vadd.f32 %v10110_v25, %v10112_v20  ;;  %v2531_v40 = vrot.slane %v2526_v21, 4 }
 0x221   : > { %v5492_v0 = vpop.f32.mrf.mxu0  ;;  %v10444_v15 = vsel %vm8527_vm4, %v2519_v58, %v2520_v43  ;;  %v10448_v27 = vsel %vm8527_vm4, %v2525_v38, %v2526_v21  ;;  %v2602_v36 = vrot.slane %v6902_v37, 6  ;;  %v11203_v61 = vrot.slane %v9863_v62, 5  ;;  %v11205_v38 = vld [vmem:[#allocation22_spill] sm:$0xff] }
 0x222   : > { %11200 = vst [vmem:[#allocation35_spill] sm:$0xff] %v10430_v48  ;;  %v5237_v22 = vpop.f32.mrf.mxu1  ;;  %2551 = vst [vmem:[#allocation3 + $0x768] sm:$0x33] %v2531_v40  ;;  %v2583_v3 = vrot.slane %v10390_v5, 1  ;;  %v2528_v62 = vrot.slane %v2523_v34, 4  ;;  %v2529_v37 = vrot.slane %v11205_v38, 5 }
 0x223   : > { %v5493_v49 = vpop.f32.mrf.mxu0  ;;  %v2522_v0 = vrot.slane %v11203_v61, 4  ;;  %v5238_v46 = vadd.f32 %v5237_v22, %v4974_v24  ;;  %2634 = vst [vmem:[#allocation3 + $0x768] sm:$0xcc] %v2602_v36  ;;  %v11206_v24 = vld [vmem:[#allocation73_spill] sm:$0xff]  ;;  %v10470_v40 = vrot.slane %v10407_v19, 1  ;;  %v2604_v32 = vrot.slane %v2602_v36, 4 }
 0x224   : > { %v10452_v25 = vadd.f32 %v5493_v49, %v5230_v29  ;;  %v5239_v7 = vpop.f32.mrf.mxu1  ;;  %v10465_v29 = vld [vmem:[%s10892_s2] ss:$0 sm:$0xff]  ;;  %v8160_v48 = vld [vmem:[#allocation3 + $0x354] sm:$0xff] }
 0x225   : > { %v5495_v43 = vpop.f32.mrf.mxu0  ;;  %v2524_v21 = vsel %vm8527_vm4, %v2522_v0, %v2523_v34  ;;  %v4979_v5 = vadd.f32 %v10465_v29, %v11206_v24  ;;  %v2530_v34 = vsel %vm8527_vm4, %v2528_v62, %v2529_v37  ;;  %v11208_v7 = vld [vmem:[#allocation70_spill] sm:$0xff]  ;;  %v6905_v24 = vsel %vm6712_vm1, %v10386_v8, %v2579_v31 }
 0x226   : > { %11204 = vst [vmem:[#allocation46_spill] sm:$0xff] %v10452_v25  ;;  %2548 = vst [vmem:[#allocation3 + $0x728] sm:$0xf] %v2524_v21  ;;  %v5242_v22 = vpop.f32.mrf.mxu1  ;;  %5729 = vmatmul.mubr.bf16.gmra.mxu1 %v7000_v39  ;;  %v11209_v43 = vld [vmem:[#allocation71_spill] sm:$0xff]  ;;  %v2605_v62 = vrot.slane %v6905_v24, 6  ;;  %v4987_v59 = vadd.f32 %v10465_v29, %v11212_v11 }
 0x227   : > { %v5498_v49 = vpop.f32.mrf.mxu0  ;;  %7617 = vmatmul.mubr.bf16.gmra.mxu0 %v8086_v17  ;;  %v5243_v61 = vadd.f32 %v5242_v22, %v4979_v5  ;;  %v11210_v38 = vcombine.high %v11208_v7, %v11209_v43  ;;  %v10481_v21 = vld [vmem:[#allocation3 + $0x330] sm:$0xff]  ;;  %2550 = vst [vmem:[#allocation3 + $0x74c] sm:$0xf] %v2530_v34  ;;  %v2585_v5 = vsel %vm307_vm11, %v2583_v3, %v10470_v40  ;;  %v8087_v25 = vld [vmem:[#allocation3 + $0x2a8] ss:$36 sps:$4 sm:$0xff]   ;;  %v2532_v3 = vrot.slane %v2529_v37, 4 }
 0x228   : > { %v10474_v0 = vadd.f32 %v5498_v49, %v5235_v47  ;;  %7620 = vmatprep.mubr.msk.bf16.mxu0 %vm8271_vm12, %v11165_v45  ;;  %v5244_v39 = vpop.f32.mrf.mxu1  ;;  %v2580_v47 = vshrl.u32 %v10407_v19, 16  ;;  %v11211_v22 = vld [vmem:[#allocation74_spill] sm:$0xff]  ;;  %v6906_v58 = vcombine.high %v2585_v5, %v2585_v5  ;;  %v7019_v8 = vcombine.high %v10481_v21, %v8160_v48 }
 0x229   : > { %5736 = vmatprep.mubr.bf16.mxu1 %v11210_v38  ;;  %v5500_v17 = vpop.f32.mrf.mxu0  ;;  %v4982_v49 = vadd.f32 %v10465_v29, %v11211_v22  ;;  %v6903_v38 = vcombine.low %v2585_v5, %v2585_v5  ;;  %v10493_v31 = vsel %vm8625_vm7, %v2604_v32, %v2605_v62  ;;  %2552 = vst [vmem:[#allocation3 + $0x770] sm:$0x3] %v2532_v3  ;;  %v8088_v3 = vld [vmem:[#allocation3 + $0x2f0] ss:$36 sps:$4 sm:$0xff]  }
 0x22a   : > { %11207 = vst [vmem:[#allocation32_spill] sm:$0xff] %v10474_v0  ;;  %v5245_v20 = vpop.f32.mrf.mxu1  ;;  %v2582_v19 = vor.u32 %v2580_v47, %v10425_v18  ;;  %v2608_v22 = vrot.slane %v6906_v58, 6  ;;  %v11213_v18 = vcombine.low %v11208_v7, %v11209_v43  ;;  %v2610_v43 = vrot.slane %v2605_v62, 4 }
 0x22b   : > { %v5501_v0 = vpop.f32.mrf.mxu0  ;;  %v5246_v36 = vadd.f32 %v5245_v20, %v4982_v49  ;;  %v2603_v24 = vrot.slane %v6903_v38, 6 }
 0x22c   : > { %v10496_v34 = vadd.f32 %v5501_v0, %v5238_v46  ;;  %v5247_v39 = vpop.f32.mrf.mxu1  ;;  %v6907_v5 = vcombine.low %v10397_v28, %v2582_v19  ;;  %v6910_v46 = vsel %vm6712_vm1, %v10399_v10, %v2582_v19  ;;  %v6908_v28 = vcombine.low %v10470_v40, %v10470_v40 }
 0x22d   : > { %v5503_v17 = vpop.f32.mrf.mxu0  ;;  %v2607_v63 = vrot.slane %v2603_v24, 4  ;;  %2635 = vst [vmem:[#allocation3 + $0x770] sm:$0xc] %v2603_v24  ;;  %v2617_v11 = vrot.slane %v6910_v46, 6  ;;  %v6911_v10 = vcombine.high %v10470_v40, %v10470_v40  ;;  %v2613_v24 = vrot.slane %v2608_v22, 4 }
 0x22e   : > { %v5250_v32 = vpop.f32.mrf.mxu1  ;;  %5737 = vmatmul.mubr.bf16.gmra.mxu1 %v11213_v18  ;;  %v2611_v20 = vrot.slane %v6907_v5, 6  ;;  %v2614_v49 = vrot.slane %v6908_v28, 6  ;;  %v8105_v18 = vld [vmem:[#allocation3 + $0x608] ss:$36 sps:$4 sm:$0xff]  }
 0x22f   : > { %v5506_v35 = vpop.f32.mrf.mxu0  ;;  %7621 = vmatmul.mubr.bf16.gmra.mxu0 %v8087_v25  ;;  %v5251_v58 = vadd.f32 %v5250_v32, %v4987_v59  ;;  %5744 = vmatprep.mubr.bf16.mxu1 %v7019_v8  ;;  %v2609_v0 = vsel %vm8625_vm7, %v2607_v63, %v2608_v22  ;;  %v11214_v59 = vld [vmem:[#allocation26_spill] sm:$0xff]  ;;  %v2622_v38 = vrot.slane %v2617_v11, 4 }
 0x230   : > { %v10508_v37 = vadd.f32 %v5506_v35, %v5243_v61  ;;  %7624 = vmatprep.mubr.msk.bf16.mxu0 %vm8271_vm12, %v11165_v45  ;;  %v5252_v7 = vpop.f32.mrf.mxu1  ;;  %v2616_v47 = vrot.slane %v2611_v20, 4  ;;  %2637 = vst [vmem:[#allocation3 + $0x794] sm:$0xf] %v2609_v0  ;;  %v4990_v35 = vadd.f32 %v10465_v29, %v11214_v59  ;;  %v7018_v61 = vcombine.low %v10481_v21, %v8160_v48 }
 0x231   : > { %v5508_v25 = vpop.f32.mrf.mxu0  ;;  %v10521_v63 = vsel %vm8625_vm7, %v2610_v43, %v2611_v20  ;;  %v2619_v40 = vrot.slane %v2614_v49, 4  ;;  %2642 = vst [vmem:[#allocation3 + $0x7f8] sm:$0x11] %v2622_v38  ;;  %v2620_v21 = vrot.slane %v6911_v10, 6  ;;  %v2615_v46 = vsel %vm8625_vm7, %v2613_v24, %v2614_v49  ;;  %v11215_v20 = vld [vmem:[#allocation28_spill] sm:$0xff]  ;;  %v11217_v10 = vld [vmem:[#allocation29_spill] sm:$0xff] }
 0x232   : > { %v5253_v8 = vpop.f32.mrf.mxu1  ;;  %v10525_v62 = vsel %vm8625_vm7, %v2616_v47, %v2617_v11  ;;  %v4995_v22 = vadd.f32 %v10465_v29, %v11215_v20  ;;  %2639 = vst [vmem:[#allocation3 + $0x7b8] sm:$0xf] %v2615_v46  ;;  %v11216_v25 = vcombine.high %v10131_v55, %v10135_v56  ;;  %v4998_v49 = vadd.f32 %v10465_v29, %v11217_v10 }
 0x233   : > { %v5509_v19 = vpop.f32.mrf.mxu0  ;;  %v5254_v39 = vadd.f32 %v5253_v8, %v4990_v35 }
 0x234   : > { %v10527_v17 = vadd.f32 %v5509_v19, %v5246_v36  ;;  %v5255_v5 = vpop.f32.mrf.mxu1  ;;  %v2621_v36 = vsel %vm8625_vm7, %v2619_v40, %v2620_v21 }
 0x235   : > { %v5511_v32 = vpop.f32.mrf.mxu0  ;;  %2641 = vst [vmem:[#allocation3 + $0x7dc] sm:$0xf] %v2621_v36  ;;  %v11218_v5 = vld [vmem:[#allocation40_spill] sm:$0xff] }
 0x236   : > { %v5258_v28 = vpop.f32.mrf.mxu1  ;;  %5745 = vmatmul.mubr.bf16.gmra.mxu1 %v7018_v61  ;;  %v8089_v61 = vld [vmem:[#allocation3 + $0x338] ss:$36 sps:$4 sm:$0xff]   ;;  %v5003_v32 = vadd.f32 %v10465_v29, %v11218_v5  ;;  %v11222_v5 = vcombine.high %v10170_v57, %v10174_v30 }
 0x237   : > { %v5514_v11 = vpop.f32.mrf.mxu0  ;;  %7625 = vmatmul.mubr.bf16.gmra.mxu0 %v8088_v3  ;;  %v5259_v0 = vadd.f32 %v5258_v28, %v4995_v22  ;;  %5752 = vmatprep.mubr.bf16.mxu1 %v11216_v25  ;;  %v2623_v3 = vrot.slane %v2620_v21, 4  ;;  %v11219_v22 = vcombine.low %v10131_v55, %v10135_v56 }
 0x238   : > { %v10539_v7 = vadd.f32 %v5514_v11, %v5251_v58  ;;  %7628 = vmatprep.mubr.msk.bf16.mxu0 %vm8271_vm12, %v11165_v45  ;;  %v5260_v43 = vpop.f32.mrf.mxu1  ;;  %v8161_v58 = vld [vmem:[#allocation3 + $0x3e4] sm:$0xff] }
 0x239   : > { %v5516_v47 = vpop.f32.mrf.mxu0  ;;  %v7037_v19 = vcombine.high %v2777_v53, %v8161_v58  ;;  %2643 = vst [vmem:[#allocation3 + $0x800] sm:$0x1] %v2623_v3  ;;  %v11220_v11 = vld [vmem:[#allocation41_spill] sm:$0xff]  ;;  %v7036_v10 = vcombine.low %v2777_v53, %v8161_v58  ;;  %v11223_v58 = vld [vmem:[#allocation47_spill] sm:$0xff] }
 0x23a   : > { %v5261_v59 = vpop.f32.mrf.mxu1  ;;  %v5006_v25 = vadd.f32 %v10465_v29, %v11220_v11 }
 0x23b   : > { %v5517_v35 = vpop.f32.mrf.mxu0  ;;  %v5262_v38 = vadd.f32 %v5261_v59, %v4998_v49  ;;  %v8090_v49 = vld [vmem:[#allocation3 + $0x380] ss:$36 sps:$4 sm:$0xff]  }
 0x23c   : > { %v10548_v8 = vadd.f32 %v5517_v35, %v5254_v39  ;;  %v5263_v24 = vpop.f32.mrf.mxu1 }
 0x23d   : > { %v5519_v40 = vpop.f32.mrf.mxu0 }
 0x23e   : > { %v5266_v46 = vpop.f32.mrf.mxu1  ;;  %5753 = vmatmul.mubr.bf16.gmra.mxu1 %v11219_v22  ;;  %v8091_v22 = vld [vmem:[#allocation3 + $0x3c8] ss:$36 sps:$4 sm:$0xff]  }
 0x23f   : > { %v5522_v20 = vpop.f32.mrf.mxu0  ;;  %7629 = vmatmul.mubr.bf16.gmra.mxu0 %v8089_v61  ;;  %v5267_v36 = vadd.f32 %v5266_v46, %v5003_v32  ;;  %5760 = vmatprep.mubr.bf16.mxu1 %v7037_v19  ;;  %v5014_v32 = vadd.f32 %v10465_v29, %v11223_v58  ;;  %v8095_v58 = vld [vmem:[#allocation3 + $0x410] ss:$36 sps:$4 sm:$0xff]  }
 0x240   : > { %v10555_v28 = vadd.f32 %v5522_v20, %v5259_v0  ;;  %7632 = vmatprep.mubr.msk.bf16.mxu0 %vm8271_vm12, %v11165_v45  ;;  %v5268_v39 = vpop.f32.mrf.mxu1  ;;  %v11221_v0 = vld [vmem:[#allocation45_spill] sm:$0xff] }
 0x241   : > { %v5524_v21 = vpop.f32.mrf.mxu0  ;;  %v5011_v61 = vadd.f32 %v10465_v29, %v11221_v0 }
 0x242   : > { %v5269_v43 = vpop.f32.mrf.mxu1 }
 0x243   : > { %v5525_v47 = vpop.f32.mrf.mxu0  ;;  %v5270_v59 = vadd.f32 %v5269_v43, %v5006_v25  ;;  %v11224_v43 = vld [vmem:[#allocation51_spill] sm:$0xff] }
 0x244   : > { %v10561_v55 = vadd.f32 %v5525_v47, %v5262_v38  ;;  %v5271_v56 = vpop.f32.mrf.mxu1  ;;  %v5019_v47 = vadd.f32 %v10465_v29, %v11224_v43 }
 0x245   : > { %v5527_v35 = vpop.f32.mrf.mxu0  ;;  %v11225_v56 = vcombine.low %v10170_v57, %v10174_v30  ;;  %v8098_v30 = vld [vmem:[#allocation3 + $0x49c] ss:$36 sps:$4 sm:$0xff]  }
 0x246   : > { %v5274_v19 = vpop.f32.mrf.mxu1  ;;  %5761 = vmatmul.mubr.bf16.gmra.mxu1 %v7036_v10 }
 0x247   : > { %v5530_v3 = vpop.f32.mrf.mxu0  ;;  %7633 = vmatmul.mubr.bf16.gmra.mxu0 %v8090_v49  ;;  %v5275_v24 = vadd.f32 %v5274_v19, %v5011_v61  ;;  %5768 = vmatprep.mubr.bf16.mxu1 %v11222_v5  ;;  %v11226_v19 = vld [vmem:[#allocation52_spill] sm:$0xff] }
 0x248   : > { %v10565_v40 = vadd.f32 %v5530_v3, %v5267_v36  ;;  %7636 = vmatprep.mubr.msk.bf16.mxu0 %vm8271_vm12, %v11165_v45  ;;  %v5276_v53 = vpop.f32.mrf.mxu1  ;;  %v8094_v36 = vld [vmem:[#allocation3 + $0x454] ss:$36 sps:$4 sm:$0xff]   ;;  %v5022_v3 = vadd.f32 %v10465_v29, %v11226_v19 }
 0x249   : > { %v5532_v38 = vpop.f32.mrf.mxu0  ;;  %v8099_v19 = vld [vmem:[#allocation3 + $0x458] ss:$36 sps:$4 sm:$0xff]  }
 0x24a   : > { %v5277_v46 = vpop.f32.mrf.mxu1  ;;  %v8092_v38 = vld [vmem:[#allocation3 + $0x450] ss:$36 sps:$4 sm:$0xff]  }
 0x24b   : > { %v5533_v20 = vpop.f32.mrf.mxu0  ;;  %v5278_v39 = vadd.f32 %v5277_v46, %v5014_v32 }
 0x24c   : > { %v10574_v21 = vadd.f32 %v5533_v20, %v5270_v59  ;;  %v5279_v11 = vpop.f32.mrf.mxu1  ;;  %v11227_v20 = vld [vmem:[#allocation54_spill] sm:$0xff] }
 0x24d   : > { %v5535_v25 = vpop.f32.mrf.mxu0 }
 0x24e   : > { %v5282_v10 = vpop.f32.mrf.mxu1  ;;  %5769 = vmatmul.mubr.bf16.gmra.mxu1 %v11225_v56 }
 0x24f   : > { %v5538_v49 = vpop.f32.mrf.mxu0  ;;  %7637 = vmatmul.mubr.bf16.gmra.mxu0 %v8091_v22  ;;  %v5283_v35 = vadd.f32 %v5282_v10, %v5019_v47  ;;  %5776 = vmatprep.mubr.bf16.mxu1 %v8094_v36  ;;  %v5027_v22 = vadd.f32 %v10465_v29, %v11227_v20  ;;  %v11228_v10 = vld [vmem:[#allocation55_spill] sm:$0xff] }
 0x250   : > { %v10581_v0 = vadd.f32 %v5538_v49, %v5275_v24  ;;  %7640 = vmatprep.mubr.msk.bf16.mxu0 %vm8271_vm12, %v11165_v45  ;;  %v5284_v59 = vpop.f32.mrf.mxu1  ;;  %v5030_v49 = vadd.f32 %v10465_v29, %v11228_v10 }
 0x251   : > { %v5540_v61 = vpop.f32.mrf.mxu0 }
 0x252   : > { %v5285_v5 = vpop.f32.mrf.mxu1  ;;  %v8096_v61 = vld [vmem:[#allocation3 + $0x498] ss:$36 sps:$4 sm:$0xff]  }
 0x253   : > { %v5541_v53 = vpop.f32.mrf.mxu0  ;;  %v5286_v32 = vadd.f32 %v5285_v5, %v5022_v3 }
 0x254   : > { %v10587_v57 = vadd.f32 %v5541_v53, %v5278_v39  ;;  %v5287_v46 = vpop.f32.mrf.mxu1 }
 0x255   : > { %v5543_v24 = vpop.f32.mrf.mxu0 }
 0x256   : > { %v5290_v36 = vpop.f32.mrf.mxu1  ;;  %5777 = vmatmul.mubr.bf16.gmra.mxu1 %v8092_v38 }
 0x257   : > { %v5546_v11 = vpop.f32.mrf.mxu0  ;;  %7641 = vmatmul.mubr.bf16.gmra.mxu0 %v8095_v58  ;;  %v5291_v25 = vadd.f32 %v5290_v36, %v5027_v22  ;;  %5784 = vmatprep.mubr.bf16.mxu1 %v8098_v30  ;;  %v11230_v22 = vcombine.high %v10219_v52, %v10223_v44 }
 0x258   : > { %v10591_v43 = vadd.f32 %v5546_v11, %v5283_v35  ;;  %7644 = vmatprep.mubr.msk.bf16.mxu0 %vm8271_vm12, %v11165_v45  ;;  %v5292_v47 = vpop.f32.mrf.mxu1  ;;  %v11229_v35 = vld [vmem:[#allocation56_spill] sm:$0xff]  ;;  %v2832_v11 = vld [vmem:[#allocation3 + $0x54c] sm:$0xff] }
 0x259   : > { %v5548_v39 = vpop.f32.mrf.mxu0  ;;  %v5035_v58 = vadd.f32 %v10465_v29, %v11229_v35  ;;  %v11231_v47 = vld [vmem:[#allocation57_spill] sm:$0xff] }
 0x25a   : > { %v5293_v56 = vpop.f32.mrf.mxu1  ;;  %v5038_v39 = vadd.f32 %v10465_v29, %v11231_v47  ;;  %v11234_v47 = vld [vmem:[#allocation59_spill] sm:$0xff] }
 0x25b   : > { %v5549_v59 = vpop.f32.mrf.mxu0  ;;  %v5294_v3 = vadd.f32 %v5293_v56, %v5030_v49  ;;  %v8100_v56 = vld [vmem:[#allocation3 + $0x4a0] ss:$36 sps:$4 sm:$0xff]  }
 0x25c   : > { %v10597_v5 = vadd.f32 %v5549_v59, %v5286_v32  ;;  %v5295_v53 = vpop.f32.mrf.mxu1 }
 0x25d   : > { %v5551_v38 = vpop.f32.mrf.mxu0 }
 0x25e   : > { %v5298_v30 = vpop.f32.mrf.mxu1  ;;  %5785 = vmatmul.mubr.bf16.gmra.mxu1 %v8096_v61  ;;  %v11232_v38 = vld [vmem:[#allocation58_spill] sm:$0xff] }
 0x25f   : > { %v5554_v46 = vpop.f32.mrf.mxu0  ;;  %7645 = vmatmul.mubr.bf16.gmra.mxu0 %v8099_v19  ;;  %v5299_v24 = vadd.f32 %v5298_v30, %v5035_v58  ;;  %5792 = vmatprep.mubr.bf16.mxu1 %v11230_v22  ;;  %v5043_v35 = vadd.f32 %v10465_v29, %v11232_v38  ;;  %v11235_v38 = vld [vmem:[#allocation60_spill] sm:$0xff] }
 0x260   : > { %v10601_v20 = vadd.f32 %v5554_v46, %v5291_v25  ;;  %7648 = vmatprep.mubr.msk.bf16.mxu0 %vm8271_vm12, %v11165_v45  ;;  %v5300_v32 = vpop.f32.mrf.mxu1  ;;  %v7082_v25 = vcombine.high %v10252_v33, %v2832_v11  ;;  %v11233_v46 = vcombine.low %v10219_v52, %v10223_v44 }
 0x261   : > { %v5556_v36 = vpop.f32.mrf.mxu0 }
 0x262   : > { %v5301_v10 = vpop.f32.mrf.mxu1 }
 0x263   : > { %v5557_v49 = vpop.f32.mrf.mxu0  ;;  %v5302_v59 = vadd.f32 %v5301_v10, %v5038_v39  ;;  %v5046_v39 = vadd.f32 %v10465_v29, %v11234_v47 }
 0x264   : > { %v10610_v61 = vadd.f32 %v5557_v49, %v5294_v3  ;;  %v5303_v19 = vpop.f32.mrf.mxu1 }
 0x265   : > { %v5559_v53 = vpop.f32.mrf.mxu0  ;;  %v7081_v19 = vcombine.low %v10252_v33, %v2832_v11 }
 0x266   : > { %v5306_v58 = vpop.f32.mrf.mxu1  ;;  %5793 = vmatmul.mubr.bf16.gmra.mxu1 %v11233_v46  ;;  %v8101_v53 = vld [vmem:[#allocation3 + $0x4e8] ss:$36 sps:$4 sm:$0xff]  }
 0x267   : > { %v5562_v30 = vpop.f32.mrf.mxu0  ;;  %7649 = vmatmul.mubr.bf16.gmra.mxu0 %v8100_v56  ;;  %v5307_v22 = vadd.f32 %v5306_v58, %v5043_v35  ;;  %5800 = vmatprep.mubr.bf16.mxu1 %v7082_v25  ;;  %v5051_v25 = vadd.f32 %v10465_v29, %v11235_v38  ;;  %v11238_v38 = vld [vmem:[#allocation62_spill] sm:$0xff] }
 0x268   : > { %v10618_v32 = vadd.f32 %v5562_v30, %v5299_v24  ;;  %7652 = vmatprep.mubr.msk.bf16.mxu0 %vm8271_vm12, %v11165_v45  ;;  %v5308_v3 = vpop.f32.mrf.mxu1 }
 0x269   : > { %v5564_v36 = vpop.f32.mrf.mxu0  ;;  %v11236_v3 = vcombine.high %v10277_v26, %v10281_v2 }
 0x26a   : > { %v5309_v10 = vpop.f32.mrf.mxu1  ;;  %v11237_v36 = vld [vmem:[#allocation61_spill] sm:$0xff] }
 0x26b   : > { %v5565_v49 = vpop.f32.mrf.mxu0  ;;  %v5310_v52 = vadd.f32 %v5309_v10, %v5046_v39  ;;  %v5054_v47 = vadd.f32 %v10465_v29, %v11237_v36 }
 0x26c   : > { %v10625_v44 = vadd.f32 %v5565_v49, %v5302_v59  ;;  %v5311_v56 = vpop.f32.mrf.mxu1  ;;  %v2852_v59 = vld [vmem:[#allocation3 + $0x5dc] sm:$0xff]  ;;  %v8102_v49 = vld [vmem:[#allocation3 + $0x530] ss:$36 sps:$4 sm:$0xff]  }
 0x26d   : > { %v5567_v24 = vpop.f32.mrf.mxu0 }
 0x26e   : > { %v5314_v35 = vpop.f32.mrf.mxu1  ;;  %5801 = vmatmul.mubr.bf16.gmra.mxu1 %v7081_v19 }
 0x26f   : > { %v5570_v58 = vpop.f32.mrf.mxu0  ;;  %7653 = vmatmul.mubr.bf16.gmra.mxu0 %v8101_v53  ;;  %v5315_v30 = vadd.f32 %v5314_v35, %v5051_v25  ;;  %5808 = vmatprep.mubr.bf16.mxu1 %v11236_v3  ;;  %v5059_v25 = vadd.f32 %v10465_v29, %v11238_v38  ;;  %v11239_v3 = vcombine.low %v10277_v26, %v10281_v2  ;;  %v8103_v38 = vld [vmem:[#allocation3 + $0x578] ss:$36 sps:$4 sm:$0xff]  }
 0x270   : > { %v10629_v46 = vadd.f32 %v5570_v58, %v5307_v22  ;;  %7656 = vmatprep.mubr.msk.bf16.mxu0 %vm8271_vm12, %v11165_v45  ;;  %v5316_v33 = vpop.f32.mrf.mxu1  ;;  %v7100_v22 = vcombine.high %v10308_v16, %v2852_v59 }
 0x271   : > { %v5572_v11 = vpop.f32.mrf.mxu0 }
 0x272   : > { %v5317_v39 = vpop.f32.mrf.mxu1 }
 0x273   : > { %v5573_v10 = vpop.f32.mrf.mxu0  ;;  %v5318_v19 = vadd.f32 %v5317_v39, %v5054_v47  ;;  %v11240_v47 = vld [vmem:[#allocation49_spill] sm:$0xff] }
 0x274   : > { %v10638_v53 = vadd.f32 %v5573_v10, %v5310_v52  ;;  %v5319_v56 = vpop.f32.mrf.mxu1  ;;  %v5062_v39 = vadd.f32 %v10465_v29, %v11240_v47  ;;  %v11243_v47 = vld [vmem:[#allocation64_spill] sm:$0xff] }
 0x275   : > { %v5575_v24 = vpop.f32.mrf.mxu0 }
 0x276   : > { %v5322_v35 = vpop.f32.mrf.mxu1  ;;  %5809 = vmatmul.mubr.bf16.gmra.mxu1 %v11239_v3  ;;  %v7099_v24 = vcombine.low %v10308_v16, %v2852_v59 }
 0x277   : > { %v5578_v58 = vpop.f32.mrf.mxu0  ;;  %7657 = vmatmul.mubr.bf16.gmra.mxu0 %v8102_v49  ;;  %v5323_v33 = vadd.f32 %v5322_v35, %v5059_v25  ;;  %5816 = vmatprep.mubr.bf16.mxu1 %v7100_v22  ;;  %v11241_v25 = vld [vmem:[#allocation63_spill] sm:$0xff] }
 0x278   : > { %v10646_v11 = vadd.f32 %v5578_v58, %v5315_v30  ;;  %7660 = vmatprep.mubr.msk.bf16.mxu0 %vm8271_vm12, %v11165_v45  ;;  %v5324_v52 = vpop.f32.mrf.mxu1  ;;  %v5067_v22 = vadd.f32 %v10465_v29, %v11241_v25 }
 0x279   : > { %v5580_v36 = vpop.f32.mrf.mxu0 }
 0x27a   : > { %v5325_v10 = vpop.f32.mrf.mxu1  ;;  %v11242_v36 = vcombine.high %v10330_v14, %v10334_v13 }
 0x27b   : > { %v5581_v56 = vpop.f32.mrf.mxu0  ;;  %v5326_v26 = vadd.f32 %v5325_v10, %v5062_v39  ;;  %v5070_v39 = vadd.f32 %v10465_v29, %v11243_v47 }
 0x27c   : > { %v10653_v2 = vadd.f32 %v5581_v56, %v5318_v19  ;;  %v5327_v49 = vpop.f32.mrf.mxu1  ;;  %v2872_v19 = vld [vmem:[#allocation3 + $0x66c] sm:$0xff] }
 0x27d   : > { %v5583_v30 = vpop.f32.mrf.mxu0 }
 0x27e   : > { %v5330_v35 = vpop.f32.mrf.mxu1  ;;  %5817 = vmatmul.mubr.bf16.gmra.mxu1 %v7099_v24  ;;  %v8104_v24 = vld [vmem:[#allocation3 + $0x5c0] ss:$36 sps:$4 sm:$0xff]  }
 0x27f   : > { %v5586_v58 = vpop.f32.mrf.mxu0  ;;  %7661 = vmatmul.mubr.bf16.gmra.mxu0 %v8103_v38  ;;  %v5331_v3 = vadd.f32 %v5330_v35, %v5067_v22  ;;  %5824 = vmatprep.mubr.bf16.mxu1 %v11242_v36  ;;  %v11244_v22 = vld [vmem:[#allocation65_spill] sm:$0xff] }
 0x280   : > { %v10657_v52 = vadd.f32 %v5586_v58, %v5323_v33  ;;  %7664 = vmatprep.mubr.msk.bf16.mxu0 %vm8271_vm12, %v11165_v45  ;;  %v5332_v16 = vpop.f32.mrf.mxu1  ;;  %v7118_v33 = vcombine.high %v10361_v6, %v2872_v19  ;;  %v5075_v35 = vadd.f32 %v10465_v29, %v11244_v22  ;;  %v7117_v22 = vcombine.low %v10361_v6, %v2872_v19 }
 0x281   : > { %v5588_v59 = vpop.f32.mrf.mxu0  ;;  %v11245_v16 = vcombine.low %v10330_v14, %v10334_v13 }
 0x282   : > { %v5333_v10 = vpop.f32.mrf.mxu1 }
 0x283   : > { %v5589_v56 = vpop.f32.mrf.mxu0  ;;  %v5334_v38 = vadd.f32 %v5333_v10, %v5070_v39  ;;  %v11246_v10 = vld [vmem:[#allocation66_spill] sm:$0xff] }
 0x284   : > { %v10666_v49 = vadd.f32 %v5589_v56, %v5326_v26  ;;  %v5335_v30 = vpop.f32.mrf.mxu1  ;;  %v5078_v56 = vadd.f32 %v10465_v29, %v11246_v10  ;;  %v11248_v10 = vld [vmem:[#allocation69_spill] sm:$0xff] }
 0x285   : > { %v5591_v25 = vpop.f32.mrf.mxu0 }
 0x286   : > { %v5338_v58 = vpop.f32.mrf.mxu1  ;;  %5825 = vmatmul.mubr.bf16.gmra.mxu1 %v11245_v16 }
 0x287   : > { %v5594_v36 = vpop.f32.mrf.mxu0  ;;  %7665 = vmatmul.mubr.bf16.gmra.mxu0 %v8104_v24  ;;  %v5339_v59 = vadd.f32 %v5338_v58, %v5075_v35  ;;  %5832 = vmatprep.mubr.bf16.mxu1 %v7118_v33  ;;  %v8108_v24 = vld [vmem:[#allocation3 + $0x694] ss:$36 sps:$4 sm:$0xff]  }
 0x288   : > { %v10674_v47 = vadd.f32 %v5594_v36, %v5331_v3  ;;  %7668 = vmatprep.mubr.msk.bf16.mxu0 %vm8271_vm12, %v11165_v45  ;;  %v5340_v26 = vpop.f32.mrf.mxu1  ;;  %v11247_v33 = vld [vmem:[#allocation67_spill] sm:$0xff] }
 0x289   : > { %v5596_v39 = vpop.f32.mrf.mxu0  ;;  %v5083_v58 = vadd.f32 %v10465_v29, %v11247_v33 }
 0x28a   : > { %v5341_v30 = vpop.f32.mrf.mxu1 }
 0x28b   : > { %v5597_v25 = vpop.f32.mrf.mxu0  ;;  %v5342_v14 = vadd.f32 %v5341_v30, %v5078_v56  ;;  %v5086_v56 = vadd.f32 %v10465_v29, %v11248_v10 }
 0x28c   : > { %v10681_v13 = vadd.f32 %v5597_v25, %v5334_v38  ;;  %v5343_v3 = vpop.f32.mrf.mxu1  ;;  %v2887_v38 = vld [vmem:[#allocation3 + $0x6d8] sm:$0xff] }
 0x28d   : > { %v5599_v35 = vpop.f32.mrf.mxu0  ;;  %v8106_v3 = vld [vmem:[#allocation3 + $0x690] ss:$36 sps:$4 sm:$0xff]  }
 0x28e   : > { %v5346_v36 = vpop.f32.mrf.mxu1  ;;  %5833 = vmatmul.mubr.bf16.gmra.mxu1 %v7117_v22  ;;  %v8109_v35 = vld [vmem:[#allocation3 + $0x650] ss:$36 sps:$4 sm:$0xff]  }
 0x28f   : > { %v5602_v16 = vpop.f32.mrf.mxu0  ;;  %7669 = vmatmul.mubr.bf16.gmra.mxu0 %v8105_v18  ;;  %v5347_v26 = vadd.f32 %v5346_v36, %v5083_v58  ;;  %5840 = vmatprep.mubr.bf16.mxu1 %v8108_v24  ;;  %v7136_v18 = vcombine.high %v2887_v38, %v10414_v50  ;;  %v11249_v58 = vld [vmem:[#allocation72_spill] sm:$0xff] }
 0x290   : > { %v10685_v39 = vadd.f32 %v5602_v16, %v5339_v59  ;;  %7672 = vmatprep.mubr.msk.bf16.mxu0 %vm8271_vm12, %v11165_v45  ;;  %v5348_v6 = vpop.f32.mrf.mxu1  ;;  %v5091_v36 = vadd.f32 %v10465_v29, %v11249_v58 }
 0x291   : > { %v5604_v19 = vpop.f32.mrf.mxu0 }
 0x292   : > { %v5349_v30 = vpop.f32.mrf.mxu1 }
 0x293   : > { %v5605_v25 = vpop.f32.mrf.mxu0  ;;  %v5350_v33 = vadd.f32 %v5349_v30, %v5086_v56 }
 0x294   : > { %v10691_v22 = vadd.f32 %v5605_v25, %v5342_v14  ;;  %v5351_v59 = vpop.f32.mrf.mxu1 }
 0x295   : > { %v5607_v24 = vpop.f32.mrf.mxu0  ;;  %v7135_v59 = vcombine.low %v2887_v38, %v10414_v50  ;;  %v2907_v38 = vld [vmem:[#allocation3 + $0x768] sm:$0xff] }
 0x296   : > { %v5354_v16 = vpop.f32.mrf.mxu1  ;;  %5841 = vmatmul.mubr.bf16.gmra.mxu1 %v8106_v3  ;;  %v8110_v24 = vld [vmem:[#allocation3 + $0x698] ss:$36 sps:$4 sm:$0xff]  }
 0x297   : > { %v5610_v6 = vpop.f32.mrf.mxu0  ;;  %7673 = vmatmul.mubr.bf16.gmra.mxu0 %v8109_v35  ;;  %v5355_v19 = vadd.f32 %v5354_v16, %v5091_v36  ;;  %5848 = vmatprep.mubr.bf16.mxu1 %v7136_v18  ;;  %v11251_v18 = vcombine.high %v10444_v15, %v10448_v27 }
 0x298   : > { %v10696_v10 = vadd.f32 %v5610_v6, %v5347_v26  ;;  %7676 = vmatprep.mubr.msk.bf16.mxu0 %vm8271_vm12, %v11165_v45  ;;  %v5356_v14 = vpop.f32.mrf.mxu1  ;;  %v8111_v6 = vld [vmem:[#allocation3 + $0x6e0] ss:$36 sps:$4 sm:$0xff]  }
 0x299   : > { %v5612_v56 = vpop.f32.mrf.mxu0  ;;  %v7154_v14 = vcombine.high %v2907_v38, %v10493_v31 }
 0x29a   : > { %v5357_v30 = vpop.f32.mrf.mxu1 }
 0x29b   : > { %v5613_v25 = vpop.f32.mrf.mxu0 }
 0x29c   : > { %v10701_v48 = vadd.f32 %v5613_v25, %v5350_v33  ;;  %v5358_v29 = vpop.f32.mrf.mxu1  ;;  %v11252_v25 = vld [vmem:[#allocation31_spill] sm:$0xff] }
 0x29d   : > { %v5615_v58 = vpop.f32.mrf.mxu0 }
 0x29e   : > { %v5658_v35 = vpop.f32.mrf.mxu1  ;;  %5849 = vmatmul.mubr.bf16.gmra.mxu1 %v7135_v59 }
 0x29f   : > { %v5618_v3 = vpop.f32.mrf.mxu0  ;;  %7677 = vmatmul.mubr.bf16.gmra.mxu0 %v8110_v24  ;;  %5856 = vmatprep.mubr.bf16.mxu1 %v11251_v18  ;;  %v11253_v24 = vcombine.low %v10444_v15, %v10448_v27  ;;  %v10720_v27 = vld [vmem:[%s8370_s11] ss:$0 sm:$0xff] }
 0x2a0   : > { %v10703_v26 = vadd.f32 %v5618_v3, %v5355_v19  ;;  %7680 = vmatprep.mubr.msk.bf16.mxu0 %vm8271_vm12, %v11165_v45  ;;  %v5660_v50 = vpop.f32.mrf.mxu1  ;;  %v5659_v19 = vadd.f32 %v5658_v35, %v11252_v25  ;;  %v7153_v35 = vcombine.low %v2907_v38, %v10493_v31  ;;  %v11256_v38 = vcombine.high %v10521_v63, %v10525_v62 }
 0x2a1   : > { %v5620_v36 = vpop.f32.mrf.mxu0 }
 0x2a2   : > { %11250 = vst [vmem:[#allocation24_spill] sm:$0xff] %v10703_v26  ;;  %v5661_v16 = vpop.f32.mrf.mxu1  ;;  %v11254_v36 = vld [vmem:[#allocation43_spill] sm:$0xff] }
 0x2a3   : > { %v5621_v33 = vpop.f32.mrf.mxu0  ;;  %v5662_v50 = vadd.f32 %v5661_v16, %v11254_v36  ;;  %v2927_v36 = vld [vmem:[#allocation3 + $0x7f8] sm:$0x11] }
 0x2a4   : > { %v5663_v30 = vpop.f32.mrf.mxu1 }
 0x2a5   : > { %v5622_v56 = vpop.f32.mrf.mxu0  ;;  %v8114_v30 = vld [vmem:[#allocation3 + $0x728] ss:$36 sps:$4 sm:$0xff]  }
 0x2a6   : > { %v5666_v59 = vpop.f32.mrf.mxu1  ;;  %5857 = vmatmul.mubr.bf16.gmra.mxu1 %v11253_v24 }
 0x2a7   : > { %v5922_v29 = vpop.f32.mrf.mxu0  ;;  %7681 = vmatmul.mubr.bf16.gmra.mxu0 %v8111_v6  ;;  %5864 = vmatprep.mubr.bf16.mxu1 %v7154_v14 }
 0x2a8   : > { %v5923_v58 = vadd.f32 %v5922_v29, %v5659_v19  ;;  %7684 = vmatprep.mubr.msk.bf16.mxu0 %vm8271_vm12, %v11165_v45  ;;  %v5668_v3 = vpop.f32.mrf.mxu1  ;;  %v11255_v19 = vld [vmem:[#allocation18_spill] sm:$0xff] }
 0x2a9   : > { %v7586_v18 = vpop.f32.mrf.mxu0  ;;  %v5667_v14 = vadd.f32 %v5666_v59, %v11255_v19 }
 0x2aa   : > { %v5669_v33 = vpop.f32.mrf.mxu1  ;;  %v6152_v25 = vmax.f32 %v5923_v58, 0.0 }
 0x2ab   : > { %v5925_v56 = vpop.f32.mrf.mxu0 }
 0x2ac   : > { %v5926_v15 = vadd.f32 %v5925_v56, %v5662_v50  ;;  %v5671_v24 = vpop.f32.mrf.mxu1  ;;  %v6216_v16 = vadd.f32 %v10720_v27, %v6152_v25  ;;  %v5670_v50 = vadd.f32 %v5669_v33, %v10176_v41 }
 0x2ad   : > { %v7587_v6 = vpop.f32.mrf.mxu0 }
 0x2ae   : > { %v6153_v29 = vmax.f32 %v5926_v15, 0.0  ;;  %v5674_v26 = vpop.f32.mrf.mxu1  ;;  %5865 = vmatmul.mubr.bf16.gmra.mxu1 %v7153_v35  ;;  %v8115_v15 = vld [vmem:[#allocation3 + $0x770] ss:$36 sps:$4 sm:$0xff]   ;;  %v7172_v6 = vcombine.high %v2927_v36, %v2927_v36 }
 0x2af   : > { %v5930_v3 = vpop.f32.mrf.mxu0  ;;  %7685 = vmatmul.mubr.bf16.gmra.mxu0 %v8114_v30  ;;  %5872 = vmatprep.mubr.bf16.mxu1 %v11256_v38 }
 0x2b0   : > { %v6217_v18 = vadd.f32 %v10720_v27, %v6153_v29  ;;  %v5931_v31 = vadd.f32 %v5930_v3, %v5667_v14  ;;  %7688 = vmatprep.mubr.msk.bf16.mxu0 %vm8271_vm12, %v11165_v45  ;;  %v5676_v58 = vpop.f32.mrf.mxu1  ;;  %v5675_v29 = vadd.f32 %v5674_v26, %v10189_v23 }
 0x2b1   : > { %v7590_v59 = vpop.f32.mrf.mxu0  ;;  %v11257_v58 = vcombine.low %v10521_v63, %v10525_v62  ;;  %v7171_v62 = vcombine.low %v2927_v36, %v2927_v36 }
 0x2b2   : > { %v7367_v56 = vpack.c.bf16 %v6217_v18, %v6216_v16  ;;  %v5677_v35 = vpop.f32.mrf.mxu1  ;;  %v6154_v25 = vmax.f32 %v5931_v31, 0.0 }
 0x2b3   : > { %v5933_v30 = vpop.f32.mrf.mxu0  ;;  %v5678_v26 = vadd.f32 %v5677_v35, %v10194_v9 }
 0x2b4   : > { %7368 = vst [vmem:[%s8378_s6] sm:$0xff] %v7367_v56   ;;  %v5934_v24 = vadd.f32 %v5933_v30, %v5670_v50  ;;  %v5679_v19 = vpop.f32.mrf.mxu1  ;;  %v6218_v33 = vadd.f32 %v10720_v27, %v6154_v25  ;;  %v8118_v56 = vld [vmem:[#allocation3 + $0x7b8] ss:$36 sps:$4 sm:$0xff]  }
 0x2b5   : > { %v7591_v14 = vpop.f32.mrf.mxu0  ;;  %v11258_v19 = vld [vmem:[#allocation20_spill] sm:$0xff] }
 0x2b6   : > { %v6155_v3 = vmax.f32 %v5934_v24, 0.0  ;;  %v5682_v38 = vpop.f32.mrf.mxu1  ;;  %5873 = vmatmul.mubr.bf16.gmra.mxu1 %v11257_v58 }
 0x2b7   : > { %v5938_v41 = vpop.f32.mrf.mxu0  ;;  %7689 = vmatmul.mubr.bf16.gmra.mxu0 %v8115_v15  ;;  %5880 = vmatprep.mubr.bf16.mxu1 %v7172_v6  ;;  %v5683_v14 = vadd.f32 %v5682_v38, %v11258_v19 }
 0x2b8   : > { %v6219_v16 = vadd.f32 %v10720_v27, %v6155_v3  ;;  %v5939_v18 = vadd.f32 %v5938_v41, %v5675_v29  ;;  %7692 = vmatprep.mubr.msk.bf16.mxu0 %vm8271_vm12, %v11165_v45  ;;  %v5684_v31 = vpop.f32.mrf.mxu1 }
 0x2b9   : > { %v7594_v23 = vpop.f32.mrf.mxu0 }
 0x2ba   : > { %v7372_v59 = vpack.c.bf16 %v6219_v16, %v6218_v33  ;;  %v5685_v50 = vpop.f32.mrf.mxu1  ;;  %v6156_v30 = vmax.f32 %v5939_v18, 0.0  ;;  %v11259_v33 = vld [vmem:[#allocation19_spill] sm:$0xff]  ;;  %v8119_v23 = vld [vmem:[#allocation3 + $0x800] ss:$0 sps:$4 sm:$0x11]  }
 0x2bb   : > { %v5941_v63 = vpop.f32.mrf.mxu0  ;;  %v5686_v16 = vadd.f32 %v5685_v50, %v11259_v33 }
 0x2bc   : > { %7504 = vst [vmem:[%s8378_s6 + $0x8] sm:$0xff] %v7372_v59   ;;  %v5942_v15 = vadd.f32 %v5941_v63, %v5678_v26  ;;  %v5687_v25 = vpop.f32.mrf.mxu1  ;;  %v6220_v9 = vadd.f32 %v10720_v27, %v6156_v30 }
 0x2bd   : > { %v7595_v24 = vpop.f32.mrf.mxu0 }
 0x2be   : > { %v6157_v6 = vmax.f32 %v5942_v15, 0.0  ;;  %v5690_v29 = vpop.f32.mrf.mxu1  ;;  %5881 = vmatmul.mubr.bf16.gmra.mxu1 %v7171_v62 }
 0x2bf   : > { %v5946_v3 = vpop.f32.mrf.mxu0  ;;  %7693 = vmatmul.mubr.bf16.gmra.mxu0 %v8118_v56  ;;  %v11260_v56 = vld [vmem:[#allocation25_spill] sm:$0xff] }
 0x2c0   : > { %v6221_v35 = vadd.f32 %v10720_v27, %v6157_v6  ;;  %v5947_v58 = vadd.f32 %v5946_v3, %v5683_v14  ;;  %7696 = vmatprep.mubr.msk.bf16.mxu0 %vm8271_vm12, %v11165_v45  ;;  %v5692_v36 = vpop.f32.mrf.mxu1  ;;  %v5691_v30 = vadd.f32 %v5690_v29, %v11260_v56 }
 0x2c1   : > { %v7598_v41 = vpop.f32.mrf.mxu0 }
 0x2c2   : > { %v7377_v18 = vpack.c.bf16 %v6221_v35, %v6220_v9  ;;  %v5693_v38 = vpop.f32.mrf.mxu1  ;;  %v6158_v26 = vmax.f32 %v5947_v58, 0.0 }
 0x2c3   : > { %v5949_v31 = vpop.f32.mrf.mxu0  ;;  %v5694_v3 = vadd.f32 %v5693_v38, %v10225_v51 }
 0x2c4   : > { %7505 = vst [vmem:[%s8378_s6 + $0x10] sm:$0xff] %v7377_v18   ;;  %v5950_v59 = vadd.f32 %v5949_v31, %v5686_v16  ;;  %v5695_v63 = vpop.f32.mrf.mxu1  ;;  %v6222_v45 = vadd.f32 %v10720_v27, %v6158_v26 }
 0x2c5   : > { %v7599_v62 = vpop.f32.mrf.mxu0 }
 0x2c6   : > { %v6159_v15 = vmax.f32 %v5950_v59, 0.0  ;;  %v5698_v25 = vpop.f32.mrf.mxu1 }
 0x2c7   : > { %v5954_v24 = vpop.f32.mrf.mxu0  ;;  %7697 = vmatmul.mubr.bf16.gmra.mxu0 %v8119_v23  ;;  %v5699_v16 = vadd.f32 %v5698_v25, %v10238_v60 }
 0x2c8   : > { %v6223_v50 = vadd.f32 %v10720_v27, %v6159_v15  ;;  %v5955_v19 = vadd.f32 %v5954_v24, %v5691_v30  ;;  %v5700_v14 = vpop.f32.mrf.mxu1 }
 0x2c9   : > { %v7602_v6 = vpop.f32.mrf.mxu0 }
 0x2ca   : > { %v7382_v9 = vpack.c.bf16 %v6223_v50, %v6222_v45  ;;  %v5701_v35 = vpop.f32.mrf.mxu1  ;;  %v6160_v36 = vmax.f32 %v5955_v19, 0.0 }
 0x2cb   : > { %v5957_v58 = vpop.f32.mrf.mxu0  ;;  %v5702_v62 = vadd.f32 %v5701_v35, %v10254_v42 }
 0x2cc   : > { %7506 = vst [vmem:[%s8378_s6 + $0x18] sm:$0xff] %v7382_v9   ;;  %v5958_v41 = vadd.f32 %v5957_v58, %v5694_v3  ;;  %v5703_v29 = vpop.f32.mrf.mxu1  ;;  %v6224_v26 = vadd.f32 %v10720_v27, %v6160_v36 }
 0x2cd   : > { %v7603_v33 = vpop.f32.mrf.mxu0 }
 0x2ce   : > { %v6161_v18 = vmax.f32 %v5958_v41, 0.0  ;;  %v5706_v31 = vpop.f32.mrf.mxu1 }
 0x2cf   : > { %v5962_v23 = vpop.f32.mrf.mxu0  ;;  %v5707_v50 = vadd.f32 %v5706_v31, %v10266_v1 }
 0x2d0   : > { %v6225_v59 = vadd.f32 %v10720_v27, %v6161_v18  ;;  %v5963_v63 = vadd.f32 %v5962_v23, %v5699_v16  ;;  %v5708_v51 = vpop.f32.mrf.mxu1 }
 0x2d1   : > { %v7606_v38 = vpop.f32.mrf.mxu0 }
 0x2d2   : > { %v7387_v56 = vpack.c.bf16 %v6225_v59, %v6224_v26  ;;  %v5709_v30 = vpop.f32.mrf.mxu1  ;;  %v6162_v24 = vmax.f32 %v5963_v63, 0.0 }
 0x2d3   : > { %v5965_v15 = vpop.f32.mrf.mxu0  ;;  %v5710_v36 = vadd.f32 %v5709_v30, %v10283_v12 }
 0x2d4   : > { %7507 = vst [vmem:[%s8378_s6 + $0x20] sm:$0xff] %v7387_v56   ;;  %v5966_v45 = vadd.f32 %v5965_v15, %v5702_v62  ;;  %v5711_v60 = vpop.f32.mrf.mxu1  ;;  %v6226_v3 = vadd.f32 %v10720_v27, %v6162_v24 }
 0x2d5   : > { %v7607_v25 = vpop.f32.mrf.mxu0 }
 0x2d6   : > { %v6163_v19 = vmax.f32 %v5966_v45, 0.0  ;;  %v5714_v14 = vpop.f32.mrf.mxu1 }
 0x2d7   : > { %v5970_v6 = vpop.f32.mrf.mxu0  ;;  %v5715_v23 = vadd.f32 %v5714_v14, %v10296_v4 }
 0x2d8   : > { %v6227_v9 = vadd.f32 %v10720_v27, %v6163_v19  ;;  %v5971_v58 = vadd.f32 %v5970_v6, %v5707_v50  ;;  %v5716_v42 = vpop.f32.mrf.mxu1  ;;  %v11261_v19 = vld [vmem:[#allocation36_spill] sm:$0xff] }
 0x2d9   : > { %v7610_v35 = vpop.f32.mrf.mxu0 }
 0x2da   : > { %v7392_v41 = vpack.c.bf16 %v6227_v9, %v6226_v3  ;;  %v5717_v29 = vpop.f32.mrf.mxu1  ;;  %v6164_v16 = vmax.f32 %v5971_v58, 0.0 }
 0x2db   : > { %v5973_v33 = vpop.f32.mrf.mxu0  ;;  %v5718_v30 = vadd.f32 %v5717_v29, %v10310_v54 }
 0x2dc   : > { %7508 = vst [vmem:[%s8378_s6 + $0x28] sm:$0xff] %v7392_v41   ;;  %v5974_v18 = vadd.f32 %v5973_v33, %v5710_v36  ;;  %v5719_v1 = vpop.f32.mrf.mxu1  ;;  %v6228_v51 = vadd.f32 %v10720_v27, %v6164_v16  ;;  %v11262_v41 = vld [vmem:[#allocation30_spill] sm:$0xff] }
 0x2dd   : > { %v7611_v31 = vpop.f32.mrf.mxu0 }
 0x2de   : > { %v6165_v26 = vmax.f32 %v5974_v18, 0.0  ;;  %v5722_v59 = vpop.f32.mrf.mxu1 }
 0x2df   : > { %v5978_v63 = vpop.f32.mrf.mxu0  ;;  %v5723_v14 = vadd.f32 %v5722_v59, %v11261_v19  ;;  %v11263_v59 = vld [vmem:[#allocation37_spill] sm:$0xff] }
 0x2e0   : > { %v6229_v38 = vadd.f32 %v10720_v27, %v6165_v26  ;;  %v5979_v62 = vadd.f32 %v5978_v63, %v5715_v23  ;;  %v5724_v12 = vpop.f32.mrf.mxu1 }
 0x2e1   : > { %v7614_v56 = vpop.f32.mrf.mxu0 }
 0x2e2   : > { %v7397_v15 = vpack.c.bf16 %v6229_v38, %v6228_v51  ;;  %v5725_v24 = vpop.f32.mrf.mxu1  ;;  %v6166_v60 = vmax.f32 %v5979_v62, 0.0 }
 0x2e3   : > { %v5981_v45 = vpop.f32.mrf.mxu0  ;;  %v5726_v29 = vadd.f32 %v5725_v24, %v11262_v41 }
 0x2e4   : > { %7509 = vst [vmem:[%s8378_s6 + $0x30] sm:$0xff] %v7397_v15   ;;  %v5982_v25 = vadd.f32 %v5981_v45, %v5718_v30  ;;  %v5727_v4 = vpop.f32.mrf.mxu1  ;;  %v6230_v58 = vadd.f32 %v10720_v27, %v6166_v60  ;;  %v11264_v45 = vld [vmem:[#allocation39_spill] sm:$0xff] }
 0x2e5   : > { %v7615_v50 = vpop.f32.mrf.mxu0 }
 0x2e6   : > { %v6167_v6 = vmax.f32 %v5982_v25, 0.0  ;;  %v5730_v3 = vpop.f32.mrf.mxu1 }
 0x2e7   : > { %v5986_v9 = vpop.f32.mrf.mxu0  ;;  %v5731_v63 = vadd.f32 %v5730_v3, %v11263_v59 }
 0x2e8   : > { %v6231_v42 = vadd.f32 %v10720_v27, %v6167_v6  ;;  %v5987_v35 = vadd.f32 %v5986_v9, %v5723_v14  ;;  %v5732_v54 = vpop.f32.mrf.mxu1  ;;  %v11265_v9 = vld [vmem:[#allocation38_spill] sm:$0xff] }
 0x2e9   : > { %v7618_v36 = vpop.f32.mrf.mxu0 }
 0x2ea   : > { %v7402_v33 = vpack.c.bf16 %v6231_v42, %v6230_v58  ;;  %v5733_v16 = vpop.f32.mrf.mxu1  ;;  %v6168_v1 = vmax.f32 %v5987_v35, 0.0 }
 0x2eb   : > { %v5989_v18 = vpop.f32.mrf.mxu0  ;;  %v5734_v60 = vadd.f32 %v5733_v16, %v11264_v45 }
 0x2ec   : > { %7510 = vst [vmem:[%s8378_s6 + $0x38] sm:$0xff] %v7402_v33   ;;  %v5990_v31 = vadd.f32 %v5989_v18, %v5726_v29  ;;  %v5735_v23 = vpop.f32.mrf.mxu1  ;;  %v6232_v12 = vadd.f32 %v10720_v27, %v6168_v1  ;;  %v11266_v18 = vld [vmem:[#allocation33_spill] sm:$0xff] }
 0x2ed   : > { %v7619_v26 = vpop.f32.mrf.mxu0 }
 0x2ee   : > { %v6169_v51 = vmax.f32 %v5990_v31, 0.0  ;;  %v5738_v38 = vpop.f32.mrf.mxu1 }
 0x2ef   : > { %v5994_v62 = vpop.f32.mrf.mxu0  ;;  %v5739_v58 = vadd.f32 %v5738_v38, %v11265_v9 }
 0x2f0   : > { %v6233_v56 = vadd.f32 %v10720_v27, %v6169_v51  ;;  %v5995_v30 = vadd.f32 %v5994_v62, %v5731_v63  ;;  %v5740_v15 = vpop.f32.mrf.mxu1  ;;  %v11267_v62 = vld [vmem:[#allocation27_spill] sm:$0xff] }
 0x2f1   : > { %v7622_v24 = vpop.f32.mrf.mxu0 }
 0x2f2   : > { %v7407_v25 = vpack.c.bf16 %v6233_v56, %v6232_v12  ;;  %v5741_v4 = vpop.f32.mrf.mxu1  ;;  %v6170_v19 = vmax.f32 %v5995_v30, 0.0 }
 0x2f3   : > { %v5997_v50 = vpop.f32.mrf.mxu0  ;;  %v5742_v1 = vadd.f32 %v5741_v4, %v11266_v18 }
 0x2f4   : > { %7511 = vst [vmem:[%s8378_s6 + $0x40] sm:$0xff] %v7407_v25   ;;  %v5998_v14 = vadd.f32 %v5997_v50, %v5734_v60  ;;  %v5743_v6 = vpop.f32.mrf.mxu1  ;;  %v6234_v36 = vadd.f32 %v10720_v27, %v6170_v19  ;;  %v11268_v50 = vld [vmem:[#allocation23_spill] sm:$0xff] }
 0x2f5   : > { %v7623_v3 = vpop.f32.mrf.mxu0 }
 0x2f6   : > { %v6171_v42 = vmax.f32 %v5998_v14, 0.0  ;;  %v5746_v35 = vpop.f32.mrf.mxu1 }
 0x2f7   : > { %v6002_v54 = vpop.f32.mrf.mxu0  ;;  %v5747_v12 = vadd.f32 %v5746_v35, %v11267_v62 }
 0x2f8   : > { %v6235_v41 = vadd.f32 %v10720_v27, %v6171_v42  ;;  %v6003_v29 = vadd.f32 %v6002_v54, %v5739_v58  ;;  %v5748_v33 = vpop.f32.mrf.mxu1  ;;  %v11269_v54 = vld [vmem:[#allocation35_spill] sm:$0xff] }
 0x2f9   : > { %v7626_v16 = vpop.f32.mrf.mxu0 }
 0x2fa   : > { %v7412_v31 = vpack.c.bf16 %v6235_v41, %v6234_v36  ;;  %v5749_v23 = vpop.f32.mrf.mxu1  ;;  %v6172_v59 = vmax.f32 %v6003_v29, 0.0 }
 0x2fb   : > { %v6005_v26 = vpop.f32.mrf.mxu0  ;;  %v5750_v19 = vadd.f32 %v5749_v23, %v11268_v50 }
 0x2fc   : > { %7512 = vst [vmem:[%s8378_s6 + $0x48] sm:$0xff] %v7412_v31   ;;  %v6006_v63 = vadd.f32 %v6005_v26, %v5742_v1  ;;  %v5751_v51 = vpop.f32.mrf.mxu1  ;;  %v6236_v24 = vadd.f32 %v10720_v27, %v6172_v59  ;;  %v11270_v26 = vld [vmem:[#allocation46_spill] sm:$0xff] }
 0x2fd   : > { %v7627_v38 = vpop.f32.mrf.mxu0 }
 0x2fe   : > { %v6173_v56 = vmax.f32 %v6006_v63, 0.0  ;;  %v5754_v30 = vpop.f32.mrf.mxu1 }
 0x2ff   : > { %v6010_v15 = vpop.f32.mrf.mxu0  ;;  %v5755_v36 = vadd.f32 %v5754_v30, %v11269_v54 }
 0x300   : > { %v6237_v45 = vadd.f32 %v10720_v27, %v6173_v56  ;;  %v6011_v60 = vadd.f32 %v6010_v15, %v5747_v12  ;;  %v5756_v25 = vpop.f32.mrf.mxu1  ;;  %v11271_v15 = vld [vmem:[#allocation32_spill] sm:$0xff] }
 0x301   : > { %v7630_v4 = vpop.f32.mrf.mxu0 }
 0x302   : > { %v7417_v14 = vpack.c.bf16 %v6237_v45, %v6236_v24  ;;  %v5757_v6 = vpop.f32.mrf.mxu1  ;;  %v6174_v9 = vmax.f32 %v6011_v60, 0.0 }
 0x303   : > { %v6013_v3 = vpop.f32.mrf.mxu0  ;;  %v5758_v59 = vadd.f32 %v5757_v6, %v11270_v26 }
 0x304   : > { %7513 = vst [vmem:[%s8378_s6 + $0x50] sm:$0xff] %v7417_v14   ;;  %v6014_v58 = vadd.f32 %v6013_v3, %v5750_v19  ;;  %v5759_v42 = vpop.f32.mrf.mxu1  ;;  %v6238_v16 = vadd.f32 %v10720_v27, %v6174_v9 }
 0x305   : > { %v7631_v35 = vpop.f32.mrf.mxu0 }
 0x306   : > { %v6175_v41 = vmax.f32 %v6014_v58, 0.0  ;;  %v5762_v29 = vpop.f32.mrf.mxu1 }
 0x307   : > { %v6018_v33 = vpop.f32.mrf.mxu0  ;;  %v5763_v24 = vadd.f32 %v5762_v29, %v11271_v15 }
 0x308   : > { %v6239_v18 = vadd.f32 %v10720_v27, %v6175_v41  ;;  %v6019_v1 = vadd.f32 %v6018_v33, %v5755_v36  ;;  %v5764_v31 = vpop.f32.mrf.mxu1 }
 0x309   : > { %v7634_v23 = vpop.f32.mrf.mxu0 }
 0x30a   : > { %v7422_v63 = vpack.c.bf16 %v6239_v18, %v6238_v16  ;;  %v5765_v51 = vpop.f32.mrf.mxu1  ;;  %v6176_v62 = vmax.f32 %v6019_v1, 0.0 }
 0x30b   : > { %v6021_v38 = vpop.f32.mrf.mxu0  ;;  %v5766_v3 = vadd.f32 %v5765_v51, %v10496_v34 }
 0x30c   : > { %7514 = vst [vmem:[%s8378_s6 + $0x58] sm:$0xff] %v7422_v63   ;;  %v6022_v12 = vadd.f32 %v6021_v38, %v5758_v59  ;;  %v5767_v56 = vpop.f32.mrf.mxu1  ;;  %v6240_v4 = vadd.f32 %v10720_v27, %v6176_v62 }
 0x30d   : > { %v7635_v30 = vpop.f32.mrf.mxu0 }
 0x30e   : > { %v6177_v45 = vmax.f32 %v6022_v12, 0.0  ;;  %v5770_v60 = vpop.f32.mrf.mxu1 }
 0x30f   : > { %v6026_v25 = vpop.f32.mrf.mxu0  ;;  %v5771_v29 = vadd.f32 %v5770_v60, %v10508_v37 }
 0x310   : > { %v6241_v50 = vadd.f32 %v10720_v27, %v6177_v45  ;;  %v6027_v19 = vadd.f32 %v6026_v25, %v5763_v24  ;;  %v5772_v14 = vpop.f32.mrf.mxu1 }
 0x311   : > { %v7638_v6 = vpop.f32.mrf.mxu0 }
 0x312   : > { %v7427_v9 = vpack.c.bf16 %v6241_v50, %v6240_v4  ;;  %v5773_v58 = vpop.f32.mrf.mxu1  ;;  %v6178_v35 = vmax.f32 %v6027_v19, 0.0 }
 0x313   : > { %v6029_v42 = vpop.f32.mrf.mxu0  ;;  %v5774_v59 = vadd.f32 %v5773_v58, %v10527_v17 }
 0x314   : > { %7515 = vst [vmem:[%s8378_s6 + $0x60] sm:$0xff] %v7427_v9   ;;  %v6030_v54 = vadd.f32 %v6029_v42, %v5766_v3  ;;  %v5775_v36 = vpop.f32.mrf.mxu1  ;;  %v6242_v1 = vadd.f32 %v10720_v27, %v6178_v35 }
 0x315   : > { %v7639_v41 = vpop.f32.mrf.mxu0 }
 0x316   : > { %v6179_v33 = vmax.f32 %v6030_v54, 0.0  ;;  %v5778_v16 = vpop.f32.mrf.mxu1 }
 0x317   : > { %v6034_v18 = vpop.f32.mrf.mxu0  ;;  %v5779_v30 = vadd.f32 %v5778_v16, %v10539_v7 }
 0x318   : > { %v6243_v31 = vadd.f32 %v10720_v27, %v6179_v33  ;;  %v6035_v23 = vadd.f32 %v6034_v18, %v5771_v29  ;;  %v5780_v34 = vpop.f32.mrf.mxu1 }
 0x319   : > { %v7642_v26 = vpop.f32.mrf.mxu0 }
 0x31a   : > { %v7432_v63 = vpack.c.bf16 %v6243_v31, %v6242_v1  ;;  %v5781_v51 = vpop.f32.mrf.mxu1  ;;  %v6180_v62 = vmax.f32 %v6035_v23, 0.0 }
 0x31b   : > { %v6037_v38 = vpop.f32.mrf.mxu0  ;;  %v5782_v19 = vadd.f32 %v5781_v51, %v10548_v8 }
 0x31c   : > { %7516 = vst [vmem:[%s8378_s6 + $0x68] sm:$0xff] %v7432_v63   ;;  %v6038_v12 = vadd.f32 %v6037_v38, %v5774_v59  ;;  %v5783_v37 = vpop.f32.mrf.mxu1  ;;  %v6244_v60 = vadd.f32 %v10720_v27, %v6180_v62 }
 0x31d   : > { %v7643_v56 = vpop.f32.mrf.mxu0 }
 0x31e   : > { %v6181_v15 = vmax.f32 %v6038_v12, 0.0  ;;  %v5786_v24 = vpop.f32.mrf.mxu1 }
 0x31f   : > { %v6042_v45 = vpop.f32.mrf.mxu0  ;;  %v5787_v35 = vadd.f32 %v5786_v24, %v10555_v28 }
 0x320   : > { %v6245_v25 = vadd.f32 %v10720_v27, %v6181_v15  ;;  %v6043_v4 = vadd.f32 %v6042_v45, %v5779_v30  ;;  %v5788_v17 = vpop.f32.mrf.mxu1 }
 0x321   : > { %v7646_v50 = vpop.f32.mrf.mxu0 }
 0x322   : > { %v7437_v14 = vpack.c.bf16 %v6245_v25, %v6244_v60  ;;  %v5789_v6 = vpop.f32.mrf.mxu1  ;;  %v6182_v9 = vmax.f32 %v6043_v4, 0.0 }
 0x323   : > { %v6045_v3 = vpop.f32.mrf.mxu0  ;;  %v5790_v1 = vadd.f32 %v5789_v6, %v10561_v55 }
 0x324   : > { %7517 = vst [vmem:[%s8378_s6 + $0x70] sm:$0xff] %v7437_v14   ;;  %v6046_v58 = vadd.f32 %v6045_v3, %v5782_v19  ;;  %v5791_v7 = vpop.f32.mrf.mxu1  ;;  %v6246_v29 = vadd.f32 %v10720_v27, %v6182_v9 }
 0x325   : > { %v7647_v42 = vpop.f32.mrf.mxu0 }
 0x326   : > { %v6183_v54 = vmax.f32 %v6046_v58, 0.0  ;;  %v5794_v36 = vpop.f32.mrf.mxu1 }
 0x327   : > { %v6050_v41 = vpop.f32.mrf.mxu0  ;;  %v5795_v51 = vadd.f32 %v5794_v36, %v10565_v40 }
 0x328   : > { %v6247_v33 = vadd.f32 %v10720_v27, %v6183_v54  ;;  %v6051_v16 = vadd.f32 %v6050_v41, %v5787_v35  ;;  %v5796_v8 = vpop.f32.mrf.mxu1 }
 0x329   : > { %v7650_v18 = vpop.f32.mrf.mxu0 }
 0x32a   : > { %v7442_v31 = vpack.c.bf16 %v6247_v33, %v6246_v29  ;;  %v5797_v23 = vpop.f32.mrf.mxu1  ;;  %v6184_v26 = vmax.f32 %v6051_v16, 0.0 }
 0x32b   : > { %v6053_v34 = vpop.f32.mrf.mxu0  ;;  %v5798_v24 = vadd.f32 %v5797_v23, %v10574_v21 }
 0x32c   : > { %7518 = vst [vmem:[%s8378_s6 + $0x78] sm:$0xff] %v7442_v31   ;;  %v6054_v59 = vadd.f32 %v6053_v34, %v5790_v1  ;;  %v5799_v28 = vpop.f32.mrf.mxu1  ;;  %v6248_v37 = vadd.f32 %v10720_v27, %v6184_v26 }
 0x32d   : > { %v7651_v63 = vpop.f32.mrf.mxu0 }
 0x32e   : > { %v6185_v38 = vmax.f32 %v6054_v59, 0.0  ;;  %v5802_v62 = vpop.f32.mrf.mxu1 }
 0x32f   : > { %v6058_v12 = vpop.f32.mrf.mxu0  ;;  %v5803_v19 = vadd.f32 %v5802_v62, %v10581_v0 }
 0x330   : > { %v6249_v56 = vadd.f32 %v10720_v27, %v6185_v38  ;;  %v6059_v30 = vadd.f32 %v6058_v12, %v5795_v51  ;;  %v5804_v55 = vpop.f32.mrf.mxu1 }
 0x331   : > { %v7654_v15 = vpop.f32.mrf.mxu0 }
 0x332   : > { %v7447_v45 = vpack.c.bf16 %v6249_v56, %v6248_v37  ;;  %v5805_v60 = vpop.f32.mrf.mxu1  ;;  %v6186_v4 = vmax.f32 %v6059_v30, 0.0 }
 0x333   : > { %v6061_v25 = vpop.f32.mrf.mxu0  ;;  %v5806_v35 = vadd.f32 %v5805_v60, %v10587_v57 }
 0x334   : > { %7519 = vst [vmem:[%s8378_s6 + $0x80] sm:$0xff] %v7447_v45   ;;  %v6062_v17 = vadd.f32 %v6061_v25, %v5798_v24  ;;  %v5807_v40 = vpop.f32.mrf.mxu1  ;;  %v6250_v9 = vadd.f32 %v10720_v27, %v6186_v4 }
 0x335   : > { %v7655_v50 = vpop.f32.mrf.mxu0 }
 0x336   : > { %v6187_v14 = vmax.f32 %v6062_v17, 0.0  ;;  %v5810_v6 = vpop.f32.mrf.mxu1 }
 0x337   : > { %v6066_v3 = vpop.f32.mrf.mxu0  ;;  %v5811_v8 = vadd.f32 %v5810_v6, %v10591_v43 }
 0x338   : > { %v6251_v58 = vadd.f32 %v10720_v27, %v6187_v14  ;;  %v6067_v7 = vadd.f32 %v6066_v3, %v5803_v19  ;;  %v5812_v21 = vpop.f32.mrf.mxu1 }
 0x339   : > { %v7658_v42 = vpop.f32.mrf.mxu0 }
 0x33a   : > { %v7452_v54 = vpack.c.bf16 %v6251_v58, %v6250_v9  ;;  %v5813_v36 = vpop.f32.mrf.mxu1  ;;  %v6188_v29 = vmax.f32 %v6067_v7, 0.0 }
 0x33b   : > { %v6069_v41 = vpop.f32.mrf.mxu0  ;;  %v5814_v28 = vadd.f32 %v5813_v36, %v10597_v5 }
 0x33c   : > { %7520 = vst [vmem:[%s8378_s6 + $0x88] sm:$0xff] %v7452_v54   ;;  %v6070_v33 = vadd.f32 %v6069_v41, %v5806_v35  ;;  %v5815_v0 = vpop.f32.mrf.mxu1  ;;  %v6252_v23 = vadd.f32 %v10720_v27, %v6188_v29 }
 0x33d   : > { %v7659_v16 = vpop.f32.mrf.mxu0 }
 0x33e   : > { %v6189_v18 = vmax.f32 %v6070_v33, 0.0  ;;  %v5818_v1 = vpop.f32.mrf.mxu1 }
 0x33f   : > { %v6074_v31 = vpop.f32.mrf.mxu0  ;;  %v5819_v56 = vadd.f32 %v5818_v1, %v10601_v20 }
 0x340   : > { %v6253_v34 = vadd.f32 %v10720_v27, %v6189_v18  ;;  %v6075_v26 = vadd.f32 %v6074_v31, %v5811_v8  ;;  %v5820_v57 = vpop.f32.mrf.mxu1 }
 0x341   : > { %v7662_v59 = vpop.f32.mrf.mxu0 }
 0x342   : > { %v7457_v63 = vpack.c.bf16 %v6253_v34, %v6252_v23  ;;  %v5821_v51 = vpop.f32.mrf.mxu1  ;;  %v6190_v62 = vmax.f32 %v6075_v26, 0.0 }
 0x343   : > { %v6077_v38 = vpop.f32.mrf.mxu0  ;;  %v5822_v4 = vadd.f32 %v5821_v51, %v10610_v61 }
 0x344   : > { %7521 = vst [vmem:[%s8378_s6 + $0x90] sm:$0xff] %v7457_v63   ;;  %v6078_v12 = vadd.f32 %v6077_v38, %v5814_v28  ;;  %v5823_v43 = vpop.f32.mrf.mxu1  ;;  %v6254_v24 = vadd.f32 %v10720_v27, %v6190_v62 }
 0x345   : > { %v7663_v37 = vpop.f32.mrf.mxu0 }
 0x346   : > { %v6191_v30 = vmax.f32 %v6078_v12, 0.0  ;;  %v5826_v55 = vpop.f32.mrf.mxu1 }
 0x347   : > { %v6082_v15 = vpop.f32.mrf.mxu0  ;;  %v5827_v3 = vadd.f32 %v5826_v55, %v10618_v32 }
 0x348   : > { %v6255_v45 = vadd.f32 %v10720_v27, %v6191_v30  ;;  %v6083_v60 = vadd.f32 %v6082_v15, %v5819_v56  ;;  %v5828_v5 = vpop.f32.mrf.mxu1 }
 0x349   : > { %v7666_v25 = vpop.f32.mrf.mxu0 }
 0x34a   : > { %v7462_v17 = vpack.c.bf16 %v6255_v45, %v6254_v24  ;;  %v5829_v40 = vpop.f32.mrf.mxu1  ;;  %v6192_v19 = vmax.f32 %v6083_v60, 0.0 }
 0x34b   : > { %v6085_v50 = vpop.f32.mrf.mxu0  ;;  %v5830_v36 = vadd.f32 %v5829_v40, %v10625_v44 }
 0x34c   : > { %7522 = vst [vmem:[%s8378_s6 + $0x98] sm:$0xff] %v7462_v17   ;;  %v6086_v14 = vadd.f32 %v6085_v50, %v5822_v4  ;;  %v5831_v20 = vpop.f32.mrf.mxu1  ;;  %v6256_v21 = vadd.f32 %v10720_v27, %v6192_v19 }
 0x34d   : > { %v7667_v6 = vpop.f32.mrf.mxu0 }
 0x34e   : > { %v6193_v9 = vmax.f32 %v6086_v14, 0.0  ;;  %v5834_v58 = vpop.f32.mrf.mxu1 }
 0x34f   : > { %v6090_v7 = vpop.f32.mrf.mxu0  ;;  %v5835_v18 = vadd.f32 %v5834_v58, %v10629_v46 }
 0x350   : > { %v6257_v42 = vadd.f32 %v10720_v27, %v6193_v9  ;;  %v6091_v35 = vadd.f32 %v6090_v7, %v5827_v3  ;;  %v5836_v61 = vpop.f32.mrf.mxu1 }
 0x351   : > { %v7670_v54 = vpop.f32.mrf.mxu0 }
 0x352   : > { %v7467_v41 = vpack.c.bf16 %v6257_v42, %v6256_v21  ;;  %v5837_v29 = vpop.f32.mrf.mxu1  ;;  %v6194_v0 = vmax.f32 %v6091_v35, 0.0 }
 0x353   : > { %v6093_v33 = vpop.f32.mrf.mxu0  ;;  %v5838_v28 = vadd.f32 %v5837_v29, %v10638_v53 }
 0x354   : > { %7523 = vst [vmem:[%s8378_s6 + $0xa0] sm:$0xff] %v7467_v41   ;;  %v6094_v16 = vadd.f32 %v6093_v33, %v5830_v36  ;;  %v5839_v32 = vpop.f32.mrf.mxu1  ;;  %v6258_v34 = vadd.f32 %v10720_v27, %v6194_v0 }
 0x355   : > { %v7671_v8 = vpop.f32.mrf.mxu0 }
 0x356   : > { %v6195_v1 = vmax.f32 %v6094_v16, 0.0  ;;  %v5842_v31 = vpop.f32.mrf.mxu1 }
 0x357   : > { %v6098_v23 = vpop.f32.mrf.mxu0  ;;  %v5843_v37 = vadd.f32 %v5842_v31, %v10646_v11 }
 0x358   : > { %v6259_v26 = vadd.f32 %v10720_v27, %v6195_v1  ;;  %v6099_v57 = vadd.f32 %v6098_v23, %v5835_v18  ;;  %v5844_v44 = vpop.f32.mrf.mxu1 }
 0x359   : > { %v7674_v59 = vpop.f32.mrf.mxu0 }
 0x35a   : > { %v7472_v63 = vpack.c.bf16 %v6259_v26, %v6258_v34  ;;  %v5845_v51 = vpop.f32.mrf.mxu1  ;;  %v6196_v62 = vmax.f32 %v6099_v57, 0.0 }
 0x35b   : > { %v6101_v38 = vpop.f32.mrf.mxu0  ;;  %v5846_v5 = vadd.f32 %v5845_v51, %v10653_v2 }
 0x35c   : > { %7524 = vst [vmem:[%s8378_s6 + $0xa8] sm:$0xff] %v7472_v63   ;;  %v6102_v12 = vadd.f32 %v6101_v38, %v5838_v28  ;;  %v5847_v46 = vpop.f32.mrf.mxu1  ;;  %v6260_v15 = vadd.f32 %v10720_v27, %v6196_v62 }
 0x35d   : > { %v7675_v43 = vpop.f32.mrf.mxu0 }
 0x35e   : > { %v6197_v56 = vmax.f32 %v6102_v12, 0.0  ;;  %v5850_v30 = vpop.f32.mrf.mxu1 }
 0x35f   : > { %v6106_v55 = vpop.f32.mrf.mxu0  ;;  %v5851_v14 = vadd.f32 %v5850_v30, %v10657_v52 }
 0x360   : > { %v6261_v24 = vadd.f32 %v10720_v27, %v6197_v56  ;;  %v6107_v45 = vadd.f32 %v6106_v55, %v5843_v37  ;;  %v5852_v53 = vpop.f32.mrf.mxu1 }
 0x361   : > { %v7678_v60 = vpop.f32.mrf.mxu0 }
 0x362   : > { %v7477_v25 = vpack.c.bf16 %v6261_v24, %v6260_v15  ;;  %v5853_v4 = vpop.f32.mrf.mxu1  ;;  %v6198_v40 = vmax.f32 %v6107_v45, 0.0 }
 0x363   : > { %v6109_v17 = vpop.f32.mrf.mxu0  ;;  %v5854_v42 = vadd.f32 %v5853_v4, %v10666_v49 }
 0x364   : > { %7525 = vst [vmem:[%s8378_s6 + $0xb0] sm:$0xff] %v7477_v25   ;;  %v6110_v50 = vadd.f32 %v6109_v17, %v5846_v5  ;;  %v5855_v11 = vpop.f32.mrf.mxu1  ;;  %v6262_v9 = vadd.f32 %v10720_v27, %v6198_v40 }
 0x365   : > { %v7679_v19 = vpop.f32.mrf.mxu0 }
 0x366   : > { %v6199_v20 = vmax.f32 %v6110_v50, 0.0  ;;  %v5858_v6 = vpop.f32.mrf.mxu1 }
 0x367   : > { %v6114_v3 = vpop.f32.mrf.mxu0  ;;  %v5859_v33 = vadd.f32 %v5858_v6, %v10674_v47 }
 0x368   : > { %v6263_v58 = vadd.f32 %v10720_v27, %v6199_v20  ;;  %v6115_v7 = vadd.f32 %v6114_v3, %v5851_v14  ;;  %v5860_v2 = vpop.f32.mrf.mxu1 }
 0x369   : > { %v7682_v21 = vpop.f32.mrf.mxu0 }
 0x36a   : > { %v7482_v35 = vpack.c.bf16 %v6263_v58, %v6262_v9  ;;  %v5861_v61 = vpop.f32.mrf.mxu1  ;;  %v6200_v36 = vmax.f32 %v6115_v7, 0.0  ;;  %v11272_v7 = vld [vmem:[#allocation24_spill] sm:$0xff] }
 0x36b   : > { %v6117_v54 = vpop.f32.mrf.mxu0  ;;  %v5862_v23 = vadd.f32 %v5861_v61, %v10681_v13 }
 0x36c   : > { %7526 = vst [vmem:[%s8378_s6 + $0xb8] sm:$0xff] %v7482_v35   ;;  %v6118_v41 = vadd.f32 %v6117_v54, %v5854_v42  ;;  %v5863_v52 = vpop.f32.mrf.mxu1  ;;  %v6264_v8 = vadd.f32 %v10720_v27, %v6200_v36 }
 0x36d   : > { %v7683_v29 = vpop.f32.mrf.mxu0 }
 0x36e   : > { %v6201_v0 = vmax.f32 %v6118_v41, 0.0  ;;  %v5866_v16 = vpop.f32.mrf.mxu1  ;;  %v8162_v29 = vld [vmem:[%s8370_s11] ss:$0 sm:$0xff] }
 0x36f   : > { %v6122_v32 = vpop.f32.mrf.mxu0  ;;  %v5867_v63 = vadd.f32 %v5866_v16, %v10685_v39 }
 0x370   : > { %v6265_v18 = vadd.f32 %v10720_v27, %v6201_v0  ;;  %v6123_v1 = vadd.f32 %v6122_v32, %v5859_v33  ;;  %v5868_v49 = vpop.f32.mrf.mxu1 }
 0x371   : > { %v7686_v31 = vpop.f32.mrf.mxu0 }
 0x372   : > { %v7487_v34 = vpack.c.bf16 %v6265_v18, %v6264_v8  ;;  %v5869_v26 = vpop.f32.mrf.mxu1  ;;  %v6202_v44 = vmax.f32 %v6123_v1, 0.0 }
 0x373   : > { %v6125_v57 = vpop.f32.mrf.mxu0  ;;  %v5870_v56 = vadd.f32 %v5869_v26, %v10691_v22 }
 0x374   : > { %7527 = vst [vmem:[%s8378_s6 + $0xc0] sm:$0xff] %v7487_v34   ;;  %v6126_v59 = vadd.f32 %v6125_v57, %v5862_v23  ;;  %v5871_v47 = vpop.f32.mrf.mxu1  ;;  %v6266_v12 = vadd.f32 %v10720_v27, %v6202_v44 }
 0x375   : > { %v7687_v28 = vpop.f32.mrf.mxu0 }
 0x376   : > { %v6203_v51 = vmax.f32 %v6126_v59, 0.0  ;;  %v5874_v38 = vpop.f32.mrf.mxu1 }
 0x377   : > { %v6130_v62 = vpop.f32.mrf.mxu0  ;;  %v5875_v60 = vadd.f32 %v5874_v38, %v10696_v10 }
 0x378   : > { %v6267_v46 = vadd.f32 %v10720_v27, %v6203_v51  ;;  %v6131_v43 = vadd.f32 %v6130_v62, %v5867_v63  ;;  %v5876_v13 = vpop.f32.mrf.mxu1 }
 0x379   : > { %v7690_v37 = vpop.f32.mrf.mxu0 }
 0x37a   : > { %v7492_v30 = vpack.c.bf16 %v6267_v46, %v6266_v12  ;;  %v5877_v55 = vpop.f32.mrf.mxu1  ;;  %v6204_v24 = vmax.f32 %v6131_v43, 0.0 }
 0x37b   : > { %v6133_v15 = vpop.f32.mrf.mxu0  ;;  %v5878_v19 = vadd.f32 %v5877_v55, %v10701_v48 }
 0x37c   : > { %7528 = vst [vmem:[%s8378_s6 + $0xc8] sm:$0xff] %v7492_v30   ;;  %v6134_v45 = vadd.f32 %v6133_v15, %v5870_v56  ;;  %v5879_v39 = vpop.f32.mrf.mxu1  ;;  %v6268_v17 = vadd.f32 %v10720_v27, %v6204_v24 }
 0x37d   : > { %v7691_v53 = vpop.f32.mrf.mxu0 }
 0x37e   : > { %v6205_v5 = vmax.f32 %v6134_v45, 0.0  ;;  %v5882_v25 = vpop.f32.mrf.mxu1 }
 0x37f   : > { %v6138_v4 = vpop.f32.mrf.mxu0  ;;  %v5883_v2 = vadd.f32 %v5882_v25, %v11272_v7 }
 0x380   : > { %v6269_v40 = vadd.f32 %v10720_v27, %v6205_v5  ;;  %v6139_v50 = vadd.f32 %v6138_v4, %v5875_v60  ;;  %v5884_v11 = vpop.f32.mrf.mxu1 }
 0x381   : > { %v7694_v22 = vpop.f32.mrf.mxu0 }
 0x382   : > { %v7497_v14 = vpack.c.bf16 %v6269_v40, %v6268_v17  ;;  %v5885_v6 = vpop.f32.mrf.mxu1  ;;  %v6206_v3 = vmax.f32 %v6139_v50, 0.0 }
 0x383   : > { %v6141_v20 = vpop.f32.mrf.mxu0 }
 0x384   : > { %7529 = vst [vmem:[%s8378_s6 + $0xd0] sm:$0xff] %v7497_v14   ;;  %v6142_v10 = vadd.f32 %v6141_v20, %v5878_v19  ;;  %v5886_v58 = vpop.f32.mrf.mxu1  ;;  %v6270_v35 = vadd.f32 %v10720_v27, %v6206_v3 }
 0x385   : > { %v7695_v9 = vpop.f32.mrf.mxu0 }
 0x386   : > { %v6207_v21 = vmax.f32 %v6142_v10, 0.0 }
 0x387   : > { %v6146_v42 = vpop.f32.mrf.mxu0 }
 0x388   : > { %v6271_v61 = vadd.f32 %v10720_v27, %v6207_v21  ;;  %v6147_v48 = vadd.f32 %v6146_v42, %v5883_v2 }
 0x389   : > { %v7698_v54 = vpop.f32.mrf.mxu0 }
 0x38a   : > { %v7502_v36 = vpack.c.bf16 %v6271_v61, %v6270_v35  ;;  %v6208_v41 = vmax.f32 %v6147_v48, 0.0 }
 0x38b   : > { %v6149_v52 = vpop.f32.mrf.mxu0 }
 0x38c   : > { %7530 = vst [vmem:[%s8378_s6 + $0xd8] sm:$0xff] %v7502_v36   ;;  %v6272_v33 = vadd.f32 %v8162_v29, %v6208_v41 }
 0x38d   : > { %v7699_v0 = vpop.f32.mrf.mxu0 }
 0x38e   : > { %v7363_v16 = vpack.c.bf16 %v6272_v33, %v6272_v33 }
 0x390   : > { %6558 = vst [vmem:[%s8378_s6 + $0xe0] sm:$0x1] %v7363_v16 }
 0x391 PF: > { %s15_s19 = sadd.s32 1, %s8263_s19   ;;  %s11273_s15 = smov %s8255_s17 }
 0x392   : > { %p12_p0 = scmp.ge.s32.totalorder %s15_s19, 6   ;;  %s11274_s16 = smov %s8259_s18 }
 0x393   : > { %s11275_s17 = smov %s11278_s21  ;;  %s11276_s18 = smov %s11282_s22 }
 0x394   :  { %14 = sbr.rel (!%p12_p0) target bundleno = 3 (0x3), region = 96 }
 0x399   :  { %6594 = vsyncpa [#allocation6], 1 }
 0x39a   :  { %6596 = vsyncpa [#allocation6 + $0x1], 1 }
 0x39b   :  { %6597 = vsyncmov [#allocation4] }
 0x39e   :  { %s6598_s11 = vpop.sfrf %6597 }
 0x39f   :  { %p7306_p1 = scmp.ne.s32.totalorder %s6598_s11, 0 }
 0x3a1   :  { %6602 = shalt.err (%p7306_p1)  }

</bundles_post_ra>
